<compile_context>
chip_gen: v5e
topology: v5e:2x2
jax: 0.10.0
libtpu: 0.0.40
codegen_flags: <defaults>
</compile_context>

<pallas_src>
import jax
import jax.numpy as jnp
from jax import lax
from jax.experimental import pallas as pl
from jax.experimental.pallas import tpu as pltpu


def _make_fused_doble_conv_kernel(H, W, Cin, Cmid, Cout, use_bf16_matmul):
    """Fused conv3x3+ReLU -> conv3x3+ReLU for a single image (NCHW in/out)."""
    HW = H * W

    def _dot(a, b):
        # Optional bf16 MXU inputs (v6e/v7x); accumulation stays f32.
        if use_bf16_matmul:
            a = a.astype(jnp.bfloat16)
            b = b.astype(jnp.bfloat16)
        return jnp.dot(a, b, preferred_element_type=jnp.float32)

    def _im2col_conv_relu(pad_ref, w_ref, b_ref, C):
        # pad_ref: (H+2, W+2, C) zero-padded activation resident in VMEM.
        cols = []
        for dy in range(3):
            for dx in range(3):
                cols.append(pad_ref[dy:dy + H, dx:dx + W, :].reshape(HW, C))
        patches = jnp.concatenate(cols, axis=-1)          # (HW, 9*C)  lane-dense K
        y = _dot(patches, w_ref[...]) + b_ref[...]        # (HW, C_out_of_layer)
        return jnp.maximum(y, 0.0)                        # ReLU

    def kernel(x_ref, w1_ref, b1_ref, w2_ref, b2_ref, o_ref, xpad_ref, mpad_ref):
        # ---- in-VMEM zero padding (padding=1) --------------------------------
        # Scratches persist across grid steps; re-zero each step so the halo is
        # always 0 (cheap at these sizes, and safe under megacore sharding).
        xpad_ref[...] = jnp.zeros_like(xpad_ref)
        mpad_ref[...] = jnp.zeros_like(mpad_ref)

        x_chw = x_ref[0]                                   # (Cin, H*W), NCHW layout
        # channel-major -> spatial-major, written into the padded interior
        xpad_ref[1:H + 1, 1:W + 1, :] = x_chw.T.reshape(H, W, Cin)

        # ---- conv1 + bias + ReLU (mid activation stays in VMEM) -------------
        mid = _im2col_conv_relu(xpad_ref, w1_ref, b1_ref, Cin)     # (HW, Cmid)
        mpad_ref[1:H + 1, 1:W + 1, :] = mid.reshape(H, W, Cmid)

        # ---- conv2 + bias + ReLU ---------------------------------------------
        out = _im2col_conv_relu(mpad_ref, w2_ref, b2_ref, Cmid)    # (HW, Cout)

        # Lane-dense store: (Cout, H*W) puts the long spatial axis on lanes
        # (unmasked vst) and is directly the NCHW layout for the wrapper.
        o_ref[0] = out.T.astype(o_ref.dtype)

    return kernel


def doble_conv(x_nchw, params, *, use_bf16_matmul=False):
    """Forward pass of DobleConv (BN=False). x_nchw: (N, Cin, H, W) float32.

    Set use_bf16_matmul=True on v6e/v7x for ~2x MXU rate / half the activation
    matmul bytes (loosen comparison tolerance to ~1e-2 if you do).
    """
    N, Cin, H, W = x_nchw.shape
    w1, b1, w2, b2 = params["w1"], params["b1"], params["w2"], params["b2"]
    Cmid = w1.shape[-1]
    Cout = w2.shape[-1]
    HW = H * W

    # Free (metadata-only) reshape: NCHW -> (N, C, H*W). No HBM transpose.
    x2d = x_nchw.reshape(N, Cin, HW).astype(jnp.float32)

    # Pre-flatten HWIO weights for the single im2col matmul:
    # (3, 3, C, Co) -> (9*C, Co); row index = dy*3*C + dx*C + c matches the
    # in-kernel concat order (dy outer, dx inner, channel innermost).
    w1f = w1.reshape(9 * Cin, Cmid).astype(jnp.float32)
    w2f = w2.reshape(9 * Cmid, Cout).astype(jnp.float32)
    b1r = b1.reshape(1, Cmid).astype(jnp.float32)
    b2r = b2.reshape(1, Cout).astype(jnp.float32)

    kernel = _make_fused_doble_conv_kernel(H, W, Cin, Cmid, Cout, use_bf16_matmul)

    # Rough per-step VMEM budget (double-buffered I/O blocks, padded scratches,
    # weights, im2col workspace) with generous headroom; clamp well under the
    # v7x 64 MiB VMEM so the same code compiles on v5e/v6e/v7x.
    est_bytes = 4 * (
        2 * (Cin * HW + Cout * HW)                              # pipelined in/out blocks
        + (H + 2) * (W + 2) * (Cin + Cmid)                      # padded scratches
        + 2 * (9 * Cin * Cmid + 9 * Cmid * Cout + Cmid + Cout)  # weights + biases
        + HW * (9 * Cin + 9 * Cmid + Cmid + Cout)               # im2col + activations
    )
    vmem_limit = int(min(max(4 * est_bytes, 4 * 1024 * 1024), 32 * 1024 * 1024))

    out = pl.pallas_call(
        kernel,
        out_shape=jax.ShapeDtypeStruct((N, Cout, HW), jnp.float32),
        grid_spec=pltpu.PrefetchScalarGridSpec(
            num_scalar_prefetch=0,
            grid=(N,),
            in_specs=[
                pl.BlockSpec((1, Cin, HW), lambda n: (n, 0, 0)),
                pl.BlockSpec((9 * Cin, Cmid), lambda n: (0, 0)),
                pl.BlockSpec((1, Cmid), lambda n: (0, 0)),
                pl.BlockSpec((9 * Cmid, Cout), lambda n: (0, 0)),
                pl.BlockSpec((1, Cout), lambda n: (0, 0)),
            ],
            out_specs=pl.BlockSpec((1, Cout, HW), lambda n: (n, 0, 0)),
            scratch_shapes=[
                pltpu.VMEM((H + 2, W + 2, Cin), jnp.float32),   # padded input
                pltpu.VMEM((H + 2, W + 2, Cmid), jnp.float32),  # padded mid act
            ],
        ),
        compiler_params=pltpu.CompilerParams(
            dimension_semantics=("parallel",),
            vmem_limit_bytes=vmem_limit,
        ),
    )(x2d, w1f, b1r, w2f, b2r)

    # Free reshape back to NCHW.
    return out.reshape(N, Cout, H, W)


def init_params(key, in_channels, mid_channels, out_channels):
    k1, k2, k3, k4 = jax.random.split(key, 4)
    fan1 = in_channels * 9
    fan2 = mid_channels * 9
    w1 = jax.random.uniform(k1, (3, 3, in_channels, mid_channels),
                            jnp.float32, -1.0 / fan1 ** 0.5, 1.0 / fan1 ** 0.5)
    b1 = jax.random.uniform(k2, (mid_channels,),
                            jnp.float32, -1.0 / fan1 ** 0.5, 1.0 / fan1 ** 0.5)
    w2 = jax.random.uniform(k3, (3, 3, mid_channels, out_channels),
                            jnp.float32, -1.0 / fan2 ** 0.5, 1.0 / fan2 ** 0.5)
    b2 = jax.random.uniform(k4, (out_channels,),
                            jnp.float32, -1.0 / fan2 ** 0.5, 1.0 / fan2 ** 0.5)
    return {"w1": w1, "b1": b1, "w2": w2, "b2": b2}


def _reference(x_nchw, params):
    """Pure-JAX reference (lax.conv) for correctness check."""
    def conv(x, w, b):  # x NCHW, w HWIO
        y = lax.conv_general_dilated(
            x, w, window_strides=(1, 1), padding=((1, 1), (1, 1)),
            dimension_numbers=("NCHW", "HWIO", "NCHW"))
        return jnp.maximum(y + b[None, :, None, None], 0.0)
    x = conv(x_nchw, params["w1"], params["b1"])
    x = conv(x, params["w2"], params["b2"])
    return x


if __name__ == "__main__":
    key = jax.random.PRNGKey(0)
    kx, kp = jax.random.split(key)

    N, Cin, Cmid, Cout, H, W = 2, 4, 8, 8, 16, 16
    x = jax.random.normal(kx, (N, Cin, H, W), jnp.float32)
    params = init_params(kp, Cin, Cmid, Cout)

    out = doble_conv(x, params)
    out = jax.block_until_ready(out)

    ref = _reference(x, params)
    assert out.shape == (N, Cout, H, W)
    assert jnp.allclose(out, ref, atol=1e-4, rtol=1e-4)

    print("KERNEL_OK")
</pallas_src>

<mosaic_0001>
module attributes {stable_mosaic.version = 11 : i64} {
  func.func @kernel(%arg0: i32, %arg1: memref<1x4x256xf32, #tpu.memory_space<vmem>>, %arg2: memref<36x8xf32, #tpu.memory_space<vmem>>, %arg3: memref<1x8xf32, #tpu.memory_space<vmem>>, %arg4: memref<72x8xf32, #tpu.memory_space<vmem>>, %arg5: memref<1x8xf32, #tpu.memory_space<vmem>>, %arg6: memref<1x8x256xf32, #tpu.memory_space<vmem>>, %arg7: memref<18x18x4xf32, #tpu.memory_space<vmem>>, %arg8: memref<18x18x8xf32, #tpu.memory_space<vmem>>) attributes {dimension_semantics = [#tpu.dimension_semantics<parallel>], iteration_bounds = array<i64: 2>, scalar_prefetch = 0 : i64, scratch_operands = 2 : i64, tpu.core_type = #tpu.core_type<tc>, window_params = [{transform_indices = @transform_0, window_bounds = array<i64: 1, 4, 256>}, {pipeline_mode = #tpu.pipeline_mode<synchronous>, transform_indices = @transform_1, window_bounds = array<i64: 36, 8>}, {pipeline_mode = #tpu.pipeline_mode<synchronous>, transform_indices = @transform_2, window_bounds = array<i64: 1, 8>}, {pipeline_mode = #tpu.pipeline_mode<synchronous>, transform_indices = @transform_3, window_bounds = array<i64: 72, 8>}, {pipeline_mode = #tpu.pipeline_mode<synchronous>, transform_indices = @transform_4, window_bounds = array<i64: 1, 8>}, {transform_indices = @transform_5, window_bounds = array<i64: 1, 8, 256>}]} {
    %cst = arith.constant 0.000000e+00 : f32
    %0 = vector.broadcast %cst : f32 to vector<18x18x4xf32>
    %c0 = arith.constant 0 : index
    %c0_0 = arith.constant 0 : index
    %c0_1 = arith.constant 0 : index
    %1 = vector.load %arg7[%c0, %c0_0, %c0_1] : memref<18x18x4xf32, #tpu.memory_space<vmem>>, vector<18x18x4xf32>
    tpu.vector_store %arg7[%c0, %c0_0, %c0_1], %0 {strides = array<i32>} : memref<18x18x4xf32, #tpu.memory_space<vmem>>, vector<18x18x4xf32>,
    %cst_2 = arith.constant 0.000000e+00 : f32
    %2 = vector.broadcast %cst_2 : f32 to vector<18x18x8xf32>
    %c0_3 = arith.constant 0 : index
    %c0_4 = arith.constant 0 : index
    %c0_5 = arith.constant 0 : index
    %3 = vector.load %arg8[%c0_3, %c0_4, %c0_5] : memref<18x18x8xf32, #tpu.memory_space<vmem>>, vector<18x18x8xf32>
    tpu.vector_store %arg8[%c0_3, %c0_4, %c0_5], %2 {strides = array<i32>} : memref<18x18x8xf32, #tpu.memory_space<vmem>>, vector<18x18x8xf32>,
    %c0_6 = arith.constant 0 : index
    %c0_7 = arith.constant 0 : index
    %c0_8 = arith.constant 0 : index
    %4 = vector.load %arg1[%c0_6, %c0_7, %c0_8] : memref<1x4x256xf32, #tpu.memory_space<vmem>>, vector<1x4x256xf32>
    %5 = vector.shape_cast %4 : vector<1x4x256xf32> to vector<4x256xf32>
    %6 = tpu.transpose %5, [1, 0] : vector<4x256xf32> -> vector<256x4xf32>
    %7 = vector.shape_cast %6 : vector<256x4xf32> to vector<16x16x4xf32>
    %c1 = arith.constant 1 : index
    %c1_9 = arith.constant 1 : index
    %c0_10 = arith.constant 0 : index
    %8 = vector.load %arg7[%c1, %c1_9, %c0_10] : memref<18x18x4xf32, #tpu.memory_space<vmem>>, vector<16x16x4xf32>
    tpu.vector_store %arg7[%c1, %c1_9, %c0_10], %7 {strides = array<i32>} : memref<18x18x4xf32, #tpu.memory_space<vmem>>, vector<16x16x4xf32>,
    %c0_11 = arith.constant 0 : index
    %c0_12 = arith.constant 0 : index
    %c0_13 = arith.constant 0 : index
    %9 = vector.load %arg7[%c0_11, %c0_12, %c0_13] : memref<18x18x4xf32, #tpu.memory_space<vmem>>, vector<16x16x4xf32>
    %10 = vector.shape_cast %9 : vector<16x16x4xf32> to vector<256x4xf32>
    %c0_14 = arith.constant 0 : index
    %c1_15 = arith.constant 1 : index
    %c0_16 = arith.constant 0 : index
    %11 = vector.load %arg7[%c0_14, %c1_15, %c0_16] : memref<18x18x4xf32, #tpu.memory_space<vmem>>, vector<16x16x4xf32>
    %12 = vector.shape_cast %11 : vector<16x16x4xf32> to vector<256x4xf32>
    %c0_17 = arith.constant 0 : index
    %c2 = arith.constant 2 : index
    %c0_18 = arith.constant 0 : index
    %13 = vector.load %arg7[%c0_17, %c2, %c0_18] : memref<18x18x4xf32, #tpu.memory_space<vmem>>, vector<16x16x4xf32>
    %14 = vector.shape_cast %13 : vector<16x16x4xf32> to vector<256x4xf32>
    %c1_19 = arith.constant 1 : index
    %c0_20 = arith.constant 0 : index
    %c0_21 = arith.constant 0 : index
    %15 = vector.load %arg7[%c1_19, %c0_20, %c0_21] : memref<18x18x4xf32, #tpu.memory_space<vmem>>, vector<16x16x4xf32>
    %16 = vector.shape_cast %15 : vector<16x16x4xf32> to vector<256x4xf32>
    %c1_22 = arith.constant 1 : index
    %c1_23 = arith.constant 1 : index
    %c0_24 = arith.constant 0 : index
    %17 = vector.load %arg7[%c1_22, %c1_23, %c0_24] : memref<18x18x4xf32, #tpu.memory_space<vmem>>, vector<16x16x4xf32>
    %18 = vector.shape_cast %17 : vector<16x16x4xf32> to vector<256x4xf32>
    %c1_25 = arith.constant 1 : index
    %c2_26 = arith.constant 2 : index
    %c0_27 = arith.constant 0 : index
    %19 = vector.load %arg7[%c1_25, %c2_26, %c0_27] : memref<18x18x4xf32, #tpu.memory_space<vmem>>, vector<16x16x4xf32>
    %20 = vector.shape_cast %19 : vector<16x16x4xf32> to vector<256x4xf32>
    %c2_28 = arith.constant 2 : index
    %c0_29 = arith.constant 0 : index
    %c0_30 = arith.constant 0 : index
    %21 = vector.load %arg7[%c2_28, %c0_29, %c0_30] : memref<18x18x4xf32, #tpu.memory_space<vmem>>, vector<16x16x4xf32>
    %22 = vector.shape_cast %21 : vector<16x16x4xf32> to vector<256x4xf32>
    %c2_31 = arith.constant 2 : index
    %c1_32 = arith.constant 1 : index
    %c0_33 = arith.constant 0 : index
    %23 = vector.load %arg7[%c2_31, %c1_32, %c0_33] : memref<18x18x4xf32, #tpu.memory_space<vmem>>, vector<16x16x4xf32>
    %24 = vector.shape_cast %23 : vector<16x16x4xf32> to vector<256x4xf32>
    %c2_34 = arith.constant 2 : index
    %c2_35 = arith.constant 2 : index
    %c0_36 = arith.constant 0 : index
    %25 = vector.load %arg7[%c2_34, %c2_35, %c0_36] : memref<18x18x4xf32, #tpu.memory_space<vmem>>, vector<16x16x4xf32>
    %26 = vector.shape_cast %25 : vector<16x16x4xf32> to vector<256x4xf32>
    %27 = tpu.concatenate %10, %12, %14, %16, %18, %20, %22, %24, %26 in 1 : vector<256x4xf32>, vector<256x4xf32>, vector<256x4xf32>, vector<256x4xf32>, vector<256x4xf32>, vector<256x4xf32>, vector<256x4xf32>, vector<256x4xf32>, vector<256x4xf32> -> vector<256x36xf32>
    %c0_37 = arith.constant 0 : index
    %c0_38 = arith.constant 0 : index
    %28 = vector.load %arg2[%c0_37, %c0_38] : memref<36x8xf32, #tpu.memory_space<vmem>>, vector<36x8xf32>
    %cst_39 = arith.constant dense<0.000000e+00> : vector<256x8xf32>
    %29 = tpu.matmul %27, %28, %cst_39 {dimension_numbers = #tpu.dot_dimension_numbers<[1], [0], [0], [1], [0, 0, 1, 1], [], []>} : vector<256x36xf32>, vector<36x8xf32>, vector<256x8xf32> -> vector<256x8xf32>
    %c0_40 = arith.constant 0 : index
    %c0_41 = arith.constant 0 : index
    %30 = vector.load %arg3[%c0_40, %c0_41] : memref<1x8xf32, #tpu.memory_space<vmem>>, vector<1x8xf32>
    %31 = vector.broadcast %30 : vector<1x8xf32> to vector<256x8xf32>
    %32 = arith.addf %29, %31 : vector<256x8xf32>
    %cst_42 = arith.constant 0.000000e+00 : f32
    %33 = vector.broadcast %cst_42 : f32 to vector<256x8xf32>
    %34 = arith.maximumf %32, %33 : vector<256x8xf32>
    %35 = vector.shape_cast %34 : vector<256x8xf32> to vector<16x16x8xf32>
    %c1_43 = arith.constant 1 : index
    %c1_44 = arith.constant 1 : index
    %c0_45 = arith.constant 0 : index
    %36 = vector.load %arg8[%c1_43, %c1_44, %c0_45] : memref<18x18x8xf32, #tpu.memory_space<vmem>>, vector<16x16x8xf32>
    tpu.vector_store %arg8[%c1_43, %c1_44, %c0_45], %35 {strides = array<i32>} : memref<18x18x8xf32, #tpu.memory_space<vmem>>, vector<16x16x8xf32>,
    %c0_46 = arith.constant 0 : index
    %c0_47 = arith.constant 0 : index
    %c0_48 = arith.constant 0 : index
    %37 = vector.load %arg8[%c0_46, %c0_47, %c0_48] : memref<18x18x8xf32, #tpu.memory_space<vmem>>, vector<16x16x8xf32>
    %38 = vector.shape_cast %37 : vector<16x16x8xf32> to vector<256x8xf32>
    %c0_49 = arith.constant 0 : index
    %c1_50 = arith.constant 1 : index
    %c0_51 = arith.constant 0 : index
    %39 = vector.load %arg8[%c0_49, %c1_50, %c0_51] : memref<18x18x8xf32, #tpu.memory_space<vmem>>, vector<16x16x8xf32>
    %40 = vector.shape_cast %39 : vector<16x16x8xf32> to vector<256x8xf32>
    %c0_52 = arith.constant 0 : index
    %c2_53 = arith.constant 2 : index
    %c0_54 = arith.constant 0 : index
    %41 = vector.load %arg8[%c0_52, %c2_53, %c0_54] : memref<18x18x8xf32, #tpu.memory_space<vmem>>, vector<16x16x8xf32>
    %42 = vector.shape_cast %41 : vector<16x16x8xf32> to vector<256x8xf32>
    %c1_55 = arith.constant 1 : index
    %c0_56 = arith.constant 0 : index
    %c0_57 = arith.constant 0 : index
    %43 = vector.load %arg8[%c1_55, %c0_56, %c0_57] : memref<18x18x8xf32, #tpu.memory_space<vmem>>, vector<16x16x8xf32>
    %44 = vector.shape_cast %43 : vector<16x16x8xf32> to vector<256x8xf32>
    %c1_58 = arith.constant 1 : index
    %c1_59 = arith.constant 1 : index
    %c0_60 = arith.constant 0 : index
    %45 = vector.load %arg8[%c1_58, %c1_59, %c0_60] : memref<18x18x8xf32, #tpu.memory_space<vmem>>, vector<16x16x8xf32>
    %46 = vector.shape_cast %45 : vector<16x16x8xf32> to vector<256x8xf32>
    %c1_61 = arith.constant 1 : index
    %c2_62 = arith.constant 2 : index
    %c0_63 = arith.constant 0 : index
    %47 = vector.load %arg8[%c1_61, %c2_62, %c0_63] : memref<18x18x8xf32, #tpu.memory_space<vmem>>, vector<16x16x8xf32>
    %48 = vector.shape_cast %47 : vector<16x16x8xf32> to vector<256x8xf32>
    %c2_64 = arith.constant 2 : index
    %c0_65 = arith.constant 0 : index
    %c0_66 = arith.constant 0 : index
    %49 = vector.load %arg8[%c2_64, %c0_65, %c0_66] : memref<18x18x8xf32, #tpu.memory_space<vmem>>, vector<16x16x8xf32>
    %50 = vector.shape_cast %49 : vector<16x16x8xf32> to vector<256x8xf32>
    %c2_67 = arith.constant 2 : index
    %c1_68 = arith.constant 1 : index
    %c0_69 = arith.constant 0 : index
    %51 = vector.load %arg8[%c2_67, %c1_68, %c0_69] : memref<18x18x8xf32, #tpu.memory_space<vmem>>, vector<16x16x8xf32>
    %52 = vector.shape_cast %51 : vector<16x16x8xf32> to vector<256x8xf32>
    %c2_70 = arith.constant 2 : index
    %c2_71 = arith.constant 2 : index
    %c0_72 = arith.constant 0 : index
    %53 = vector.load %arg8[%c2_70, %c2_71, %c0_72] : memref<18x18x8xf32, #tpu.memory_space<vmem>>, vector<16x16x8xf32>
    %54 = vector.shape_cast %53 : vector<16x16x8xf32> to vector<256x8xf32>
    %55 = tpu.concatenate %38, %40, %42, %44, %46, %48, %50, %52, %54 in 1 : vector<256x8xf32>, vector<256x8xf32>, vector<256x8xf32>, vector<256x8xf32>, vector<256x8xf32>, vector<256x8xf32>, vector<256x8xf32>, vector<256x8xf32>, vector<256x8xf32> -> vector<256x72xf32>
    %c0_73 = arith.constant 0 : index
    %c0_74 = arith.constant 0 : index
    %56 = vector.load %arg4[%c0_73, %c0_74] : memref<72x8xf32, #tpu.memory_space<vmem>>, vector<72x8xf32>
    %cst_75 = arith.constant dense<0.000000e+00> : vector<256x8xf32>
    %57 = tpu.matmul %55, %56, %cst_75 {dimension_numbers = #tpu.dot_dimension_numbers<[1], [0], [0], [1], [0, 0, 1, 1], [], []>} : vector<256x72xf32>, vector<72x8xf32>, vector<256x8xf32> -> vector<256x8xf32>
    %c0_76 = arith.constant 0 : index
    %c0_77 = arith.constant 0 : index
    %58 = vector.load %arg5[%c0_76, %c0_77] : memref<1x8xf32, #tpu.memory_space<vmem>>, vector<1x8xf32>
    %59 = vector.broadcast %58 : vector<1x8xf32> to vector<256x8xf32>
    %60 = arith.addf %57, %59 : vector<256x8xf32>
    %cst_78 = arith.constant 0.000000e+00 : f32
    %61 = vector.broadcast %cst_78 : f32 to vector<256x8xf32>
    %62 = arith.maximumf %60, %61 : vector<256x8xf32>
    %63 = tpu.transpose %62, [1, 0] : vector<256x8xf32> -> vector<8x256xf32>
    %c0_79 = arith.constant 0 : index
    %c0_80 = arith.constant 0 : index
    %c0_81 = arith.constant 0 : index
    %64 = vector.load %arg6[%c0_79, %c0_80, %c0_81] : memref<1x8x256xf32, #tpu.memory_space<vmem>>, vector<1x8x256xf32>
    %65 = vector.shape_cast %64 : vector<1x8x256xf32> to vector<8x256xf32>
    %66 = vector.shape_cast %63 : vector<8x256xf32> to vector<1x8x256xf32>
    tpu.vector_store %arg6[%c0_79, %c0_80, %c0_81], %66 {strides = array<i32>} : memref<1x8x256xf32, #tpu.memory_space<vmem>>, vector<1x8x256xf32>,
    return
  }
  func.func @transform_0(%arg0: i32) -> (i32, i32, i32) {
    %c0_i32 = arith.constant 0 : i32
    %c0_i32_0 = arith.constant 0 : i32
    %c0_i32_1 = arith.constant 0 : i32
    return %arg0, %c0_i32, %c0_i32_0 : i32, i32, i32
  }
  func.func @transform_1(%arg0: i32) -> (i32, i32) {
    %c0_i32 = arith.constant 0 : i32
    %c0_i32_0 = arith.constant 0 : i32
    %c0_i32_1 = arith.constant 0 : i32
    return %c0_i32, %c0_i32_0 : i32, i32
  }
  func.func @transform_2(%arg0: i32) -> (i32, i32) {
    %c0_i32 = arith.constant 0 : i32
    %c0_i32_0 = arith.constant 0 : i32
    %c0_i32_1 = arith.constant 0 : i32
    return %c0_i32, %c0_i32_0 : i32, i32
  }
  func.func @transform_3(%arg0: i32) -> (i32, i32) {
    %c0_i32 = arith.constant 0 : i32
    %c0_i32_0 = arith.constant 0 : i32
    %c0_i32_1 = arith.constant 0 : i32
    return %c0_i32, %c0_i32_0 : i32, i32
  }
  func.func @transform_4(%arg0: i32) -> (i32, i32) {
    %c0_i32 = arith.constant 0 : i32
    %c0_i32_0 = arith.constant 0 : i32
    %c0_i32_1 = arith.constant 0 : i32
    return %c0_i32, %c0_i32_0 : i32, i32
  }
  func.func @transform_5(%arg0: i32) -> (i32, i32, i32) {
    %c0_i32 = arith.constant 0 : i32
    %c0_i32_0 = arith.constant 0 : i32
    %c0_i32_1 = arith.constant 0 : i32
    return %arg0, %c0_i32, %c0_i32_0 : i32, i32, i32
  }
}

</mosaic_0001>

<bundles_post_ra>
// kernel: tpu_custom_call.1
= control target key start
LH: loop header
LB: loop body
LE: loop exit
PB: predicated region body
PF: predicated region fallthrough
CT: control target
= control target key end

     0   :  { %10 = vsyncpa [#allocation5], 0  ;;  %s7985_s0 = inlined_call_operand.vmem [shape: f32[2,4,256], index: 0, kind: input, shape index: {}]   ;;  %s7986_s1 = inlined_call_operand.vmem [shape: f32[36,8], index: 1, kind: input, shape index: {}]   ;;  %s7987_s2 = inlined_call_operand.vmem [shape: f32[1,8], index: 2, kind: input, shape index: {}]   ;;  %s7988_s3 = inlined_call_operand.vmem [shape: f32[72,8], index: 3, kind: input, shape index: {}]   ;;  %s7989_s4 = inlined_call_operand.vmem [shape: f32[1,8], index: 4, kind: input, shape index: {}]   ;;  %s7990_s5 = inlined_call_operand.hbm [shape: f32[2,8,256], index: 5, kind: output, shape index: {}]  }
   0x1   :  { %12 = vsyncpa [#allocation5 + $0x1], 0  ;;  %s4559_s18 = smov 0   ;;  %s4561_s19 = smov 0  }
   0x2   :  { %s4563_s20 = smov 0   ;;  %s4565_s21 = smov 0  }
   0x3 LB: > { %s4580_s22 = sadd.s32 4294967295, %s4514_s21   ;;  %s4272_s23 = sadd.s32 4294967294, %s4514_s21   ;;  %s4514_s21 = sphi %s4565_s21, %s8646_s21   ;;  %s4510_s20 = sphi %s4563_s20, %s8645_s20   ;;  %s4506_s19 = sphi %s4561_s19, %s8644_s19   ;;  %s4502_s18 = sphi %s4559_s18, %s8643_s18  }
   0x4   : > { %s4584_s24 = sadd.s32 1, %s4514_s21   ;;  %s135_s25 = sadd.s32 1, %s4510_s20 }
   0x5   : > { %s132_s26 = ssub.s32 %s4514_s21, %s4584_s24  ;;  %p145_p0 = scmp.ne.s32.totalorder %s4510_s20, %s4506_s19 }
   0x6   : > { %p133_p1 = scmp.eq.s32.totalorder %s132_s26, 0  ;;  %p146_p2 = scmp.eq.s32.totalorder %s4580_s22, 1 }
   0x7   : > { %p151_p3 = scmp.ne.s32.totalorder %s4506_s19, %s4502_s18  ;;  %p152_p4 = scmp.eq.s32.totalorder %s4272_s23, 1 }
   0x8   : > { %s4595_s27 = scalar_select %p133_p1, %s4510_s20, %s135_s25  }
   0x9   : > { %p4597_p5 = por %p146_p2, %p145_p0  ;;  %p4601_p6 = por %p152_p4, %p151_p3 }
   0xa   : > { %p4275_p7 = scmp.ge.s32.totalorder %s4514_s21, 1  ;;  %p190_p8 = scmp.lt.s32.totalorder %s4514_s21, 3 }
   0xc   : > { %p191_p9 = pnand %p4275_p7, %p190_p8 }
   0xe   : > { %194 = sbr.rel (%p191_p9) target bundleno = 2322 (0x912), region = 40 }
  0x13   : > { %p218_p10 = scmp.lt.s32.totalorder %s4580_s22, 1  ;;  %vm223_vm0 = vcmask 31744   ;;  %v7991_v2 = vmov 0.0   ;;  %vm226_vm1 = vcmask 25600   ;;  %s4517_s10 = smov 8   ;;  %vm279_vm2 = vcmask 64512  }
  0x14   : > { %228 = vst.msk [vmem:[#allocation2 + $0x18] sm:$0xff] %vm223_vm0, %v7991_v2  ;;  %s4518_s11 = smov 4   ;;  %s4519_s12 = smov 12   ;;  %vm2120_vm3 = vcmask 1043456   ;;  %vm1816_vm4 = vcmask 97280   ;;  %vm1849_vm5 = vcmask 130048  }
  0x15   : > { %s219_s30 = scalar_select %p218_p10, %s4580_s22, 1  ;;  %229 = vst.msk [vmem:[#allocation2 + $0x20] sm:$0xff] %vm223_vm0, %v7991_v2  ;;  %vm1882_vm6 = vcmask 162816   ;;  %vm1915_vm7 = vcmask 195584   ;;  %vm1948_vm8 = vcmask 228352   ;;  %vm2023_vm9 = vcmask 293888  }
  0x16   : > { %224 = vst.msk [vmem:[#allocation2] sm:$0xff] %vm223_vm0, %v7991_v2  ;;  %s4520_s13 = smov 16   ;;  %s4521_s14 = smov 20   ;;  %vm1981_vm10 = vcmask 261120   ;;  %vm282_vm11 = vcmask 58368   ;;  %vm3743_vm12 = vcmask 326656  }
  0x17   : > { %s4349_s6 = sshll.u32 %s219_s30, 3  ;;  %225 = vst.msk [vmem:[#allocation2 + $0x8] sm:$0xff] %vm223_vm0, %v7991_v2  ;;  %s4522_s15 = smov 24   ;;  %vm3776_vm13 = vcmask 392192   ;;  %vm3809_vm14 = vcmask 457728   ;;  %vm3842_vm15 = vcmask 523264  }
  0x18   : > { %s222_s9 = scalar_lea.vmem %s7985_s0, %s4349_s6  ;;  %231 = vst.msk [vmem:[#allocation2 + $0x30] sm:$0xff] %vm223_vm0, %v7991_v2  ;;  %s4523_s16 = smov 28  }
  0x19   : > { %v335_v0 = vld [vmem:[%s222_s9] sm:$0xff]  ;;  %232 = vst.msk [vmem:[#allocation2 + $0x38] sm:$0xff] %vm223_vm0, %v7991_v2  ;;  %s4524_s17 = smov 32   ;;  %s4350_s8 = sshll.u32 %s4580_s22, 4 }
  0x1a   : > { %337 = vst [vmem:[#allocation1] ss:$2 sm:$0xff] %v335_v0  ;;  %s4472_s6 = scalar_lea.hbm %s7990_s5, 32 }
  0x1b   : > { %234 = vst.msk [vmem:[#allocation2 + $0x48] sm:$0xff] %vm223_vm0, %v7991_v2 }
  0x1c   : > { %235 = vst.msk [vmem:[#allocation2 + $0x50] sm:$0xff] %vm223_vm0, %v7991_v2 }
  0x1d   : > { %237 = vst.msk [vmem:[#allocation2 + $0x60] sm:$0xff] %vm223_vm0, %v7991_v2 }
  0x1e   : > { %238 = vst.msk [vmem:[#allocation2 + $0x68] sm:$0xff] %vm223_vm0, %v7991_v2  ;;  %v471_v15 = vld [vmem:[#allocation2 + $0x1] sm:$0xff] }
  0x1f   : > { %240 = vst.msk [vmem:[#allocation2 + $0x78] sm:$0xff] %vm223_vm0, %v7991_v2  ;;  %760 = vrot.lane.b32.xlu1 %v471_v15, %s4518_s11  ;;  %v503_v20 = vld [vmem:[#allocation2 + $0x2] sm:$0xff] }
  0x20   : > { %241 = vst.msk [vmem:[#allocation2 + $0x80] sm:$0xff] %vm223_vm0, %v7991_v2 }
  0x21   : > { %v338_v1 = vld.sshfl [vmem:[#allocation1] sm:$0xff pattern:$0x75316420]  ;;  %243 = vst.msk [vmem:[#allocation2 + $0x90] sm:$0xff] %vm223_vm0, %v7991_v2 }
  0x22   : > { %342 = vxpose.xlu0.b32.start.end [1/1] (short) %v338_v1, 128  ;;  %244 = vst.msk [vmem:[#allocation2 + $0x98] sm:$0xff] %vm223_vm0, %v7991_v2  ;;  %v339_v3 = vld.sshfl [vmem:[#allocation1 + $0x8] sm:$0xff pattern:$0x75316420] }
  0x23   : > { %246 = vst.msk [vmem:[#allocation2 + $0xa8] sm:$0xff] %vm223_vm0, %v7991_v2 }
  0x24   : > { %247 = vst.msk [vmem:[#allocation2 + $0xb0] sm:$0xff] %vm223_vm0, %v7991_v2 }
  0x25   : > { %249 = vst.msk [vmem:[#allocation2 + $0xc0] sm:$0xff] %vm223_vm0, %v7991_v2 }
  0x26   : > { %250 = vst.msk [vmem:[#allocation2 + $0xc8] sm:$0xff] %vm223_vm0, %v7991_v2 }
  0x27   : > { %252 = vst.msk [vmem:[#allocation2 + $0xd8] sm:$0xff] %vm223_vm0, %v7991_v2 }
  0x28   : > { %253 = vst.msk [vmem:[#allocation2 + $0xe0] sm:$0xff] %vm223_vm0, %v7991_v2 }
  0x29   : > { %255 = vst.msk [vmem:[#allocation2 + $0xf0] sm:$0xff] %vm223_vm0, %v7991_v2 }
  0x2a   : > { %256 = vst.msk [vmem:[#allocation2 + $0xf8] sm:$0xff] %vm223_vm0, %v7991_v2 }
  0x2b   : > { %258 = vst.msk [vmem:[#allocation2 + $0x108] sm:$0xff] %vm223_vm0, %v7991_v2 }
  0x2c   : > { %259 = vst.msk [vmem:[#allocation2 + $0x110] sm:$0xff] %vm223_vm0, %v7991_v2 }
  0x2d   : > { %261 = vst.msk [vmem:[#allocation2 + $0x120] sm:$0xff] %vm223_vm0, %v7991_v2 }
  0x2e   : > { %262 = vst.msk [vmem:[#allocation2 + $0x128] sm:$0xff] %vm223_vm0, %v7991_v2 }
  0x2f   : > { %264 = vst.msk [vmem:[#allocation2 + $0x138] sm:$0xff] %vm223_vm0, %v7991_v2 }
  0x30   : > { %265 = vst.msk [vmem:[#allocation2 + $0x140] sm:$0xff] %vm223_vm0, %v7991_v2 }
  0x31   : > { %267 = vst.msk [vmem:[#allocation2 + $0x150] sm:$0xff] %vm223_vm0, %v7991_v2 }
  0x32   : > { %268 = vst.msk [vmem:[#allocation2 + $0x158] sm:$0xff] %vm223_vm0, %v7991_v2 }
  0x33   : > { %270 = vst.msk [vmem:[#allocation2 + $0x168] sm:$0xff] %vm223_vm0, %v7991_v2 }
  0x34   : > { %271 = vst.msk [vmem:[#allocation2 + $0x170] sm:$0xff] %vm223_vm0, %v7991_v2 }
  0x35   : > { %273 = vst.msk [vmem:[#allocation2 + $0x180] sm:$0xff] %vm223_vm0, %v7991_v2 }
  0x36   : > { %274 = vst.msk [vmem:[#allocation2 + $0x188] sm:$0xff] %vm223_vm0, %v7991_v2 }
  0x37   : > { %276 = vst.msk [vmem:[#allocation2 + $0x198] sm:$0xff] %vm223_vm0, %v7991_v2 }
  0x38   : > { %277 = vst.msk [vmem:[#allocation2 + $0x1a0] sm:$0xff] %vm223_vm0, %v7991_v2 }
  0x39   : > { %227 = vst.msk [vmem:[#allocation2 + $0x10] sm:$0x3] %vm226_vm1, %v7991_v2 }
  0x3a   : > { %230 = vst.msk [vmem:[#allocation2 + $0x28] sm:$0x3] %vm226_vm1, %v7991_v2 }
  0x3b   : > { %233 = vst.msk [vmem:[#allocation2 + $0x40] sm:$0x3] %vm226_vm1, %v7991_v2 }
  0x3c   : > { %236 = vst.msk [vmem:[#allocation2 + $0x58] sm:$0x3] %vm226_vm1, %v7991_v2 }
  0x3d   : > { %239 = vst.msk [vmem:[#allocation2 + $0x70] sm:$0x3] %vm226_vm1, %v7991_v2 }
  0x3e   : > { %242 = vst.msk [vmem:[#allocation2 + $0x88] sm:$0x3] %vm226_vm1, %v7991_v2 }
  0x3f   : > { %245 = vst.msk [vmem:[#allocation2 + $0xa0] sm:$0x3] %vm226_vm1, %v7991_v2 }
  0x40   : > { %v504_v4 = vld [vmem:[#allocation2 + $0xa] sm:$0xff]  ;;  %248 = vst.msk [vmem:[#allocation2 + $0xb8] sm:$0x3] %vm226_vm1, %v7991_v2 }
  0x41   : > { %890 = vrot.lane.b32.xlu2 %v504_v4, %s4517_s10  ;;  %251 = vst.msk [vmem:[#allocation2 + $0xd0] sm:$0x3] %vm226_vm1, %v7991_v2  ;;  %v472_v17 = vld [vmem:[#allocation2 + $0x9] sm:$0xff] }
  0x42   : > { %254 = vst.msk [vmem:[#allocation2 + $0xe8] sm:$0x3] %vm226_vm1, %v7991_v2  ;;  %762 = vrot.lane.b32.xlu1 %v472_v17, %s4518_s11 }
  0x43   : > { %257 = vst.msk [vmem:[#allocation2 + $0x100] sm:$0x3] %vm226_vm1, %v7991_v2 }
  0x44   : > { %260 = vst.msk [vmem:[#allocation2 + $0x118] sm:$0x3] %vm226_vm1, %v7991_v2 }
  0x45   : > { %263 = vst.msk [vmem:[#allocation2 + $0x130] sm:$0x3] %vm226_vm1, %v7991_v2 }
  0x46   : > { %266 = vst.msk [vmem:[#allocation2 + $0x148] sm:$0x3] %vm226_vm1, %v7991_v2 }
  0x47   : > { %269 = vst.msk [vmem:[#allocation2 + $0x160] sm:$0x3] %vm226_vm1, %v7991_v2 }
  0x48   : > { %272 = vst.msk [vmem:[#allocation2 + $0x178] sm:$0x3] %vm226_vm1, %v7991_v2 }
  0x49   : > { %275 = vst.msk [vmem:[#allocation2 + $0x190] sm:$0x3] %vm226_vm1, %v7991_v2 }
  0x4a   : > { %278 = vst.msk [vmem:[#allocation2 + $0x1a8] sm:$0x3] %vm226_vm1, %v7991_v2  ;;  %888 = vrot.lane.b32.xlu1 %v503_v20, %s4517_s10 }
  0x4b   : > { %280 = vst.msk [vmem:[#allocation3] sm:$0xff] %vm279_vm2, %v7991_v2 }
  0x4c   : > { %281 = vst.msk [vmem:[#allocation3 + $0x8] sm:$0xff] %vm279_vm2, %v7991_v2 }
  0x4d   : > { %284 = vst.msk [vmem:[#allocation3 + $0x18] sm:$0xff] %vm279_vm2, %v7991_v2 }
  0x4e   : > { %285 = vst.msk [vmem:[#allocation3 + $0x20] sm:$0xff] %vm279_vm2, %v7991_v2 }
  0x4f   : > { %287 = vst.msk [vmem:[#allocation3 + $0x30] sm:$0xff] %vm279_vm2, %v7991_v2 }
  0x50   : > { %288 = vst.msk [vmem:[#allocation3 + $0x38] sm:$0xff] %vm279_vm2, %v7991_v2 }
  0x51   : > { %290 = vst.msk [vmem:[#allocation3 + $0x48] sm:$0xff] %vm279_vm2, %v7991_v2 }
  0x52   : > { %291 = vst.msk [vmem:[#allocation3 + $0x50] sm:$0xff] %vm279_vm2, %v7991_v2 }
  0x53   : > { %293 = vst.msk [vmem:[#allocation3 + $0x60] sm:$0xff] %vm279_vm2, %v7991_v2 }
  0x54   : > { %294 = vst.msk [vmem:[#allocation3 + $0x68] sm:$0xff] %vm279_vm2, %v7991_v2 }
  0x55   : > { %296 = vst.msk [vmem:[#allocation3 + $0x78] sm:$0xff] %vm279_vm2, %v7991_v2 }
  0x56   : > { %297 = vst.msk [vmem:[#allocation3 + $0x80] sm:$0xff] %vm279_vm2, %v7991_v2 }
  0x57   : > { %299 = vst.msk [vmem:[#allocation3 + $0x90] sm:$0xff] %vm279_vm2, %v7991_v2 }
  0x58   : > { %300 = vst.msk [vmem:[#allocation3 + $0x98] sm:$0xff] %vm279_vm2, %v7991_v2 }
  0x59   : > { %302 = vst.msk [vmem:[#allocation3 + $0xa8] sm:$0xff] %vm279_vm2, %v7991_v2 }
  0x5a   : > { %303 = vst.msk [vmem:[#allocation3 + $0xb0] sm:$0xff] %vm279_vm2, %v7991_v2 }
  0x5b   : > { %305 = vst.msk [vmem:[#allocation3 + $0xc0] sm:$0xff] %vm279_vm2, %v7991_v2 }
  0x5c   : > { %306 = vst.msk [vmem:[#allocation3 + $0xc8] sm:$0xff] %vm279_vm2, %v7991_v2 }
  0x5d   : > { %308 = vst.msk [vmem:[#allocation3 + $0xd8] sm:$0xff] %vm279_vm2, %v7991_v2 }
  0x5e   : > { %309 = vst.msk [vmem:[#allocation3 + $0xe0] sm:$0xff] %vm279_vm2, %v7991_v2 }
  0x5f   : > { %311 = vst.msk [vmem:[#allocation3 + $0xf0] sm:$0xff] %vm279_vm2, %v7991_v2 }
  0x60   : > { %312 = vst.msk [vmem:[#allocation3 + $0xf8] sm:$0xff] %vm279_vm2, %v7991_v2 }
  0x61   : > { %314 = vst.msk [vmem:[#allocation3 + $0x108] sm:$0xff] %vm279_vm2, %v7991_v2 }
  0x62   : > { %315 = vst.msk [vmem:[#allocation3 + $0x110] sm:$0xff] %vm279_vm2, %v7991_v2 }
  0x63   : > { %317 = vst.msk [vmem:[#allocation3 + $0x120] sm:$0xff] %vm279_vm2, %v7991_v2 }
  0x64   : > { %318 = vst.msk [vmem:[#allocation3 + $0x128] sm:$0xff] %vm279_vm2, %v7991_v2 }
  0x65   : > { %320 = vst.msk [vmem:[#allocation3 + $0x138] sm:$0xff] %vm279_vm2, %v7991_v2 }
  0x66   : > { %321 = vst.msk [vmem:[#allocation3 + $0x140] sm:$0xff] %vm279_vm2, %v7991_v2 }
  0x67   : > { %323 = vst.msk [vmem:[#allocation3 + $0x150] sm:$0xff] %vm279_vm2, %v7991_v2 }
  0x68   : > { %324 = vst.msk [vmem:[#allocation3 + $0x158] sm:$0xff] %vm279_vm2, %v7991_v2 }
  0x69   : > { %326 = vst.msk [vmem:[#allocation3 + $0x168] sm:$0xff] %vm279_vm2, %v7991_v2 }
  0x6a   : > { %327 = vst.msk [vmem:[#allocation3 + $0x170] sm:$0xff] %vm279_vm2, %v7991_v2 }
  0x6b   : > { %329 = vst.msk [vmem:[#allocation3 + $0x180] sm:$0xff] %vm279_vm2, %v7991_v2 }
  0x6c   : > { %330 = vst.msk [vmem:[#allocation3 + $0x188] sm:$0xff] %vm279_vm2, %v7991_v2 }
  0x6d   : > { %332 = vst.msk [vmem:[#allocation3 + $0x198] sm:$0xff] %vm279_vm2, %v7991_v2 }
  0x6e   : > { %333 = vst.msk [vmem:[#allocation3 + $0x1a0] sm:$0xff] %vm279_vm2, %v7991_v2 }
  0x91   : > { %v4885_v1 = vpop.permute.xlu1 %760 }
  0x9b   : > { %v4837_v56 = vpop.permute.xlu2 %890 }
  0xa2   : > { %374 = vxpose.xlu0.b32.start.end [1/1] (short) %v339_v3, 128 }
  0xc6   : > { %v358_v5 = vpop.trf.xlu0 }
  0xc7   : > { %407 = vst.msk [vmem:[#allocation2 + $0x19] sm:$0xff] %vm223_vm0, %v358_v5 }
  0xce   : > { %v359_v6 = vpop.trf.xlu0  ;;  %v4722_v7 = vld [vmem:[#allocation2 + $0x19] sm:$0xff] }
  0xcf   : > { %408 = vst.msk [vmem:[#allocation2 + $0x21] sm:$0xff] %vm223_vm0, %v359_v6  ;;  %764 = vrot.lane.b32.xlu2 %v4722_v7, %s4518_s11 }
  0xd6   : > { %v360_v8 = vpop.trf.xlu0  ;;  %v474_v9 = vld [vmem:[#allocation2 + $0x21] sm:$0xff] }
  0xd7   : > { %409 = vst.msk [vmem:[#allocation2 + $0x31] sm:$0xff] %vm223_vm0, %v360_v8  ;;  %766 = vrot.lane.b32.xlu2 %v474_v9, %s4518_s11  ;;  %v4748_v30 = vld [vmem:[#allocation2 + $0x22] sm:$0xff]  ;;  %v505_v50 = vld [vmem:[#allocation2 + $0x1a] sm:$0xff]  ;;  %v4910_v8 = vpop.permute.xlu1 %762 }
  0xde   : > { %v361_v10 = vpop.trf.xlu0  ;;  %v4754_v33 = vld [vmem:[#allocation2 + $0x31] sm:$0xff] }
  0xdf   : > { %410 = vst.msk [vmem:[#allocation2 + $0x39] sm:$0xff] %vm223_vm0, %v361_v10 }
  0xe6   : > { %v362_v11 = vpop.trf.xlu0  ;;  %v4756_v34 = vld [vmem:[#allocation2 + $0x39] sm:$0xff] }
  0xe7   : > { %411 = vst.msk [vmem:[#allocation2 + $0x49] sm:$0xff] %vm223_vm0, %v362_v11  ;;  %v508_v39 = vld [vmem:[#allocation2 + $0x3a] sm:$0xff]  ;;  %v507_v40 = vld [vmem:[#allocation2 + $0x32] sm:$0xff] }
  0xee   : > { %v363_v12 = vpop.trf.xlu0  ;;  %v4772_v42 = vld [vmem:[#allocation2 + $0x49] sm:$0xff] }
  0xef   : > { %412 = vst.msk [vmem:[#allocation2 + $0x51] sm:$0xff] %vm223_vm0, %v363_v12 }
  0xf6   : > { %v364_v13 = vpop.trf.xlu0  ;;  %v4774_v43 = vld [vmem:[#allocation2 + $0x51] sm:$0xff] }
  0xf7   : > { %413 = vst.msk [vmem:[#allocation2 + $0x61] sm:$0xff] %vm223_vm0, %v364_v13  ;;  %v510_v48 = vld [vmem:[#allocation2 + $0x52] sm:$0xff]  ;;  %v4793_v49 = vld [vmem:[#allocation2 + $0x4a] sm:$0xff]  ;;  %v4920_v13 = vpop.permute.xlu1 %888 }
  0xfe   : > { %v365_v14 = vpop.trf.xlu0  ;;  %v4814_v52 = vld [vmem:[#allocation2 + $0x61] sm:$0xff] }
  0xff   : > { %414 = vst.msk [vmem:[#allocation2 + $0x69] sm:$0xff] %vm223_vm0, %v365_v14 }
 0x106   : > { %v366_v16 = vpop.trf.xlu0  ;;  %v4816_v53 = vld [vmem:[#allocation2 + $0x69] sm:$0xff] }
 0x107   : > { %415 = vst.msk [vmem:[#allocation2 + $0x79] sm:$0xff] %vm223_vm0, %v366_v16  ;;  %v4859_v59 = vld [vmem:[#allocation2 + $0x6a] sm:$0xff]  ;;  %v511_v60 = vld [vmem:[#allocation2 + $0x62] sm:$0xff] }
 0x10e   : > { %v367_v18 = vpop.trf.xlu0  ;;  %v4881_v63 = vld [vmem:[#allocation2 + $0x79] sm:$0xff] }
 0x10f   : > { %416 = vst.msk [vmem:[#allocation2 + $0x81] sm:$0xff] %vm223_vm0, %v367_v18 }
 0x116   : > { %v368_v19 = vpop.trf.xlu0  ;;  %v482_v0 = vld [vmem:[#allocation2 + $0x81] sm:$0xff] }
 0x117   : > { %417 = vst.msk [vmem:[#allocation2 + $0x91] sm:$0xff] %vm223_vm0, %v368_v19  ;;  %v514_v10 = vld [vmem:[#allocation2 + $0x82] sm:$0xff]  ;;  %v4914_v11 = vld [vmem:[#allocation2 + $0x7a] sm:$0xff] }
 0x11e   : > { %v369_v21 = vpop.trf.xlu0  ;;  %v4924_v15 = vld [vmem:[#allocation2 + $0x91] sm:$0xff] }
 0x11f   : > { %418 = vst.msk [vmem:[#allocation2 + $0x99] sm:$0xff] %vm223_vm0, %v369_v21 }
 0x126   : > { %v370_v22 = vpop.trf.xlu0  ;;  %v4926_v16 = vld [vmem:[#allocation2 + $0x99] sm:$0xff] }
 0x127   : > { %419 = vst.msk [vmem:[#allocation2 + $0xa9] sm:$0xff] %vm223_vm0, %v370_v22 }
 0x129   : > { %v4863_v61 = vpop.permute.xlu2 %764 }
 0x12e   : > { %v371_v23 = vpop.trf.xlu0 }
 0x12f   : > { %420 = vst.msk [vmem:[#allocation2 + $0xb1] sm:$0xff] %vm223_vm0, %v371_v23  ;;  %v485_v23 = vld [vmem:[#allocation2 + $0xa9] sm:$0xff] }
 0x131   : > { %v4893_v3 = vpop.permute.xlu2 %766 }
 0x136   : > { %v372_v24 = vpop.trf.xlu0 }
 0x137   : > { %421 = vst.msk [vmem:[#allocation2 + $0xc1] sm:$0xff] %vm223_vm0, %v372_v24  ;;  %v4950_v24 = vld [vmem:[#allocation2 + $0x92] sm:$0xff] }
 0x13e   : > { %v373_v25 = vpop.trf.xlu0 }
 0x13f   : > { %422 = vst.msk [vmem:[#allocation2 + $0xc9] sm:$0xff] %vm223_vm0, %v373_v25 }
 0x146   : > { %v390_v26 = vpop.trf.xlu0 }
 0x147   : > { %423 = vst.msk [vmem:[#allocation2 + $0xd9] sm:$0xff] %vm223_vm0, %v390_v26 }
 0x14e   : > { %v391_v27 = vpop.trf.xlu0  ;;  %v489_v28 = vld [vmem:[#allocation2 + $0xd9] sm:$0xff] }
 0x14f   : > { %424 = vst.msk [vmem:[#allocation2 + $0xe1] sm:$0xff] %vm223_vm0, %v391_v27  ;;  %796 = vrot.lane.b32.xlu1 %v489_v28, %s4518_s11 }
 0x156   : > { %v392_v29 = vpop.trf.xlu0  ;;  %v490_v31 = vld [vmem:[#allocation2 + $0xe1] sm:$0xff] }
 0x157   : > { %425 = vst.msk [vmem:[#allocation2 + $0xf1] sm:$0xff] %vm223_vm0, %v392_v29  ;;  %894 = vrot.lane.b32.xlu1 %v4748_v30, %s4517_s10  ;;  %798 = vrot.lane.b32.xlu2 %v490_v31, %s4518_s11  ;;  %v4964_v29 = vld [vmem:[#allocation2 + $0xb1] sm:$0xff] }
 0x15e   : > { %v393_v32 = vpop.trf.xlu0  ;;  %v4763_v35 = vld [vmem:[#allocation2 + $0xf1] sm:$0xff] }
 0x15f   : > { %426 = vst.msk [vmem:[#allocation2 + $0xf9] sm:$0xff] %vm223_vm0, %v393_v32  ;;  %768 = vrot.lane.b32.xlu1 %v4754_v33, %s4518_s11  ;;  %770 = vrot.lane.b32.xlu2 %v4756_v34, %s4518_s11 }
 0x166   : > { %v394_v36 = vpop.trf.xlu0  ;;  %v492_v37 = vld [vmem:[#allocation2 + $0xf9] sm:$0xff] }
 0x167   : > { %427 = vst.msk [vmem:[#allocation2 + $0x109] sm:$0xff] %vm223_vm0, %v394_v36  ;;  %800 = vrot.lane.b32.xlu1 %v4763_v35, %s4518_s11  ;;  %802 = vrot.lane.b32.xlu2 %v492_v37, %s4518_s11  ;;  %v4977_v36 = vld [vmem:[#allocation2 + $0x9a] sm:$0xff] }
 0x16e   : > { %v395_v38 = vpop.trf.xlu0  ;;  %v493_v44 = vld [vmem:[#allocation2 + $0x109] sm:$0xff] }
 0x16f   : > { %428 = vst.msk [vmem:[#allocation2 + $0x111] sm:$0xff] %vm223_vm0, %v395_v38  ;;  %898 = vrot.lane.b32.xlu1 %v508_v39, %s4517_s10  ;;  %896 = vrot.lane.b32.xlu2 %v507_v40, %s4517_s10  ;;  %v4988_v39 = vld [vmem:[#allocation2 + $0xc1] sm:$0xff]  ;;  %v4990_v40 = vld [vmem:[#allocation2 + $0xaa] sm:$0xff] }
 0x176   : > { %v396_v41 = vpop.trf.xlu0  ;;  %v4781_v45 = vld [vmem:[#allocation2 + $0x111] sm:$0xff] }
 0x177   : > { %429 = vst.msk [vmem:[#allocation2 + $0x121] sm:$0xff] %vm223_vm0, %v396_v41  ;;  %772 = vrot.lane.b32.xlu1 %v4772_v42, %s4518_s11  ;;  %774 = vrot.lane.b32.xlu2 %v4774_v43, %s4518_s11  ;;  %v582_v41 = vld [vmem:[#allocation2 + $0xc9] sm:$0xff] }
 0x17e   : > { %v397_v46 = vpop.trf.xlu0  ;;  %v4833_v54 = vld [vmem:[#allocation2 + $0x121] sm:$0xff] }
 0x17f   : > { %430 = vst.msk [vmem:[#allocation2 + $0x129] sm:$0xff] %vm223_vm0, %v397_v46  ;;  %804 = vrot.lane.b32.xlu1 %v493_v44, %s4518_s11  ;;  %806 = vrot.lane.b32.xlu2 %v4781_v45, %s4518_s11 }
 0x186   : > { %v398_v47 = vpop.trf.xlu0  ;;  %v496_v55 = vld [vmem:[#allocation2 + $0x129] sm:$0xff] }
 0x187   : > { %431 = vst.msk [vmem:[#allocation2 + $0x139] sm:$0xff] %vm223_vm0, %v398_v47  ;;  %902 = vrot.lane.b32.xlu1 %v510_v48, %s4517_s10  ;;  %900 = vrot.lane.b32.xlu2 %v4793_v49, %s4517_s10  ;;  %v5001_v47 = vld [vmem:[#allocation2 + $0xb2] sm:$0xff] }
 0x188   : > { %892 = vrot.lane.b32.xlu0 %v505_v50, %s4517_s10 }
 0x18e   : > { %v399_v51 = vpop.trf.xlu0  ;;  %v4901_v4 = vld [vmem:[#allocation2 + $0x139] sm:$0xff] }
 0x18f   : > { %432 = vst.msk [vmem:[#allocation2 + $0x141] sm:$0xff] %vm223_vm0, %v399_v51  ;;  %776 = vrot.lane.b32.xlu1 %v4814_v52, %s4518_s11  ;;  %778 = vrot.lane.b32.xlu2 %v4816_v53, %s4518_s11  ;;  %v5012_v51 = vld [vmem:[#allocation2 + $0xca] sm:$0xff] }
 0x196   : > { %v400_v57 = vpop.trf.xlu0  ;;  %v4903_v5 = vld [vmem:[#allocation2 + $0x141] sm:$0xff] }
 0x197   : > { %433 = vst.msk [vmem:[#allocation2 + $0x151] sm:$0xff] %vm223_vm0, %v400_v57  ;;  %808 = vrot.lane.b32.xlu1 %v4833_v54, %s4518_s11  ;;  %810 = vrot.lane.b32.xlu2 %v496_v55, %s4518_s11  ;;  %v5026_v57 = vld [vmem:[#allocation2 + $0xe2] sm:$0xff] }
 0x19e   : > { %v401_v58 = vpop.trf.xlu0  ;;  %v4938_v19 = vld [vmem:[#allocation2 + $0x151] sm:$0xff] }
 0x19f   : > { %434 = vst.msk [vmem:[#allocation2 + $0x159] sm:$0xff] %vm223_vm0, %v401_v58  ;;  %906 = vrot.lane.b32.xlu1 %v4859_v59, %s4517_s10  ;;  %904 = vrot.lane.b32.xlu2 %v511_v60, %s4517_s10  ;;  %v521_v58 = vld [vmem:[#allocation2 + $0xda] sm:$0xff] }
 0x1a6   : > { %v402_v62 = vpop.trf.xlu0  ;;  %v500_v20 = vld [vmem:[#allocation2 + $0x159] sm:$0xff] }
 0x1a7   : > { %435 = vst.msk [vmem:[#allocation2 + $0x169] sm:$0xff] %vm223_vm0, %v402_v62  ;;  %780 = vrot.lane.b32.xlu1 %v4881_v63, %s4518_s11  ;;  %782 = vrot.lane.b32.xlu2 %v482_v0, %s4518_s11 }
 0x1ae   : > { %v403_v6 = vpop.trf.xlu0  ;;  %v4962_v28 = vld [vmem:[#allocation2 + $0x169] sm:$0xff] }
 0x1af   : > { %436 = vst.msk [vmem:[#allocation2 + $0x171] sm:$0xff] %vm223_vm0, %v403_v6  ;;  %812 = vrot.lane.b32.xlu1 %v4901_v4, %s4518_s11  ;;  %814 = vrot.lane.b32.xlu2 %v4903_v5, %s4518_s11 }
 0x1b1   : > { %v4912_v9 = vpop.permute.xlu2 %798 }
 0x1b2   : > { %8047 = vst [vmem:[#allocation7_spill] sm:$0xff] %v4912_v9  ;;  %v457_v9 = vld [vmem:[#allocation2 + $0xd8] sm:$0xff] }
 0x1b6   : > { %v564_v12 = vld [vmem:[#allocation2 + $0x170] sm:$0xff] }
 0x1b7   : > { %910 = vrot.lane.b32.xlu1 %v514_v10, %s4517_s10  ;;  %908 = vrot.lane.b32.xlu2 %v4914_v11, %s4517_s10 }
 0x1b8   : > { %1074 = vrot.lane.b32.xlu0 %v564_v12, %s4519_s12 }
 0x1b9   : > { %v4922_v14 = vpop.permute.xlu2 %770 }
 0x1bf   : > { %784 = vrot.lane.b32.xlu1 %v4924_v15, %s4518_s11  ;;  %786 = vrot.lane.b32.xlu2 %v4926_v16, %s4518_s11 }
 0x1c0   : > { %1144 = vrot.lane.b32.xlu0 %v4722_v7, %s4520_s13  ;;  %v404_v7 = vpop.trf.xlu0 }
 0x1c1   : > { %v4934_v17 = vpop.permute.xlu1 %796  ;;  %v4936_v18 = vpop.permute.xlu2 %802  ;;  %437 = vst.msk [vmem:[#allocation2 + $0x181] sm:$0xff] %vm223_vm0, %v404_v7  ;;  %v5049_v7 = vld [vmem:[#allocation2 + $0x10a] sm:$0xff] }
 0x1c2   : > { %8048 = vst [vmem:[#allocation8_spill] sm:$0xff] %v4934_v17 }
 0x1c3   : > { %8049 = vst [vmem:[#allocation9_spill] sm:$0xff] %v4936_v18 }
 0x1c7   : > { %816 = vrot.lane.b32.xlu1 %v4938_v19, %s4518_s11  ;;  %818 = vrot.lane.b32.xlu2 %v500_v20, %s4518_s11 }
 0x1c8   : > { %1150 = vrot.lane.b32.xlu0 %v4756_v34, %s4520_s13  ;;  %v405_v27 = vpop.trf.xlu0  ;;  %v4975_v34 = vld [vmem:[#allocation2 + $0x171] sm:$0xff]  ;;  %v597_v12 = vld [vmem:[#allocation2 + $0x181] sm:$0xff] }
 0x1c9   : > { %v4945_v21 = vpop.permute.xlu1 %894  ;;  %v4947_v22 = vpop.permute.xlu2 %896  ;;  %438 = vst.msk [vmem:[#allocation2 + $0x189] sm:$0xff] %vm223_vm0, %v405_v27  ;;  %v5060_v27 = vld [vmem:[#allocation2 + $0x12a] sm:$0xff] }
 0x1cf   : > { %788 = vrot.lane.b32.xlu1 %v485_v23, %s4518_s11  ;;  %912 = vrot.lane.b32.xlu2 %v4950_v24, %s4517_s10 }
 0x1d0   : > { %1156 = vrot.lane.b32.xlu0 %v4814_v52, %s4520_s13  ;;  %v5014_v52 = vld [vmem:[#allocation2 + $0xc2] sm:$0xff] }
 0x1d1   : > { %v4957_v25 = vpop.permute.xlu1 %768  ;;  %v4959_v26 = vpop.permute.xlu2 %774 }
 0x1d7   : > { %790 = vrot.lane.b32.xlu2 %v4964_v29, %s4518_s11  ;;  %820 = vrot.lane.b32.xlu1 %v4962_v28, %s4518_s11 }
 0x1d8   : > { %1162 = vrot.lane.b32.xlu0 %v482_v0, %s4520_s13  ;;  %v5037_v0 = vld [vmem:[#allocation2 + $0xf2] sm:$0xff] }
 0x1d9   : > { %v4971_v31 = vpop.permute.xlu1 %800  ;;  %v4973_v32 = vpop.permute.xlu2 %806 }
 0x1da   : > { %8050 = vst [vmem:[#allocation10_spill] sm:$0xff] %v4971_v31 }
 0x1db   : > { %8051 = vst [vmem:[#allocation11_spill] sm:$0xff] %v4973_v32 }
 0x1df   : > { %914 = vrot.lane.b32.xlu1 %v4977_v36, %s4517_s10  ;;  %822 = vrot.lane.b32.xlu2 %v4975_v34, %s4518_s11 }
 0x1e0   : > { %1168 = vrot.lane.b32.xlu0 %v485_v23, %s4520_s13 }
 0x1e1   : > { %v4984_v37 = vpop.permute.xlu1 %898  ;;  %v4986_v38 = vpop.permute.xlu2 %900 }
 0x1e7   : > { %792 = vrot.lane.b32.xlu1 %v4988_v39, %s4518_s11  ;;  %916 = vrot.lane.b32.xlu2 %v4990_v40, %s4517_s10 }
 0x1e8   : > { %1174 = vrot.lane.b32.xlu0 %v582_v41, %s4520_s13 }
 0x1e9   : > { %v4997_v44 = vpop.permute.xlu1 %772  ;;  %v4999_v46 = vpop.permute.xlu2 %778 }
 0x1ea   : > { %8052 = vst [vmem:[#allocation12_spill] sm:$0xff] %v4999_v46  ;;  %v458_v46 = vld [vmem:[#allocation2 + $0xe0] sm:$0xff] }
 0x1ef   : > { %918 = vrot.lane.b32.xlu1 %v5001_v47, %s4517_s10  ;;  %794 = vrot.lane.b32.xlu2 %v582_v41, %s4518_s11  ;;  %v527_v41 = vld [vmem:[#allocation2 + $0x122] sm:$0xff] }
 0x1f0   : > { %1180 = vrot.lane.b32.xlu0 %v4763_v35, %s4520_s13 }
 0x1f1   : > { %v5008_v48 = vpop.permute.xlu1 %804  ;;  %v5010_v50 = vpop.permute.xlu2 %810 }
 0x1f2   : > { %8053 = vst [vmem:[#allocation13_spill] sm:$0xff] %v5008_v48  ;;  %v5084_v48 = vld [vmem:[#allocation2 + $0x152] sm:$0xff] }
 0x1f3   : > { %8054 = vst [vmem:[#allocation14_spill] sm:$0xff] %v5010_v50  ;;  %v5071_v50 = vld [vmem:[#allocation2 + $0x13a] sm:$0xff] }
 0x1f7   : > { %922 = vrot.lane.b32.xlu1 %v5012_v51, %s4517_s10  ;;  %920 = vrot.lane.b32.xlu2 %v5014_v52, %s4517_s10 }
 0x1f8   : > { %1186 = vrot.lane.b32.xlu0 %v4781_v45, %s4520_s13  ;;  %v524_v45 = vld [vmem:[#allocation2 + $0xfa] sm:$0xff] }
 0x1f9   : > { %v5022_v55 = vpop.permute.xlu1 %902  ;;  %v5024_v35 = vpop.permute.xlu2 %904 }
 0x1fa   : > { %8055 = vst [vmem:[#allocation15_spill] sm:$0xff] %v5022_v55 }
 0x1fb   : > { %8056 = vst [vmem:[#allocation16_spill] sm:$0xff] %v5024_v35 }
 0x1ff   : > { %926 = vrot.lane.b32.xlu1 %v5026_v57, %s4517_s10  ;;  %924 = vrot.lane.b32.xlu2 %v521_v58, %s4517_s10 }
 0x200   : > { %1192 = vrot.lane.b32.xlu0 %v4901_v4, %s4520_s13  ;;  %v5047_v4 = vld [vmem:[#allocation2 + $0x112] sm:$0xff] }
 0x201   : > { %v5033_v60 = vpop.permute.xlu1 %776  ;;  %v5035_v62 = vpop.permute.xlu2 %782 }
 0x202   : > { %8057 = vst [vmem:[#allocation17_spill] sm:$0xff] %v5033_v60  ;;  %v459_v60 = vld [vmem:[#allocation2 + $0xf0] sm:$0xff] }
 0x203   : > { %8058 = vst [vmem:[#allocation18_spill] sm:$0xff] %v5035_v62 }
 0x207   : > { %930 = vrot.lane.b32.xlu1 %v524_v45, %s4517_s10  ;;  %928 = vrot.lane.b32.xlu2 %v5037_v0, %s4517_s10 }
 0x208   : > { %1198 = vrot.lane.b32.xlu0 %v500_v20, %s4520_s13 }
 0x209   : > { %v5043_v6 = vpop.permute.xlu1 %808  ;;  %v5045_v10 = vpop.permute.xlu2 %814 }
 0x20a   : > { %8059 = vst [vmem:[#allocation19_spill] sm:$0xff] %v5043_v6 }
 0x20b   : > { %8060 = vst [vmem:[#allocation20_spill] sm:$0xff] %v5045_v10 }
 0x20f   : > { %934 = vrot.lane.b32.xlu1 %v5047_v4, %s4517_s10  ;;  %932 = vrot.lane.b32.xlu2 %v5049_v7, %s4517_s10 }
 0x210   : > { %1204 = vrot.lane.b32.xlu0 %v597_v12, %s4520_s13  ;;  %v530_v12 = vld [vmem:[#allocation2 + $0x142] sm:$0xff] }
 0x211   : > { %v5056_v23 = vpop.permute.xlu1 %906  ;;  %v5058_v20 = vpop.permute.xlu2 %908 }
 0x212   : > { %8061 = vst [vmem:[#allocation21_spill] sm:$0xff] %v5056_v23 }
 0x213   : > { %8062 = vst [vmem:[#allocation22_spill] sm:$0xff] %v5058_v20  ;;  %v443_v20 = vld [vmem:[#allocation2 + $0x30] sm:$0xff] }
 0x217   : > { %938 = vrot.lane.b32.xlu1 %v5060_v27, %s4517_s10  ;;  %936 = vrot.lane.b32.xlu2 %v527_v41, %s4517_s10 }
 0x218   : > { %1274 = vrot.lane.b32.xlu0 %v4748_v30, %s4521_s14  ;;  %v5082_v30 = vld [vmem:[#allocation2 + $0x15a] sm:$0xff] }
 0x219   : > { %v5067_v2 = vpop.permute.xlu1 %780  ;;  %v5069_v10 = vpop.permute.xlu2 %786 }
 0x21a   : > { %8063 = vst [vmem:[#allocation23_spill] sm:$0xff] %v5067_v2  ;;  %v445_v2 = vld [vmem:[#allocation2 + $0x48] sm:$0xff] }
 0x21b   : > { %8064 = vst [vmem:[#allocation24_spill] sm:$0xff] %v5069_v10 }
 0x21f   : > { %942 = vrot.lane.b32.xlu1 %v530_v12, %s4517_s10  ;;  %940 = vrot.lane.b32.xlu2 %v5071_v50, %s4517_s10 }
 0x220   : > { %1280 = vrot.lane.b32.xlu0 %v4793_v49, %s4521_s14 }
 0x221   : > { %v5078_v6 = vpop.permute.xlu1 %812  ;;  %v5080_v32 = vpop.permute.xlu2 %818 }
 0x222   : > { %8065 = vst [vmem:[#allocation25_spill] sm:$0xff] %v5078_v6  ;;  %v5096_v6 = vld [vmem:[#allocation2 + $0x172] sm:$0xff] }
 0x223   : > { %8066 = vst [vmem:[#allocation26_spill] sm:$0xff] %v5080_v32  ;;  %v533_v32 = vld [vmem:[#allocation2 + $0x16a] sm:$0xff] }
 0x227   : > { %946 = vrot.lane.b32.xlu1 %v5082_v30, %s4517_s10  ;;  %944 = vrot.lane.b32.xlu2 %v5084_v48, %s4517_s10 }
 0x228   : > { %1286 = vrot.lane.b32.xlu0 %v4859_v59, %s4521_s14  ;;  %v5107_v59 = vld [vmem:[#allocation2 + $0x18] sm:$0xff] }
 0x229   : > { %v5092_v10 = vpop.permute.xlu1 %910  ;;  %v5094_v49 = vpop.permute.xlu2 %912 }
 0x22a   : > { %8067 = vst [vmem:[#allocation27_spill] sm:$0xff] %v5092_v10  ;;  %v442_v10 = vld [vmem:[#allocation2 + $0x20] sm:$0xff] }
 0x22b   : > { %8068 = vst [vmem:[#allocation28_spill] sm:$0xff] %v5094_v49 }
 0x22f   : > { %950 = vrot.lane.b32.xlu1 %v5096_v6, %s4517_s10  ;;  %948 = vrot.lane.b32.xlu2 %v533_v32, %s4517_s10 }
 0x230   : > { %1292 = vrot.lane.b32.xlu0 %v4950_v24, %s4521_s14  ;;  %v444_v24 = vld [vmem:[#allocation2 + $0x38] sm:$0xff] }
 0x231   : > { %v5103_v62 = vpop.permute.xlu1 %784  ;;  %v5105_v18 = vpop.permute.xlu2 %790 }
 0x232   : > { %8069 = vst [vmem:[#allocation29_spill] sm:$0xff] %v5103_v62  ;;  %v446_v62 = vld [vmem:[#allocation2 + $0x50] sm:$0xff] }
 0x233   : > { %8070 = vst [vmem:[#allocation30_spill] sm:$0xff] %v5105_v18 }
 0x237   : > { %1018 = vrot.lane.b32.xlu1 %v442_v10, %s4519_s12  ;;  %1016 = vrot.lane.b32.xlu2 %v5107_v59, %s4519_s12 }
 0x238   : > { %1298 = vrot.lane.b32.xlu0 %v5001_v47, %s4521_s14 }
 0x239   : > { %v5114_v49 = vpop.permute.xlu1 %816  ;;  %v5116_v31 = vpop.permute.xlu2 %822 }
 0x23a   : > { %8071 = vst [vmem:[#allocation31_spill] sm:$0xff] %v5114_v49 }
 0x23b   : > { %8072 = vst [vmem:[#allocation32_spill] sm:$0xff] %v5116_v31 }
 0x23f   : > { %1022 = vrot.lane.b32.xlu1 %v444_v24, %s4519_s12  ;;  %1020 = vrot.lane.b32.xlu2 %v443_v20, %s4519_s12  ;;  %v448_v24 = vld [vmem:[#allocation2 + $0x68] sm:$0xff]  ;;  %v447_v20 = vld [vmem:[#allocation2 + $0x60] sm:$0xff] }
 0x240   : > { %1304 = vrot.lane.b32.xlu0 %v521_v58, %s4521_s14 }
 0x241   : > { %v5121_v18 = vpop.permute.xlu1 %788  ;;  %v5123_v10 = vpop.permute.xlu2 %916 }
 0x242   : > { %8073 = vst [vmem:[#allocation33_spill] sm:$0xff] %v5121_v18  ;;  %v630_v18 = vld [vmem:[#allocation2 + $0x18a] sm:$0xff] }
 0x243   : > { %8074 = vst [vmem:[#allocation34_spill] sm:$0xff] %v5123_v10  ;;  %v5139_v10 = vld [vmem:[#allocation2 + $0x78] sm:$0xff] }
 0x247   : > { %1026 = vrot.lane.b32.xlu1 %v446_v62, %s4519_s12  ;;  %1024 = vrot.lane.b32.xlu2 %v445_v2, %s4519_s12  ;;  %v450_v62 = vld [vmem:[#allocation2 + $0x80] sm:$0xff] }
 0x248   : > { %1310 = vrot.lane.b32.xlu0 %v524_v45, %s4521_s14 }
 0x249   : > { %v5128_v47 = vpop.permute.xlu1 %820  ;;  %v5130_v31 = vpop.permute.xlu2 %794 }
 0x24a   : > { %8075 = vst [vmem:[#allocation35_spill] sm:$0xff] %v5128_v47 }
 0x24b   : > { %8076 = vst [vmem:[#allocation36_spill] sm:$0xff] %v5130_v31 }
 0x24f   : > { %1030 = vrot.lane.b32.xlu1 %v448_v24, %s4519_s12  ;;  %1028 = vrot.lane.b32.xlu2 %v447_v20, %s4519_s12  ;;  %v5149_v20 = vld [vmem:[#allocation2 + $0x98] sm:$0xff] }
 0x250   : > { %1316 = vrot.lane.b32.xlu0 %v527_v41, %s4521_s14  ;;  %v451_v41 = vld [vmem:[#allocation2 + $0x90] sm:$0xff] }
 0x251   : > { %v5135_v58 = vpop.permute.xlu1 %914  ;;  %v5137_v49 = vpop.permute.xlu2 %920 }
 0x252   : > { %8077 = vst [vmem:[#allocation37_spill] sm:$0xff] %v5135_v58  ;;  %v5159_v58 = vld [vmem:[#allocation2 + $0xa8] sm:$0xff] }
 0x253   : > { %8078 = vst [vmem:[#allocation38_spill] sm:$0xff] %v5137_v49 }
 0x257   : > { %1034 = vrot.lane.b32.xlu1 %v450_v62, %s4519_s12  ;;  %1032 = vrot.lane.b32.xlu2 %v5139_v10, %s4519_s12 }
 0x258   : > { %1322 = vrot.lane.b32.xlu0 %v530_v12, %s4521_s14  ;;  %v454_v12 = vld [vmem:[#allocation2 + $0xb0] sm:$0xff] }
 0x259   : > { %v5145_v45 = vpop.permute.xlu1 %792  ;;  %v5147_v47 = vpop.permute.xlu2 %924 }
 0x25a   : > { %8079 = vst [vmem:[#allocation39_spill] sm:$0xff] %v5145_v45 }
 0x25b   : > { %8080 = vst [vmem:[#allocation40_spill] sm:$0xff] %v5147_v47  ;;  %v460_v47 = vld [vmem:[#allocation2 + $0xf8] sm:$0xff] }
 0x25f   : > { %1038 = vrot.lane.b32.xlu1 %v5149_v20, %s4519_s12  ;;  %1036 = vrot.lane.b32.xlu2 %v451_v41, %s4519_s12 }
 0x260   : > { %1328 = vrot.lane.b32.xlu0 %v533_v32, %s4521_s14  ;;  %v5169_v32 = vld [vmem:[#allocation2 + $0xc8] sm:$0xff] }
 0x261   : > { %v5155_v62 = vpop.permute.xlu1 %918  ;;  %v5157_v49 = vpop.permute.xlu2 %928 }
 0x262   : > { %8081 = vst [vmem:[#allocation41_spill] sm:$0xff] %v5155_v62  ;;  %v5171_v62 = vld [vmem:[#allocation2 + $0xc0] sm:$0xff] }
 0x263   : > { %8082 = vst [vmem:[#allocation42_spill] sm:$0xff] %v5157_v49 }
 0x267   : > { %1042 = vrot.lane.b32.xlu1 %v454_v12, %s4519_s12  ;;  %1040 = vrot.lane.b32.xlu2 %v5159_v58, %s4519_s12 }
 0x268   : > { %1334 = vrot.lane.b32.xlu0 %v630_v18, %s4521_s14 }
 0x269   : > { %v5165_v45 = vpop.permute.xlu1 %922  ;;  %v5167_v23 = vpop.permute.xlu2 %932 }
 0x26a   : > { %8083 = vst [vmem:[#allocation43_spill] sm:$0xff] %v5165_v45 }
 0x26b   : > { %8084 = vst [vmem:[#allocation44_spill] sm:$0xff] %v5167_v23 }
 0x26f   : > { %1046 = vrot.lane.b32.xlu1 %v5169_v32, %s4519_s12  ;;  %1044 = vrot.lane.b32.xlu2 %v5171_v62, %s4519_s12 }
 0x270   : > { %1404 = vrot.lane.b32.xlu0 %v445_v2, %s4522_s15 }
 0x271   : > { %v5178_v49 = vpop.permute.xlu1 %926  ;;  %v5180_v18 = vpop.permute.xlu2 %936 }
 0x272   : > { %8085 = vst [vmem:[#allocation45_spill] sm:$0xff] %v5178_v49  ;;  %v461_v49 = vld [vmem:[#allocation2 + $0x108] sm:$0xff] }
 0x273   : > { %8086 = vst [vmem:[#allocation46_spill] sm:$0xff] %v5180_v18 }
 0x277   : > { %1050 = vrot.lane.b32.xlu1 %v458_v46, %s4519_s12  ;;  %1048 = vrot.lane.b32.xlu2 %v457_v9, %s4519_s12  ;;  %v462_v46 = vld [vmem:[#allocation2 + $0x110] sm:$0xff] }
 0x278   : > { %1410 = vrot.lane.b32.xlu0 %v448_v24, %s4522_s15 }
 0x279   : > { %v5185_v23 = vpop.permute.xlu1 %930  ;;  %v5187_v35 = vpop.permute.xlu2 %940 }
 0x27a   : > { %8087 = vst [vmem:[#allocation47_spill] sm:$0xff] %v5185_v23  ;;  %v464_v23 = vld [vmem:[#allocation2 + $0x128] sm:$0xff] }
 0x27b   : > { %8088 = vst [vmem:[#allocation48_spill] sm:$0xff] %v5187_v35 }
 0x27f   : > { %1054 = vrot.lane.b32.xlu1 %v460_v47, %s4519_s12  ;;  %1052 = vrot.lane.b32.xlu2 %v459_v60, %s4519_s12  ;;  %v463_v60 = vld [vmem:[#allocation2 + $0x120] sm:$0xff] }
 0x280   : > { %1416 = vrot.lane.b32.xlu0 %v451_v41, %s4522_s15 }
 0x281   : > { %v5192_v2 = vpop.permute.xlu1 %934  ;;  %v5194_v18 = vpop.permute.xlu2 %944 }
 0x282   : > { %8089 = vst [vmem:[#allocation49_spill] sm:$0xff] %v5192_v2 }
 0x283   : > { %8090 = vst [vmem:[#allocation50_spill] sm:$0xff] %v5194_v18 }
 0x287   : > { %1058 = vrot.lane.b32.xlu1 %v462_v46, %s4519_s12  ;;  %1056 = vrot.lane.b32.xlu2 %v461_v49, %s4519_s12  ;;  %v466_v46 = vld [vmem:[#allocation2 + $0x140] sm:$0xff]  ;;  %v465_v49 = vld [vmem:[#allocation2 + $0x138] sm:$0xff] }
 0x288   : > { %1422 = vrot.lane.b32.xlu0 %v454_v12, %s4522_s15 }
 0x289   : > { %v5199_v24 = vpop.permute.xlu1 %938  ;;  %v5201_v35 = vpop.permute.xlu2 %948 }
 0x28a   : > { %8091 = vst [vmem:[#allocation51_spill] sm:$0xff] %v5199_v24  ;;  %v5217_v24 = vld [vmem:[#allocation2 + $0x150] sm:$0xff] }
 0x28b   : > { %8092 = vst [vmem:[#allocation52_spill] sm:$0xff] %v5201_v35 }
 0x28f   : > { %1062 = vrot.lane.b32.xlu1 %v464_v23, %s4519_s12  ;;  %1060 = vrot.lane.b32.xlu2 %v463_v60, %s4519_s12  ;;  %v468_v23 = vld [vmem:[#allocation2 + $0x158] sm:$0xff] }
 0x290   : > { %1428 = vrot.lane.b32.xlu0 %v457_v9, %s4522_s15 }
 0x291   : > { %v5206_v41 = vpop.permute.xlu1 %942  ;;  %v5208_v18 = vpop.permute.xlu2 %1016 }
 0x292   : > { %8093 = vst [vmem:[#allocation53_spill] sm:$0xff] %v5206_v41 }
 0x297   : > { %1066 = vrot.lane.b32.xlu1 %v466_v46, %s4519_s12  ;;  %1064 = vrot.lane.b32.xlu2 %v465_v49, %s4519_s12  ;;  %v5227_v49 = vld [vmem:[#allocation2 + $0x180] sm:$0xff] }
 0x298   : > { %1434 = vrot.lane.b32.xlu0 %v460_v47, %s4522_s15  ;;  %v469_v47 = vld [vmem:[#allocation2 + $0x168] sm:$0xff] }
 0x299   : > { %v5213_v12 = vpop.permute.xlu1 %946  ;;  %v5215_v35 = vpop.permute.xlu2 %1020 }
 0x29a   : > { %8094 = vst [vmem:[#allocation54_spill] sm:$0xff] %v5213_v12  ;;  %v5232_v12 = vpop.permute.xlu0 %892 }
 0x29f   : > { %1070 = vrot.lane.b32.xlu1 %v468_v23, %s4519_s12  ;;  %1068 = vrot.lane.b32.xlu2 %v5217_v24, %s4519_s12 }
 0x2a0   : > { %1440 = vrot.lane.b32.xlu0 %v463_v60, %s4522_s15  ;;  %v568_v60 = vld [vmem:[#allocation2 + $0x21] sm:$0xff] }
 0x2a1   : > { %v5223_v9 = vpop.permute.xlu1 %950  ;;  %v5225_v41 = vpop.permute.xlu2 %1024 }
 0x2a2   : > { %8095 = vst [vmem:[#allocation55_spill] sm:$0xff] %v5223_v9  ;;  %v566_v9 = vld [vmem:[#allocation2 + $0x188] sm:$0xff]  ;;  %v5241_v17 = vpop.permute.xlu0 %1074 }
 0x2a3   : > { %8096 = vst [vmem:[#allocation56_spill] sm:$0xff] %v5241_v17 }
 0x2a7   : > { %1072 = vrot.lane.b32.xlu2 %v469_v47, %s4519_s12  ;;  %1076 = vrot.lane.b32.xlu1 %v5227_v49, %s4519_s12 }
 0x2a8   : > { %1446 = vrot.lane.b32.xlu0 %v466_v46, %s4522_s15 }
 0x2a9   : > { %v5235_v23 = vpop.permute.xlu1 %1018  ;;  %v5237_v2 = vpop.permute.xlu2 %1028 }
 0x2aa   : > { %v5257_v55 = vpop.permute.xlu0 %1144 }
 0x2af   : > { %1146 = vrot.lane.b32.xlu1 %v568_v60, %s4520_s13  ;;  %1078 = vrot.lane.b32.xlu2 %v566_v9, %s4519_s12 }
 0x2b0   : > { %1452 = vrot.lane.b32.xlu0 %v469_v47, %s4522_s15 }
 0x2b1   : > { %v5244_v45 = vpop.permute.xlu1 %1022  ;;  %v5246_v31 = vpop.permute.xlu2 %1032 }
 0x2b2   : > { %8097 = vst [vmem:[#allocation57_spill] sm:$0xff] %v5246_v31 }
 0x2b7   : > { %1152 = vrot.lane.b32.xlu1 %v4772_v42, %s4520_s13  ;;  %1148 = vrot.lane.b32.xlu2 %v4754_v33, %s4520_s13 }
 0x2b8   : > { %1458 = vrot.lane.b32.xlu0 %v566_v9, %s4522_s15  ;;  %v5269_v9 = vpop.permute.xlu0 %1150 }
 0x2b9   : > { %v5253_v46 = vpop.permute.xlu1 %1026  ;;  %v5255_v60 = vpop.permute.xlu2 %1036 }
 0x2ba   : > { %8098 = vst [vmem:[#allocation58_spill] sm:$0xff] %v5255_v60 }
 0x2bf   : > { %1158 = vrot.lane.b32.xlu1 %v4816_v53, %s4520_s13  ;;  %1154 = vrot.lane.b32.xlu2 %v4774_v43, %s4520_s13 }
 0x2c0   : > { %1528 = vrot.lane.b32.xlu0 %v4754_v33, %s4523_s16  ;;  %v5281_v33 = vpop.permute.xlu0 %1156 }
 0x2c1   : > { %v5265_v42 = vpop.permute.xlu1 %1030  ;;  %v5267_v47 = vpop.permute.xlu2 %1040 }
 0x2c2   : > { %8099 = vst [vmem:[#allocation59_spill] sm:$0xff] %v5267_v47 }
 0x2c7   : > { %1164 = vrot.lane.b32.xlu1 %v4924_v15, %s4520_s13  ;;  %1160 = vrot.lane.b32.xlu2 %v4881_v63, %s4520_s13 }
 0x2c8   : > { %1534 = vrot.lane.b32.xlu0 %v4774_v43, %s4523_s16  ;;  %v5293_v43 = vld [vmem:[#allocation2 + $0xd9] sm:$0xff] }
 0x2c9   : > { %v5277_v53 = vpop.permute.xlu1 %1034  ;;  %v5279_v17 = vpop.permute.xlu2 %1044 }
 0x2ca   : > { %8100 = vst [vmem:[#allocation60_spill] sm:$0xff] %v5277_v53 }
 0x2cb   : > { %8101 = vst [vmem:[#allocation61_spill] sm:$0xff] %v5279_v17  ;;  %v5299_v17 = vpop.permute.xlu0 %1162 }
 0x2cc   : > { %8104 = vst [vmem:[#allocation64_spill] sm:$0xff] %v5299_v17 }
 0x2cf   : > { %1170 = vrot.lane.b32.xlu1 %v4964_v29, %s4520_s13  ;;  %1166 = vrot.lane.b32.xlu2 %v4926_v16, %s4520_s13 }
 0x2d0   : > { %1540 = vrot.lane.b32.xlu0 %v4881_v63, %s4523_s16 }
 0x2d1   : > { %v5289_v15 = vpop.permute.xlu1 %1038  ;;  %v5291_v47 = vpop.permute.xlu2 %1048 }
 0x2d2   : > { %8102 = vst [vmem:[#allocation62_spill] sm:$0xff] %v5289_v15  ;;  %v5307_v15 = vld [vmem:[#allocation2 + $0xf9] sm:$0xff] }
 0x2d3   : > { %8103 = vst [vmem:[#allocation63_spill] sm:$0xff] %v5291_v47  ;;  %v584_v47 = vld [vmem:[#allocation2 + $0xe1] sm:$0xff] }
 0x2d7   : > { %1176 = vrot.lane.b32.xlu1 %v5293_v43, %s4520_s13  ;;  %1172 = vrot.lane.b32.xlu2 %v4988_v39, %s4520_s13 }
 0x2d8   : > { %1546 = vrot.lane.b32.xlu0 %v4926_v16, %s4523_s16  ;;  %v5318_v16 = vpop.permute.xlu0 %1168 }
 0x2d9   : > { %v5303_v29 = vpop.permute.xlu1 %1042  ;;  %v5305_v63 = vpop.permute.xlu2 %1052  ;;  %8109 = vst [vmem:[#allocation69_spill] sm:$0xff] %v5318_v16 }
 0x2da   : > { %8105 = vst [vmem:[#allocation65_spill] sm:$0xff] %v5303_v29  ;;  %v587_v29 = vld [vmem:[#allocation2 + $0x109] sm:$0xff] }
 0x2db   : > { %8106 = vst [vmem:[#allocation66_spill] sm:$0xff] %v5305_v63 }
 0x2df   : > { %1182 = vrot.lane.b32.xlu1 %v5307_v15, %s4520_s13  ;;  %1178 = vrot.lane.b32.xlu2 %v584_v47, %s4520_s13 }
 0x2e0   : > { %1552 = vrot.lane.b32.xlu0 %v4988_v39, %s4523_s16  ;;  %v5328_v63 = vpop.permute.xlu0 %1174  ;;  %v590_v39 = vld [vmem:[#allocation2 + $0x129] sm:$0xff] }
 0x2e1   : > { %v5314_v60 = vpop.permute.xlu1 %1046  ;;  %v5316_v17 = vpop.permute.xlu2 %1056  ;;  %8111 = vst [vmem:[#allocation71_spill] sm:$0xff] %v5328_v63  ;;  %v5349_v63 = vld [vmem:[#allocation2 + $0x189] sm:$0xff] }
 0x2e2   : > { %8107 = vst [vmem:[#allocation67_spill] sm:$0xff] %v5314_v60 }
 0x2e3   : > { %8108 = vst [vmem:[#allocation68_spill] sm:$0xff] %v5316_v17 }
 0x2e7   : > { %1188 = vrot.lane.b32.xlu1 %v4833_v54, %s4520_s13  ;;  %1184 = vrot.lane.b32.xlu2 %v587_v29, %s4520_s13 }
 0x2e8   : > { %1558 = vrot.lane.b32.xlu0 %v584_v47, %s4523_s16  ;;  %v5338_v16 = vpop.permute.xlu0 %1180 }
 0x2e9   : > { %v5324_v53 = vpop.permute.xlu1 %1050  ;;  %v5326_v31 = vpop.permute.xlu2 %1060  ;;  %8114 = vst [vmem:[#allocation74_spill] sm:$0xff] %v5338_v16 }
 0x2ea   : > { %8110 = vst [vmem:[#allocation70_spill] sm:$0xff] %v5326_v31 }
 0x2ef   : > { %1194 = vrot.lane.b32.xlu1 %v4903_v5, %s4520_s13  ;;  %1190 = vrot.lane.b32.xlu2 %v590_v39, %s4520_s13 }
 0x2f0   : > { %1564 = vrot.lane.b32.xlu0 %v587_v29, %s4523_s16  ;;  %v5355_v29 = vpop.permute.xlu0 %1186 }
 0x2f1   : > { %v5334_v60 = vpop.permute.xlu1 %1054  ;;  %v5336_v54 = vpop.permute.xlu2 %1064  ;;  %8117 = vst [vmem:[#allocation77_spill] sm:$0xff] %v5355_v29 }
 0x2f2   : > { %8112 = vst [vmem:[#allocation72_spill] sm:$0xff] %v5334_v60  ;;  %v668_v60 = vld [vmem:[#allocation2 + $0x61] sm:$0xff] }
 0x2f3   : > { %8113 = vst [vmem:[#allocation73_spill] sm:$0xff] %v5336_v54  ;;  %v5363_v54 = vld [vmem:[#allocation2 + $0x32] sm:$0xff] }
 0x2f7   : > { %1200 = vrot.lane.b32.xlu1 %v4962_v28, %s4520_s13  ;;  %1196 = vrot.lane.b32.xlu2 %v4938_v19, %s4520_s13 }
 0x2f8   : > { %1570 = vrot.lane.b32.xlu0 %v590_v39, %s4523_s16 }
 0x2f9   : > { %v5345_v47 = vpop.permute.xlu1 %1058  ;;  %v5347_v5 = vpop.permute.xlu2 %1068 }
 0x2fa   : > { %8115 = vst [vmem:[#allocation75_spill] sm:$0xff] %v5345_v47  ;;  %v5376_v47 = vld [vmem:[#allocation2 + $0x52] sm:$0xff] }
 0x2fb   : > { %8116 = vst [vmem:[#allocation76_spill] sm:$0xff] %v5347_v5  ;;  %v599_v5 = vld [vmem:[#allocation2 + $0x1a] sm:$0xff] }
 0x2ff   : > { %1206 = vrot.lane.b32.xlu1 %v5349_v63, %s4520_s13  ;;  %1202 = vrot.lane.b32.xlu2 %v4975_v34, %s4520_s13 }
 0x300   : > { %1576 = vrot.lane.b32.xlu0 %v4938_v19, %s4523_s16  ;;  %v5374_v19 = vpop.permute.xlu0 %1192 }
 0x301   : > { %v5359_v28 = vpop.permute.xlu1 %1062  ;;  %v5361_v39 = vpop.permute.xlu2 %1072  ;;  %8122 = vst [vmem:[#allocation82_spill] sm:$0xff] %v5374_v19 }
 0x302   : > { %8118 = vst [vmem:[#allocation78_spill] sm:$0xff] %v5359_v28  ;;  %v694_v28 = vld [vmem:[#allocation2 + $0x199] sm:$0xff] }
 0x303   : > { %8119 = vst [vmem:[#allocation79_spill] sm:$0xff] %v5361_v39  ;;  %v602_v39 = vld [vmem:[#allocation2 + $0x3a] sm:$0xff] }
 0x307   : > { %1276 = vrot.lane.b32.xlu1 %v5363_v54, %s4521_s14  ;;  %1272 = vrot.lane.b32.xlu2 %v599_v5, %s4521_s14 }
 0x308   : > { %1582 = vrot.lane.b32.xlu0 %v4975_v34, %s4523_s16 }
 0x309   : > { %v5370_v31 = vpop.permute.xlu1 %1066  ;;  %v5372_v29 = vpop.permute.xlu2 %1078 }
 0x30a   : > { %8120 = vst [vmem:[#allocation80_spill] sm:$0xff] %v5370_v31  ;;  %v5386_v31 = vpop.permute.xlu0 %1198 }
 0x30b   : > { %8121 = vst [vmem:[#allocation81_spill] sm:$0xff] %v5372_v29  ;;  %v605_v29 = vld [vmem:[#allocation2 + $0x62] sm:$0xff] }
 0x30c   : > { %8124 = vst [vmem:[#allocation84_spill] sm:$0xff] %v5386_v31 }
 0x30f   : > { %1282 = vrot.lane.b32.xlu1 %v5376_v47, %s4521_s14  ;;  %1278 = vrot.lane.b32.xlu2 %v602_v39, %s4521_s14 }
 0x310   : > { %1588 = vrot.lane.b32.xlu0 %v694_v28, %s4523_s16 }
 0x311   : > { %v5382_v5 = vpop.permute.xlu1 %1070  ;;  %v5384_v34 = vpop.permute.xlu2 %1148 }
 0x312   : > { %8123 = vst [vmem:[#allocation83_spill] sm:$0xff] %v5382_v5  ;;  %v5396_v28 = vpop.permute.xlu0 %1204  ;;  %v608_v5 = vld [vmem:[#allocation2 + $0x82] sm:$0xff] }
 0x313   : > { %8126 = vst [vmem:[#allocation86_spill] sm:$0xff] %v5396_v28 }
 0x317   : > { %1288 = vrot.lane.b32.xlu1 %v4914_v11, %s4521_s14  ;;  %1284 = vrot.lane.b32.xlu2 %v605_v29, %s4521_s14 }
 0x318   : > { %1658 = vrot.lane.b32.xlu0 %v602_v39, %s4524_s17 }
 0x319   : > { %v5392_v19 = vpop.permute.xlu1 %1076  ;;  %v5394_v17 = vpop.permute.xlu2 %1154 }
 0x31a   : > { %8125 = vst [vmem:[#allocation85_spill] sm:$0xff] %v5392_v19  ;;  %v5410_v39 = vpop.permute.xlu0 %1274 }
 0x31f   : > { %1294 = vrot.lane.b32.xlu1 %v4977_v36, %s4521_s14  ;;  %1290 = vrot.lane.b32.xlu2 %v608_v5, %s4521_s14 }
 0x320   : > { %1664 = vrot.lane.b32.xlu0 %v605_v29, %s4524_s17 }
 0x321   : > { %v5402_v11 = vpop.permute.xlu1 %1146  ;;  %v5404_v31 = vpop.permute.xlu2 %1160 }
 0x322   : > { %8127 = vst [vmem:[#allocation87_spill] sm:$0xff] %v5404_v31  ;;  %v5427_v19 = vpop.permute.xlu0 %1280 }
 0x327   : > { %1300 = vrot.lane.b32.xlu1 %v5014_v52, %s4521_s14  ;;  %1296 = vrot.lane.b32.xlu2 %v4990_v40, %s4521_s14 }
 0x328   : > { %1670 = vrot.lane.b32.xlu0 %v608_v5, %s4524_s17 }
 0x329   : > { %v5413_v28 = vpop.permute.xlu1 %1152  ;;  %v5415_v36 = vpop.permute.xlu2 %1166 }
 0x32a   : > { %8128 = vst [vmem:[#allocation88_spill] sm:$0xff] %v5415_v36 }
 0x32f   : > { %1306 = vrot.lane.b32.xlu1 %v5026_v57, %s4521_s14  ;;  %1302 = vrot.lane.b32.xlu2 %v5012_v51, %s4521_s14 }
 0x330   : > { %1676 = vrot.lane.b32.xlu0 %v4990_v40, %s4524_s17  ;;  %v5439_v40 = vpop.permute.xlu0 %1286 }
 0x331   : > { %v5423_v52 = vpop.permute.xlu1 %1158  ;;  %v5425_v29 = vpop.permute.xlu2 %1172  ;;  %8132 = vst [vmem:[#allocation92_spill] sm:$0xff] %v5439_v40 }
 0x332   : > { %8129 = vst [vmem:[#allocation89_spill] sm:$0xff] %v5425_v29 }
 0x337   : > { %1312 = vrot.lane.b32.xlu1 %v5049_v7, %s4521_s14  ;;  %1308 = vrot.lane.b32.xlu2 %v5037_v0, %s4521_s14 }
 0x338   : > { %1682 = vrot.lane.b32.xlu0 %v5012_v51, %s4524_s17  ;;  %v5451_v51 = vpop.permute.xlu0 %1292 }
 0x339   : > { %v5435_v57 = vpop.permute.xlu1 %1164  ;;  %v5437_v5 = vpop.permute.xlu2 %1178  ;;  %8135 = vst [vmem:[#allocation95_spill] sm:$0xff] %v5451_v51  ;;  %v629_v51 = vld [vmem:[#allocation2 + $0x182] sm:$0xff] }
 0x33a   : > { %8130 = vst [vmem:[#allocation90_spill] sm:$0xff] %v5435_v57  ;;  %v653_v57 = vld [vmem:[#allocation2 + $0x128] sm:$0xff] }
 0x33b   : > { %8131 = vst [vmem:[#allocation91_spill] sm:$0xff] %v5437_v5  ;;  %v439_v5 = vld [vmem:[#allocation2] sm:$0xff] }
 0x33f   : > { %1318 = vrot.lane.b32.xlu1 %v5060_v27, %s4521_s14  ;;  %1314 = vrot.lane.b32.xlu2 %v5047_v4, %s4521_s14 }
 0x340   : > { %1688 = vrot.lane.b32.xlu0 %v5037_v0, %s4524_s17  ;;  %v5467_v0 = vpop.permute.xlu0 %1298 }
 0x341   : > { %v5447_v7 = vpop.permute.xlu1 %1170  ;;  %v5449_v29 = vpop.permute.xlu2 %1184  ;;  %8138 = vst [vmem:[#allocation98_spill] sm:$0xff] %v5467_v0 }
 0x342   : > { %8133 = vst [vmem:[#allocation93_spill] sm:$0xff] %v5447_v7 }
 0x343   : > { %8134 = vst [vmem:[#allocation94_spill] sm:$0xff] %v5449_v29 }
 0x347   : > { %1324 = vrot.lane.b32.xlu1 %v5084_v48, %s4521_s14  ;;  %1320 = vrot.lane.b32.xlu2 %v5071_v50, %s4521_s14 }
 0x348   : > { %1694 = vrot.lane.b32.xlu0 %v5047_v4, %s4524_s17  ;;  %v632_v4 = vld [vmem:[#allocation2 + $0x30] sm:$0xff]  ;;  %v5483_v0 = vpop.permute.xlu0 %1304 }
 0x349   : > { %v5459_v27 = vpop.permute.xlu1 %1176  ;;  %v5461_v36 = vpop.permute.xlu2 %1190  ;;  %8143 = vst [vmem:[#allocation103_spill] sm:$0xff] %v5483_v0 }
 0x34a   : > { %8136 = vst [vmem:[#allocation96_spill] sm:$0xff] %v5459_v27 }
 0x34b   : > { %8137 = vst [vmem:[#allocation97_spill] sm:$0xff] %v5461_v36  ;;  %v633_v36 = vld [vmem:[#allocation2 + $0x38] sm:$0xff] }
 0x34f   : > { %1330 = vrot.lane.b32.xlu1 %v5096_v6, %s4521_s14  ;;  %1326 = vrot.lane.b32.xlu2 %v5082_v30, %s4521_s14 }
 0x350   : > { %1700 = vrot.lane.b32.xlu0 %v5071_v50, %s4524_s17  ;;  %v635_v50 = vld [vmem:[#allocation2 + $0x50] sm:$0xff]  ;;  %v5492_v29 = vpop.permute.xlu0 %1310 }
 0x351   : > { %v5471_v48 = vpop.permute.xlu1 %1182  ;;  %v5473_v7 = vpop.permute.xlu2 %1196  ;;  %8145 = vst [vmem:[#allocation105_spill] sm:$0xff] %v5492_v29 }
 0x352   : > { %8139 = vst [vmem:[#allocation99_spill] sm:$0xff] %v5471_v48  ;;  %v662_v48 = vld [vmem:[#allocation2 + $0x198] sm:$0xff] }
 0x353   : > { %8140 = vst [vmem:[#allocation100_spill] sm:$0xff] %v5473_v7 }
 0x357   : > { %1400 = vrot.lane.b32.xlu1 %v632_v4, %s4522_s15  ;;  %1332 = vrot.lane.b32.xlu2 %v629_v51, %s4521_s14  ;;  %s4208_s14 = scalar_lea.hbm %s7990_s5, %s4350_s8 }
 0x358   : > { %1706 = vrot.lane.b32.xlu0 %v5082_v30, %s4524_s17  ;;  %v636_v30 = vld [vmem:[#allocation2 + $0x60] sm:$0xff] }
 0x359   : > { %v5479_v6 = vpop.permute.xlu1 %1188  ;;  %v5481_v27 = vpop.permute.xlu2 %1202 }
 0x35a   : > { %8141 = vst [vmem:[#allocation101_spill] sm:$0xff] %v5479_v6 }
 0x35b   : > { %8142 = vst [vmem:[#allocation102_spill] sm:$0xff] %v5481_v27 }
 0x35f   : > { %1406 = vrot.lane.b32.xlu1 %v635_v50, %s4522_s15  ;;  %1402 = vrot.lane.b32.xlu2 %v633_v36, %s4522_s15  ;;  %v5501_v50 = vpop.permute.xlu0 %1316  ;;  %v639_v36 = vld [vmem:[#allocation2 + $0x80] sm:$0xff] }
 0x360   : > { %1712 = vrot.lane.b32.xlu0 %v629_v51, %s4524_s17  ;;  %8147 = vst [vmem:[#allocation107_spill] sm:$0xff] %v5501_v50  ;;  %v647_v50 = vld [vmem:[#allocation2 + $0xe0] sm:$0xff] }
 0x361   : > { %v5488_v4 = vpop.permute.xlu1 %1194  ;;  %v5490_v7 = vpop.permute.xlu2 %1272 }
 0x362   : > { %8144 = vst [vmem:[#allocation104_spill] sm:$0xff] %v5488_v4 }
 0x367   : > { %1412 = vrot.lane.b32.xlu1 %v5139_v10, %s4522_s15  ;;  %1408 = vrot.lane.b32.xlu2 %v636_v30, %s4522_s15  ;;  %v5514_v10 = vpop.permute.xlu0 %1322 }
 0x368   : > { %8149 = vst [vmem:[#allocation109_spill] sm:$0xff] %v5514_v10 }
 0x369   : > { %v5497_v27 = vpop.permute.xlu1 %1200  ;;  %v5499_v0 = vpop.permute.xlu2 %1278 }
 0x36a   : > { %8146 = vst [vmem:[#allocation106_spill] sm:$0xff] %v5497_v27 }
 0x36f   : > { %1418 = vrot.lane.b32.xlu1 %v5149_v20, %s4522_s15  ;;  %1414 = vrot.lane.b32.xlu2 %v639_v36, %s4522_s15 }
 0x371   : > { %v5506_v51 = vpop.permute.xlu1 %1206  ;;  %v5508_v4 = vpop.permute.xlu2 %1284 }
 0x372   : > { %8148 = vst [vmem:[#allocation108_spill] sm:$0xff] %v5506_v51  ;;  %v650_v51 = vld [vmem:[#allocation2 + $0x108] sm:$0xff] }
 0x377   : > { %1424 = vrot.lane.b32.xlu1 %v5171_v62, %s4522_s15  ;;  %1420 = vrot.lane.b32.xlu2 %v5159_v58, %s4522_s15  ;;  %v5527_v62 = vpop.permute.xlu0 %1328  ;;  %v648_v58 = vld [vmem:[#allocation2 + $0xf0] sm:$0xff] }
 0x378   : > { %8152 = vst [vmem:[#allocation112_spill] sm:$0xff] %v5527_v62 }
 0x379   : > { %v5516_v30 = vpop.permute.xlu1 %1276  ;;  %v5518_v27 = vpop.permute.xlu2 %1290 }
 0x37a   : > { %8150 = vst [vmem:[#allocation110_spill] sm:$0xff] %v5518_v27 }
 0x37f   : > { %1430 = vrot.lane.b32.xlu1 %v647_v50, %s4522_s15  ;;  %1426 = vrot.lane.b32.xlu2 %v5169_v32, %s4522_s15  ;;  %v5535_v50 = vpop.permute.xlu0 %1334  ;;  %v651_v32 = vld [vmem:[#allocation2 + $0x110] sm:$0xff] }
 0x380   : > { %8155 = vst [vmem:[#allocation115_spill] sm:$0xff] %v5535_v50 }
 0x381   : > { %v5523_v20 = vpop.permute.xlu1 %1282  ;;  %v5525_v36 = vpop.permute.xlu2 %1296 }
 0x382   : > { %8151 = vst [vmem:[#allocation111_spill] sm:$0xff] %v5525_v36 }
 0x387   : > { %1436 = vrot.lane.b32.xlu1 %v650_v51, %s4522_s15  ;;  %1432 = vrot.lane.b32.xlu2 %v648_v58, %s4522_s15  ;;  %v5543_v29 = vpop.permute.xlu0 %1404  ;;  %v654_v51 = vld [vmem:[#allocation2 + $0x138] sm:$0xff] }
 0x389   : > { %v5531_v10 = vpop.permute.xlu1 %1288  ;;  %v5533_v6 = vpop.permute.xlu2 %1302 }
 0x38a   : > { %8153 = vst [vmem:[#allocation113_spill] sm:$0xff] %v5531_v10 }
 0x38b   : > { %8154 = vst [vmem:[#allocation114_spill] sm:$0xff] %v5533_v6  ;;  %v659_v6 = vld [vmem:[#allocation2 + $0x170] sm:$0xff] }
 0x38f   : > { %1442 = vrot.lane.b32.xlu1 %v653_v57, %s4522_s15  ;;  %1438 = vrot.lane.b32.xlu2 %v651_v32, %s4522_s15  ;;  %v657_v57 = vld [vmem:[#allocation2 + $0x158] sm:$0xff]  ;;  %v5554_v32 = vpop.permute.xlu0 %1410 }
 0x391   : > { %v5539_v36 = vpop.permute.xlu1 %1294  ;;  %v5541_v62 = vpop.permute.xlu2 %1308 }
 0x392   : > { %8156 = vst [vmem:[#allocation116_spill] sm:$0xff] %v5539_v36 }
 0x393   : > { %8157 = vst [vmem:[#allocation117_spill] sm:$0xff] %v5541_v62  ;;  %v677_v62 = vld [vmem:[#allocation2 + $0xc9] sm:$0xff] }
 0x397   : > { %1448 = vrot.lane.b32.xlu1 %v5217_v24, %s4522_s15  ;;  %1444 = vrot.lane.b32.xlu2 %v654_v51, %s4522_s15 }
 0x399   : > { %v5548_v58 = vpop.permute.xlu1 %1300  ;;  %v5550_v50 = vpop.permute.xlu2 %1314 }
 0x39a   : > { %8158 = vst [vmem:[#allocation118_spill] sm:$0xff] %v5548_v58  ;;  %v5567_v58 = vpop.permute.xlu0 %1416 }
 0x39b   : > { %8159 = vst [vmem:[#allocation119_spill] sm:$0xff] %v5550_v50 }
 0x39c   : > { %8164 = vst [vmem:[#allocation124_spill] sm:$0xff] %v5567_v58 }
 0x39f   : > { %1454 = vrot.lane.b32.xlu1 %v659_v6, %s4522_s15  ;;  %1450 = vrot.lane.b32.xlu2 %v657_v57, %s4522_s15  ;;  %v663_v6 = vld [vmem:[#allocation2 + $0x1a0] sm:$0xff] }
 0x3a0   : > { %v665_v57 = vld [vmem:[#allocation2 + $0x39] sm:$0xff] }
 0x3a1   : > { %v5556_v36 = vpop.permute.xlu1 %1306  ;;  %v5558_v27 = vpop.permute.xlu2 %1320 }
 0x3a2   : > { %8160 = vst [vmem:[#allocation120_spill] sm:$0xff] %v5556_v36 }
 0x3a3   : > { %8161 = vst [vmem:[#allocation121_spill] sm:$0xff] %v5558_v27 }
 0x3a7   : > { %1460 = vrot.lane.b32.xlu1 %v662_v48, %s4522_s15  ;;  %1456 = vrot.lane.b32.xlu2 %v5227_v49, %s4522_s15  ;;  %v5575_v48 = vpop.permute.xlu0 %1422  ;;  %v666_v49 = vld [vmem:[#allocation2 + $0x49] sm:$0xff] }
 0x3a8   : > { %8167 = vst [vmem:[#allocation127_spill] sm:$0xff] %v5575_v48  ;;  %v674_v48 = vld [vmem:[#allocation2 + $0xa9] sm:$0xff] }
 0x3a9   : > { %v5563_v24 = vpop.permute.xlu1 %1312  ;;  %v5565_v51 = vpop.permute.xlu2 %1326 }
 0x3aa   : > { %8162 = vst [vmem:[#allocation122_spill] sm:$0xff] %v5563_v24 }
 0x3ab   : > { %8163 = vst [vmem:[#allocation123_spill] sm:$0xff] %v5565_v51 }
 0x3af   : > { %1530 = vrot.lane.b32.xlu1 %v665_v57, %s4523_s16  ;;  %1462 = vrot.lane.b32.xlu2 %v663_v6, %s4522_s15  ;;  %v5583_v58 = vpop.permute.xlu0 %1428  ;;  %v671_v57 = vld [vmem:[#allocation2 + $0x81] sm:$0xff]  ;;  %v669_v6 = vld [vmem:[#allocation2 + $0x69] sm:$0xff] }
 0x3b0   : > { %8169 = vst [vmem:[#allocation129_spill] sm:$0xff] %v5583_v58 }
 0x3b1   : > { %v5571_v50 = vpop.permute.xlu1 %1318  ;;  %v5573_v27 = vpop.permute.xlu2 %1332 }
 0x3b2   : > { %8165 = vst [vmem:[#allocation125_spill] sm:$0xff] %v5571_v50 }
 0x3b3   : > { %8166 = vst [vmem:[#allocation126_spill] sm:$0xff] %v5573_v27 }
 0x3b7   : > { %1536 = vrot.lane.b32.xlu1 %v668_v60, %s4523_s16  ;;  %1532 = vrot.lane.b32.xlu2 %v666_v49, %s4523_s16  ;;  %v672_v60 = vld [vmem:[#allocation2 + $0x91] sm:$0xff]  ;;  %v5593_v49 = vpop.permute.xlu0 %1434 }
 0x3b8   : > { %8171 = vst [vmem:[#allocation131_spill] sm:$0xff] %v5593_v49  ;;  %v684_v49 = vld [vmem:[#allocation2 + $0x121] sm:$0xff] }
 0x3b9   : > { %v5579_v51 = vpop.permute.xlu1 %1324  ;;  %v5581_v24 = vpop.permute.xlu2 %1402 }
 0x3ba   : > { %8168 = vst [vmem:[#allocation128_spill] sm:$0xff] %v5579_v51 }
 0x3bf   : > { %1542 = vrot.lane.b32.xlu1 %v671_v57, %s4523_s16  ;;  %1538 = vrot.lane.b32.xlu2 %v669_v6, %s4523_s16  ;;  %v675_v57 = vld [vmem:[#allocation2 + $0xb1] sm:$0xff]  ;;  %v5605_v10 = vpop.permute.xlu0 %1440 }
 0x3c0   : > { %8174 = vst [vmem:[#allocation134_spill] sm:$0xff] %v5605_v10 }
 0x3c1   : > { %v5587_v27 = vpop.permute.xlu1 %1330  ;;  %v5589_v50 = vpop.permute.xlu2 %1408 }
 0x3c2   : > { %8170 = vst [vmem:[#allocation130_spill] sm:$0xff] %v5587_v27 }
 0x3c7   : > { %1548 = vrot.lane.b32.xlu1 %v674_v48, %s4523_s16  ;;  %1544 = vrot.lane.b32.xlu2 %v672_v60, %s4523_s16  ;;  %v680_v48 = vld [vmem:[#allocation2 + $0xf1] sm:$0xff]  ;;  %v5614_v31 = vpop.permute.xlu0 %1446 }
 0x3c8   : > { %8176 = vst [vmem:[#allocation136_spill] sm:$0xff] %v5614_v31 }
 0x3c9   : > { %v5595_v51 = vpop.permute.xlu1 %1400  ;;  %v5597_v58 = vpop.permute.xlu2 %1414 }
 0x3ca   : > { %8172 = vst [vmem:[#allocation132_spill] sm:$0xff] %v5597_v58 }
 0x3cf   : > { %1554 = vrot.lane.b32.xlu1 %v677_v62, %s4523_s16  ;;  %1550 = vrot.lane.b32.xlu2 %v675_v57, %s4523_s16  ;;  %v683_v62 = vld [vmem:[#allocation2 + $0x111] sm:$0xff]  ;;  %v727_v57 = vld [vmem:[#allocation2 + $0x1a2] sm:$0xff] }
 0x3d0   : > { %1718 = vrot.lane.b32.xlu0 %v727_v57, %s4524_s17 }
 0x3d1   : > { %v5601_v6 = vpop.permute.xlu1 %1406  ;;  %v5603_v27 = vpop.permute.xlu2 %1420 }
 0x3d2   : > { %8173 = vst [vmem:[#allocation133_spill] sm:$0xff] %v5603_v27  ;;  %v686_v27 = vld [vmem:[#allocation2 + $0x139] sm:$0xff] }
 0x3d7   : > { %1560 = vrot.lane.b32.xlu1 %v680_v48, %s4523_s16  ;;  %1556 = vrot.lane.b32.xlu2 %v5293_v43, %s4523_s16  ;;  %v5624_v43 = vpop.permute.xlu0 %1452 }
 0x3d8   : > { %8179 = vst [vmem:[#allocation139_spill] sm:$0xff] %v5624_v43 }
 0x3d9   : > { %v5610_v60 = vpop.permute.xlu1 %1412  ;;  %v5612_v16 = vpop.permute.xlu2 %1426 }
 0x3da   : > { %8175 = vst [vmem:[#allocation135_spill] sm:$0xff] %v5612_v16  ;;  %v687_v16 = vld [vmem:[#allocation2 + $0x141] sm:$0xff] }
 0x3df   : > { %1566 = vrot.lane.b32.xlu1 %v683_v62, %s4523_s16  ;;  %1562 = vrot.lane.b32.xlu2 %v5307_v15, %s4523_s16  ;;  %v689_v15 = vld [vmem:[#allocation2 + $0x159] sm:$0xff]  ;;  %v5634_v57 = vpop.permute.xlu0 %1458 }
 0x3e0   : > { %8182 = vst [vmem:[#allocation142_spill] sm:$0xff] %v5634_v57 }
 0x3e1   : > { %v5620_v10 = vpop.permute.xlu1 %1418  ;;  %v5622_v48 = vpop.permute.xlu2 %1432 }
 0x3e2   : > { %8177 = vst [vmem:[#allocation137_spill] sm:$0xff] %v5620_v10  ;;  %v692_v10 = vld [vmem:[#allocation2 + $0x181] sm:$0xff] }
 0x3e3   : > { %8178 = vst [vmem:[#allocation138_spill] sm:$0xff] %v5622_v48 }
 0x3e7   : > { %1572 = vrot.lane.b32.xlu1 %v686_v27, %s4523_s16  ;;  %1568 = vrot.lane.b32.xlu2 %v684_v49, %s4523_s16  ;;  %v690_v27 = vld [vmem:[#allocation2 + $0x169] sm:$0xff] }
 0x3e9   : > { %v5628_v31 = vpop.permute.xlu1 %1424  ;;  %v5630_v62 = vpop.permute.xlu2 %1438 }
 0x3ea   : > { %8180 = vst [vmem:[#allocation140_spill] sm:$0xff] %v5628_v31 }
 0x3eb   : > { %8181 = vst [vmem:[#allocation141_spill] sm:$0xff] %v5630_v62  ;;  %v5646_v62 = vpop.permute.xlu0 %1528 }
 0x3ef   : > { %1578 = vrot.lane.b32.xlu1 %v689_v15, %s4523_s16  ;;  %1574 = vrot.lane.b32.xlu2 %v687_v16, %s4523_s16  ;;  %v695_v15 = vld [vmem:[#allocation2 + $0x1a1] sm:$0xff] }
 0x3f1   : > { %v5636_v48 = vpop.permute.xlu1 %1430  ;;  %v5638_v43 = vpop.permute.xlu2 %1444 }
 0x3f2   : > { %8183 = vst [vmem:[#allocation143_spill] sm:$0xff] %v5636_v48 }
 0x3f3   : > { %8184 = vst [vmem:[#allocation144_spill] sm:$0xff] %v5638_v43  ;;  %v5655_v48 = vpop.permute.xlu0 %1534  ;;  %v701_v43 = vld [vmem:[#allocation2 + $0x6a] sm:$0xff] }
 0x3f7   : > { %1584 = vrot.lane.b32.xlu1 %v692_v10, %s4523_s16  ;;  %1580 = vrot.lane.b32.xlu2 %v690_v27, %s4523_s16  ;;  %v698_v10 = vld [vmem:[#allocation2 + $0x4a] sm:$0xff] }
 0x3f9   : > { %v5642_v49 = vpop.permute.xlu1 %1436  ;;  %v5644_v31 = vpop.permute.xlu2 %1450 }
 0x3fa   : > { %8185 = vst [vmem:[#allocation145_spill] sm:$0xff] %v5642_v49  ;;  %v705_v49 = vld [vmem:[#allocation2 + $0x9a] sm:$0xff] }
 0x3fb   : > { %8186 = vst [vmem:[#allocation146_spill] sm:$0xff] %v5644_v31 }
 0x3ff   : > { %1590 = vrot.lane.b32.xlu1 %v695_v15, %s4523_s16  ;;  %1586 = vrot.lane.b32.xlu2 %v5349_v63, %s4523_s16  ;;  %v5664_v15 = vpop.permute.xlu0 %1540 }
 0x401   : > { %v5651_v16 = vpop.permute.xlu1 %1442  ;;  %v5653_v57 = vpop.permute.xlu2 %1456 }
 0x402   : > { %8187 = vst [vmem:[#allocation147_spill] sm:$0xff] %v5651_v16  ;;  %v702_v16 = vld [vmem:[#allocation2 + $0x7a] sm:$0xff] }
 0x403   : > { %8188 = vst [vmem:[#allocation148_spill] sm:$0xff] %v5653_v57 }
 0x407   : > { %1660 = vrot.lane.b32.xlu1 %v698_v10, %s4524_s17  ;;  %1656 = vrot.lane.b32.xlu2 %v5363_v54, %s4524_s17  ;;  %v704_v10 = vld [vmem:[#allocation2 + $0x92] sm:$0xff]  ;;  %v5675_v54 = vpop.permute.xlu0 %1546 }
 0x408   : > { %8192 = vst [vmem:[#allocation152_spill] sm:$0xff] %v5675_v54 }
 0x409   : > { %v5660_v27 = vpop.permute.xlu1 %1448  ;;  %v5662_v31 = vpop.permute.xlu2 %1462 }
 0x40a   : > { %8189 = vst [vmem:[#allocation149_spill] sm:$0xff] %v5660_v27 }
 0x40b   : > { %8190 = vst [vmem:[#allocation150_spill] sm:$0xff] %v5662_v31 }
 0x40f   : > { %1666 = vrot.lane.b32.xlu1 %v701_v43, %s4524_s17  ;;  %1662 = vrot.lane.b32.xlu2 %v5376_v47, %s4524_s17  ;;  %v707_v43 = vld [vmem:[#allocation2 + $0xb2] sm:$0xff]  ;;  %v5687_v58 = vpop.permute.xlu0 %1552 }
 0x410   : > { %8195 = vst [vmem:[#allocation155_spill] sm:$0xff] %v5687_v58 }
 0x411   : > { %v5669_v63 = vpop.permute.xlu1 %1454  ;;  %v5671_v57 = vpop.permute.xlu2 %1532 }
 0x412   : > { %8191 = vst [vmem:[#allocation151_spill] sm:$0xff] %v5669_v63 }
 0x417   : > { %1672 = vrot.lane.b32.xlu1 %v704_v10, %s4524_s17  ;;  %1668 = vrot.lane.b32.xlu2 %v702_v16, %s4524_s17  ;;  %v710_v10 = vld [vmem:[#allocation2 + $0xda] sm:$0xff]  ;;  %v708_v16 = vld [vmem:[#allocation2 + $0xc2] sm:$0xff]  ;;  %v5695_v40 = vpop.permute.xlu0 %1558 }
 0x418   : > { %8197 = vst [vmem:[#allocation157_spill] sm:$0xff] %v5695_v40 }
 0x419   : > { %v5677_v31 = vpop.permute.xlu1 %1460  ;;  %v5679_v27 = vpop.permute.xlu2 %1538 }
 0x41a   : > { %8193 = vst [vmem:[#allocation153_spill] sm:$0xff] %v5677_v31 }
 0x41f   : > { %1678 = vrot.lane.b32.xlu1 %v707_v43, %s4524_s17  ;;  %1674 = vrot.lane.b32.xlu2 %v705_v49, %s4524_s17  ;;  %v713_v43 = vld [vmem:[#allocation2 + $0xfa] sm:$0xff]  ;;  %v711_v49 = vld [vmem:[#allocation2 + $0xe2] sm:$0xff]  ;;  %v5703_v36 = vpop.permute.xlu0 %1564 }
 0x420   : > { %8200 = vst [vmem:[#allocation160_spill] sm:$0xff] %v5703_v36 }
 0x421   : > { %v5683_v47 = vpop.permute.xlu1 %1530  ;;  %v5685_v63 = vpop.permute.xlu2 %1544 }
 0x422   : > { %8194 = vst [vmem:[#allocation154_spill] sm:$0xff] %v5685_v63 }
 0x427   : > { %1684 = vrot.lane.b32.xlu1 %v710_v10, %s4524_s17  ;;  %1680 = vrot.lane.b32.xlu2 %v708_v16, %s4524_s17  ;;  %v716_v10 = vld [vmem:[#allocation2 + $0x122] sm:$0xff]  ;;  %v714_v16 = vld [vmem:[#allocation2 + $0x10a] sm:$0xff]  ;;  %v5725_v36 = vpop.permute.xlu0 %1570 }
 0x428   : > { %8203 = vst [vmem:[#allocation163_spill] sm:$0xff] %v5725_v36 }
 0x429   : > { %v5691_v31 = vpop.permute.xlu1 %1536  ;;  %v5693_v54 = vpop.permute.xlu2 %1550 }
 0x42a   : > { %8196 = vst [vmem:[#allocation156_spill] sm:$0xff] %v5693_v54 }
 0x42f   : > { %1690 = vrot.lane.b32.xlu1 %v713_v43, %s4524_s17  ;;  %1686 = vrot.lane.b32.xlu2 %v711_v49, %s4524_s17  ;;  %v2018_v43 = vld [vmem:[%s7986_s1 + $0x20] sm:$0xf]  ;;  %v2017_v49 = vld [vmem:[%s7986_s1 + $0x18] sm:$0xff] }
 0x430   : > { %4279 = vmatpush.msk.msra.mxu0 %vm2120_vm3, %v2018_v43  ;;  %4351 = vmatpush.msk.msra.mxu3 %vm2120_vm3, %v2018_v43 }
 0x431   : > { %v5699_v63 = vpop.permute.xlu1 %1542  ;;  %v5701_v58 = vpop.permute.xlu2 %1556 }
 0x432   : > { %8198 = vst [vmem:[#allocation158_spill] sm:$0xff] %v5699_v63  ;;  %2136 = vmatpush.msra.mxu0 %v2017_v49  ;;  %4352 = vmatpush.msra.mxu3 %v2017_v49  ;;  %v2014_v49 = vld [vmem:[%s7986_s1] sm:$0xff] }
 0x433   : > { %8199 = vst [vmem:[#allocation159_spill] sm:$0xff] %v5701_v58  ;;  %v717_v58 = vld [vmem:[#allocation2 + $0x12a] sm:$0xff]  ;;  %v723_v63 = vld [vmem:[#allocation2 + $0x172] sm:$0xff] }
 0x437   : > { %1696 = vrot.lane.b32.xlu1 %v716_v10, %s4524_s17  ;;  %1692 = vrot.lane.b32.xlu2 %v714_v16, %s4524_s17  ;;  %v2016_v10 = vld [vmem:[%s7986_s1 + $0x10] sm:$0xff] }
 0x438   : > { %v719_v16 = vld [vmem:[#allocation2 + $0x142] sm:$0xff]  ;;  %2137 = vmatpush.msra.mxu0 %v2016_v10  ;;  %4353 = vmatpush.msra.mxu3 %v2016_v10 }
 0x439   : > { %v5707_v54 = vpop.permute.xlu1 %1548  ;;  %v5709_v40 = vpop.permute.xlu2 %1562 }
 0x43a   : > { %8201 = vst [vmem:[#allocation161_spill] sm:$0xff] %v5707_v54  ;;  %v2015_v54 = vld [vmem:[%s7986_s1 + $0x8] sm:$0xff] }
 0x43b   : > { %8202 = vst [vmem:[#allocation162_spill] sm:$0xff] %v5709_v40  ;;  %2138 = vmatpush.msra.mxu0 %v2015_v54  ;;  %4354 = vmatpush.msra.mxu3 %v2015_v54 }
 0x43d   : > { %2139 = vmatpush.msra.mxu0 %v2014_v49  ;;  %4355 = vmatpush.msra.mxu3 %v2014_v49 }
 0x43f   : > { %1702 = vrot.lane.b32.xlu1 %v719_v16, %s4524_s17  ;;  %1698 = vrot.lane.b32.xlu2 %v717_v58, %s4524_s17  ;;  %v722_v58 = vld [vmem:[#allocation2 + $0x16a] sm:$0xff]  ;;  %v720_v16 = vld [vmem:[#allocation2 + $0x152] sm:$0xff] }
 0x441   : > { %v5727_v43 = vpop.permute.xlu1 %1554  ;;  %v5729_v40 = vpop.permute.xlu2 %1568 }
 0x442   : > { %8204 = vst [vmem:[#allocation164_spill] sm:$0xff] %v5727_v43  ;;  %v5740_v43 = vpop.permute.xlu0 %1576 }
 0x443   : > { %8205 = vst [vmem:[#allocation165_spill] sm:$0xff] %v5729_v40  ;;  %v725_v40 = vld [vmem:[#allocation2 + $0x18a] sm:$0xff] }
 0x444   : > { %8208 = vst [vmem:[#allocation168_spill] sm:$0xff] %v5740_v43 }
 0x447   : > { %1708 = vrot.lane.b32.xlu1 %v722_v58, %s4524_s17  ;;  %1704 = vrot.lane.b32.xlu2 %v720_v16, %s4524_s17  ;;  %v726_v58 = vld [vmem:[#allocation2 + $0x19a] sm:$0xff]  ;;  %v1752_v16 = vsel %vm223_vm0, %v439_v5, %v4885_v1 }
 0x448   : > { %v1784_v43 = vsel %vm279_vm2, %v1752_v16, %v4920_v13 }
 0x449   : > { %v5736_v36 = vpop.permute.xlu1 %1560  ;;  %v5738_v10 = vpop.permute.xlu2 %1574 }
 0x44a   : > { %8206 = vst [vmem:[#allocation166_spill] sm:$0xff] %v5736_v36  ;;  %v5750_v36 = vpop.permute.xlu0 %1582 }
 0x44b   : > { %8207 = vst [vmem:[#allocation167_spill] sm:$0xff] %v5738_v10  ;;  %v440_v10 = vld [vmem:[#allocation2 + $0x8] sm:$0xff] }
 0x44c   : > { %v1753_v5 = vsel %vm223_vm0, %v440_v10, %v4910_v8 }
 0x44f   : > { %1714 = vrot.lane.b32.xlu1 %v725_v40, %s4524_s17  ;;  %1710 = vrot.lane.b32.xlu2 %v723_v63, %s4524_s17  ;;  %v1817_v40 = vsel %vm1816_vm4, %v1784_v43, %v5208_v18  ;;  %v1785_v43 = vsel %vm279_vm2, %v1753_v5, %v4837_v56 }
 0x450   : > { %v1850_v1 = vsel %vm1849_vm5, %v1817_v40, %v5257_v55  ;;  %v1818_v55 = vsel %vm1816_vm4, %v1785_v43, %v5235_v23 }
 0x451   : > { %v5744_v54 = vpop.permute.xlu1 %1566  ;;  %v5746_v49 = vpop.permute.xlu2 %1580 }
 0x452   : > { %8209 = vst [vmem:[#allocation169_spill] sm:$0xff] %v5746_v49  ;;  %v5769_v18 = vpop.permute.xlu0 %1588 }
 0x457   : > { %1716 = vrot.lane.b32.xlu2 %v726_v58, %s4524_s17  ;;  %v1883_v58 = vsel %vm1882_vm6, %v1850_v1, %v5490_v7 }
 0x458   : > { %v1916_v13 = vsel %vm1915_vm7, %v1883_v58, %v5595_v51  ;;  %v1851_v51 = vsel %vm1849_vm5, %v1818_v55, %v5402_v11  ;;  %v1754_v11 = vsel %vm223_vm0, %v5107_v59, %v4863_v61  ;;  %v4419_v55 = vld [vmem:[#allocation2 + $0x20] sm:$0xff] }
 0x459   : > { %v5757_v63 = vpop.permute.xlu1 %1572  ;;  %v5759_v49 = vpop.permute.xlu2 %1586  ;;  %v1949_v7 = vsel %vm1948_vm8, %v1916_v13, %v5646_v62  ;;  %v1884_v56 = vsel %vm1882_vm6, %v1851_v51, %v5410_v39  ;;  %v1786_v39 = vsel %vm279_vm2, %v1754_v11, %v5232_v12 }
 0x45a   : > { %v1917_v23 = vsel %vm1915_vm7, %v1884_v56, %v5581_v24  ;;  %v1659_v1 = vpop.permute.xlu0 %1658  ;;  %v1819_v24 = vsel %vm1816_vm4, %v1786_v39, %v5215_v35  ;;  %v4422_v39 = vld [vmem:[#allocation2 + $0x48] sm:$0xff] }
 0x45b   : > { %v1950_v40 = vsel %vm1948_vm8, %v1917_v23, %v5683_v47  ;;  %v1852_v47 = vsel %vm1849_vm5, %v1819_v24, %v5384_v34 }
 0x45c   : > { %v1983_v62 = vsel %vm1981_vm10, %v1950_v40, %v1659_v1  ;;  %v1885_v13 = vsel %vm1882_vm6, %v1852_v47, %v5516_v30  ;;  %v4421_v1 = vld [vmem:[#allocation2 + $0x38] sm:$0xff] }
 0x45d   : > { %v1918_v59 = vsel %vm1915_vm7, %v1885_v13, %v5543_v29 }
 0x45e   : > { %v1951_v12 = vsel %vm1948_vm8, %v1918_v59, %v5671_v57  ;;  %v4424_v59 = vld [vmem:[#allocation2 + $0xc8] sm:$0xff] }
 0x461   : > { %v5775_v16 = vpop.permute.xlu1 %1578  ;;  %v1657_v8 = vpop.permute.xlu2 %1656 }
 0x462   : > { %v1982_v10 = vsel %vm1981_vm10, %v1949_v7, %v1657_v8  ;;  %v1755_v8 = vsel %vm223_vm0, %v4419_v55, %v4893_v3  ;;  %v4420_v7 = vld [vmem:[#allocation2 + $0x30] sm:$0xff]  ;;  %v1665_v51 = vpop.permute.xlu0 %1664 }
 0x463   : > { %4280 = vmatmul.msk.f32.vlgmr.msra.gmra.mxu0 %vm2023_vm9, %v1982_v10  ;;  %v1787_v61 = vsel %vm279_vm2, %v1755_v8, %v4945_v21  ;;  %v1756_v21 = vsel %vm223_vm0, %v4420_v7, %v4957_v25  ;;  %v8210_v8 = vld [vmem:[#allocation15_spill] sm:$0xff] }
 0x464   : > { %v1820_v35 = vsel %vm1816_vm4, %v1787_v61, %v5244_v45  ;;  %v1788_v10 = vsel %vm279_vm2, %v1756_v21, %v4947_v22  ;;  %v8213_v21 = vld [vmem:[#allocation91_spill] sm:$0xff] }
 0x465   : > { %v1853_v3 = vsel %vm1849_vm5, %v1820_v35, %v5269_v9  ;;  %v1821_v56 = vsel %vm1816_vm4, %v1788_v10, %v5225_v41  ;;  %v8211_v35 = vld [vmem:[#allocation36_spill] sm:$0xff] }
 0x466   : > { %v1886_v29 = vsel %vm1882_vm6, %v1853_v3, %v5499_v0  ;;  %v1854_v25 = vsel %vm1849_vm5, %v1821_v56, %v5413_v28 }
 0x467   : > { %v1919_v45 = vsel %vm1915_vm7, %v1886_v29, %v5601_v6  ;;  %v1887_v6 = vsel %vm1882_vm6, %v1854_v25, %v5427_v19  ;;  %v8214_v29 = vld [vmem:[#allocation120_spill] sm:$0xff]  ;;  %v4426_v25 = vld [vmem:[#allocation2 + $0x60] sm:$0xff] }
 0x468   : > { %v1952_v9 = vsel %vm1948_vm8, %v1919_v45, %v5655_v48  ;;  %v1920_v22 = vsel %vm1915_vm7, %v1887_v6, %v5589_v50  ;;  %v1757_v48 = vsel %vm223_vm0, %v4421_v1, %v4922_v14  ;;  %v1758_v14 = vsel %vm223_vm0, %v4422_v39, %v4997_v44  ;;  %v8215_v45 = vld [vmem:[#allocation92_spill] sm:$0xff]  ;;  %v8223_v39 = vld [vmem:[#allocation162_spill] sm:$0xff] }
 0x469   : > { %v5789_v5 = vpop.permute.xlu1 %1584  ;;  %v1663_v43 = vpop.permute.xlu2 %1662  ;;  %v1953_v41 = vsel %vm1948_vm8, %v1920_v22, %v5691_v31  ;;  %v1789_v11 = vsel %vm279_vm2, %v1757_v48, %v4984_v37  ;;  %v1790_v37 = vsel %vm279_vm2, %v1758_v14, %v4986_v38  ;;  %v8219_v22 = vld [vmem:[#allocation158_spill] sm:$0xff]  ;;  %v8220_v1 = vld [vmem:[#allocation40_spill] sm:$0xff] }
 0x46a   : > { %v1985_v0 = vsel %vm1981_vm10, %v1952_v9, %v1663_v43  ;;  %v1671_v40 = vpop.permute.xlu0 %1670  ;;  %v1986_v19 = vsel %vm1981_vm10, %v1953_v41, %v1665_v51  ;;  %v1822_v50 = vsel %vm1816_vm4, %v1789_v11, %v5253_v46  ;;  %v1823_v46 = vsel %vm1816_vm4, %v1790_v37, %v5237_v2  ;;  %v8221_v11 = vld [vmem:[#allocation131_spill] sm:$0xff]  ;;  %v8224_v37 = vld [vmem:[#allocation16_spill] sm:$0xff] }
 0x46b   : > { %4281 = vmatmul.msk.f32.gmra.mxu0 %vm2023_vm9, %v1983_v62  ;;  %v1855_v31 = vsel %vm1849_vm5, %v1822_v50, %v5394_v17  ;;  %v1856_v38 = vsel %vm1849_vm5, %v1823_v46, %v5281_v33  ;;  %v8222_v50 = vld [vmem:[#allocation66_spill] sm:$0xff] }
 0x46c   : > { %v1888_v24 = vsel %vm1882_vm6, %v1855_v31, %v5523_v20  ;;  %v1889_v20 = vsel %vm1882_vm6, %v1856_v38, %v5508_v4 }
 0x46d   : > { %v1921_v47 = vsel %vm1915_vm7, %v1888_v24, %v5554_v32  ;;  %v1922_v2 = vsel %vm1915_vm7, %v1889_v20, %v5610_v60  ;;  %v4423_v32 = vld [vmem:[#allocation2 + $0x50] sm:$0xff]  ;;  %v8212_v60 = vld [vmem:[#allocation43_spill] sm:$0xff] }
 0x46e   : > { %v1954_v13 = vsel %vm1948_vm8, %v1921_v47, %v5679_v27  ;;  %v1759_v27 = vsel %vm223_vm0, %v4423_v32, %v4959_v26  ;;  %v1955_v4 = vsel %vm1948_vm8, %v1922_v2, %v5664_v15  ;;  %v8226_v20 = vld [vmem:[#allocation87_spill] sm:$0xff]  ;;  %v8227_v32 = vld [vmem:[#allocation74_spill] sm:$0xff] }
 0x46f   : > { %v1791_v61 = vsel %vm279_vm2, %v1759_v27, %v8210_v8  ;;  %v8228_v8 = vld [vmem:[#allocation113_spill] sm:$0xff] }
 0x470   : > { %v1824_v33 = vsel %vm1816_vm4, %v1791_v61, %v5265_v42 }
 0x471   : > { %v5796_v58 = vpop.permute.xlu1 %1590  ;;  %v1669_v57 = vpop.permute.xlu2 %1668  ;;  %v1857_v26 = vsel %vm1849_vm5, %v1824_v33, %v5423_v52  ;;  %v8216_v52 = vld [vmem:[#allocation132_spill] sm:$0xff]  ;;  %v4427_v33 = vld [vmem:[#allocation2 + $0xe0] sm:$0xff] }
 0x472   : > { %v5871_v44 = vpop.permute.xlu0 %1676  ;;  %v1988_v3 = vsel %vm1981_vm10, %v1955_v4, %v1669_v57  ;;  %v1890_v10 = vsel %vm1882_vm6, %v1857_v26, %v8215_v45  ;;  %v8231_v4 = vld [vmem:[#allocation7_spill] sm:$0xff]  ;;  %v8232_v26 = vld [vmem:[#allocation12_spill] sm:$0xff] }
 0x473   : > { %v1923_v57 = vsel %vm1915_vm7, %v1890_v10, %v8216_v52  ;;  %v8235_v10 = vld [vmem:[#allocation124_spill] sm:$0xff] }
 0x474   : > { %v1956_v41 = vsel %vm1948_vm8, %v1923_v57, %v8219_v22  ;;  %v8236_v57 = vld [vmem:[#allocation60_spill] sm:$0xff] }
 0x475   : > { %v1989_v46 = vsel %vm1981_vm10, %v1956_v41, %v1671_v40  ;;  %v8240_v41 = vld [vmem:[#allocation99_spill] sm:$0xff] }
 0x479   : > { %v1661_v34 = vpop.permute.xlu1 %1660  ;;  %v5844_v62 = vpop.permute.xlu2 %1674 }
 0x47a   : > { %v1984_v30 = vsel %vm1981_vm10, %v1951_v12, %v1661_v34  ;;  %v1769_v12 = vsel %vm223_vm0, %v4424_v59, %v8211_v35  ;;  %v5906_v15 = vpop.permute.xlu0 %1682  ;;  %v8229_v59 = vld [vmem:[#allocation117_spill] sm:$0xff] }
 0x47b   : > { %4282 = vmatmul.msk.f32.gmra.mxu0 %vm2023_vm9, %v1984_v30  ;;  %v1801_v30 = vsel %vm279_vm2, %v1769_v12, %v8212_v60  ;;  %v8230_v35 = vld [vmem:[#allocation145_spill] sm:$0xff]  ;;  %v1771_v60 = vsel %vm223_vm0, %v4427_v33, %v8231_v4  ;;  %v8251_v4 = vld [vmem:[#allocation42_spill] sm:$0xff] }
 0x47c   : > { %v1834_v7 = vsel %vm1816_vm4, %v1801_v30, %v5324_v53  ;;  %v8217_v53 = vld [vmem:[#allocation8_spill] sm:$0xff] }
 0x47d   : > { %v1867_v42 = vsel %vm1849_vm5, %v1834_v7, %v8213_v21  ;;  %v4428_v30 = vld [vmem:[#allocation2 + $0x68] sm:$0xff] }
 0x47e   : > { %v1900_v51 = vsel %vm1882_vm6, %v1867_v42, %v8214_v29  ;;  %v8233_v42 = vld [vmem:[#allocation21_spill] sm:$0xff] }
 0x481   : > { %v1667_v23 = vpop.permute.xlu1 %1666  ;;  %v5873_v55 = vpop.permute.xlu2 %1680 }
 0x482   : > { %v1987_v43 = vsel %vm1981_vm10, %v1954_v13, %v1667_v23  ;;  %v4425_v23 = vld [vmem:[#allocation2 + $0xd8] sm:$0xff]  ;;  %v5950_v7 = vpop.permute.xlu0 %1688 }
 0x483   : > { %4283 = vmatmul.msk.f32.gmra.mxu0 %vm2023_vm9, %v1985_v0  ;;  %v1770_v9 = vsel %vm223_vm0, %v4425_v23, %v8217_v53  ;;  %v8218_v0 = vld [vmem:[#allocation17_spill] sm:$0xff]  ;;  %v8237_v53 = vld [vmem:[#allocation72_spill] sm:$0xff] }
 0x484   : > { %v1760_v6 = vsel %vm223_vm0, %v4426_v25, %v8218_v0  ;;  %v1802_v48 = vsel %vm279_vm2, %v1770_v9, %v8220_v1  ;;  %v8238_v25 = vld [vmem:[#allocation154_spill] sm:$0xff] }
 0x485   : > { %v1835_v31 = vsel %vm1816_vm4, %v1802_v48, %v8222_v50  ;;  %v1792_v47 = vsel %vm279_vm2, %v1760_v6, %v8224_v37  ;;  %v8239_v6 = vld [vmem:[#allocation160_spill] sm:$0xff] }
 0x486   : > { %v1868_v27 = vsel %vm1849_vm5, %v1835_v31, %v8227_v32  ;;  %v4429_v31 = vld [vmem:[#allocation2 + $0x78] sm:$0xff] }
 0x487   : > { %v1901_v40 = vsel %vm1882_vm6, %v1868_v27, %v8229_v59  ;;  %v4430_v27 = vld [vmem:[#allocation2 + $0xf0] sm:$0xff]  ;;  %v8249_v59 = vld [vmem:[#allocation58_spill] sm:$0xff] }
 0x488   : > { %v1934_v12 = vsel %vm1915_vm7, %v1901_v40, %v8230_v35 }
 0x489   : > { %v5846_v28 = vpop.permute.xlu1 %1672  ;;  %v5910_v56 = vpop.permute.xlu2 %1686  ;;  %v1967_v22 = vsel %vm1948_vm8, %v1934_v12, %v8239_v6  ;;  %v8250_v12 = vld [vmem:[#allocation152_spill] sm:$0xff] }
 0x48a   : > { %v1695_v35 = vpop.permute.xlu0 %1694 }
 0x48b   : > { %4284 = vmatmul.msk.f32.gmra.mxu0 %vm2023_vm9, %v1986_v19  ;;  %v1933_v19 = vsel %vm1915_vm7, %v1900_v51, %v8221_v11  ;;  %v8234_v51 = vld [vmem:[#allocation45_spill] sm:$0xff] }
 0x48c   : > { %v1966_v14 = vsel %vm1948_vm8, %v1933_v19, %v8223_v39  ;;  %v1803_v45 = vsel %vm279_vm2, %v1771_v60, %v8234_v51  ;;  %v8241_v19 = vld [vmem:[#allocation64_spill] sm:$0xff]  ;;  %v8242_v39 = vld [vmem:[#allocation23_spill] sm:$0xff] }
 0x48d   : > { %v1836_v9 = vsel %vm1816_vm4, %v1803_v45, %v8237_v53  ;;  %v8255_v45 = vld [vmem:[#allocation122_spill] sm:$0xff] }
 0x48e   : > { %v1869_v1 = vsel %vm1849_vm5, %v1836_v9, %v8240_v41  ;;  %v4431_v53 = vld [vmem:[#allocation2 + $0xf8] sm:$0xff]  ;;  %v8258_v9 = vld [vmem:[#allocation9_spill] sm:$0xff]  ;;  %v8260_v41 = vld [vmem:[#allocation47_spill] sm:$0xff] }
 0x491   : > { %v5868_v17 = vpop.permute.xlu1 %1678  ;;  %v1693_v21 = vpop.permute.xlu2 %1692 }
 0x492   : > { %v2000_v11 = vsel %vm1981_vm10, %v1967_v22, %v1693_v21  ;;  %v8253_v21 = vld [vmem:[#allocation68_spill] sm:$0xff] }
 0x493   : > { %4285 = vmatmul.msk.f32.gmra.mxu0 %vm2023_vm9, %v1987_v43  ;;  %v8225_v43 = vld [vmem:[#allocation57_spill] sm:$0xff] }
 0x494   : > { %v1825_v38 = vsel %vm1816_vm4, %v1792_v47, %v8225_v43  ;;  %v8244_v47 = vld [vmem:[#allocation105_spill] sm:$0xff] }
 0x495   : > { %v1858_v2 = vsel %vm1849_vm5, %v1825_v38, %v8226_v20  ;;  %v8246_v43 = vld [vmem:[#allocation141_spill] sm:$0xff] }
 0x496   : > { %v1891_v61 = vsel %vm1882_vm6, %v1858_v2, %v8228_v8  ;;  %v8247_v2 = vld [vmem:[#allocation22_spill] sm:$0xff] }
 0x497   : > { %v1924_v52 = vsel %vm1915_vm7, %v1891_v61, %v8235_v10  ;;  %v8248_v8 = vld [vmem:[#allocation10_spill] sm:$0xff] }
 0x498   : > { %v1957_v0 = vsel %vm1948_vm8, %v1924_v52, %v8238_v25  ;;  %v1772_v61 = vsel %vm223_vm0, %v4430_v27, %v8248_v8  ;;  %v8256_v52 = vld [vmem:[#allocation95_spill] sm:$0xff]  ;;  %v1773_v25 = vsel %vm223_vm0, %v4431_v53, %v8258_v9  ;;  %v4433_v8 = vld [vmem:[#allocation2 + $0x90] sm:$0xff] }
 0x499   : > { %v5890_v34 = vpop.permute.xlu1 %1684  ;;  %v1990_v48 = vsel %vm1981_vm10, %v1957_v0, %v5846_v28  ;;  %v8245_v28 = vld [vmem:[#allocation137_spill] sm:$0xff]  ;;  %v1804_v60 = vsel %vm279_vm2, %v1772_v61, %v8251_v4  ;;  %v8280_v9 = vld [vmem:[#allocation163_spill] sm:$0xff] }
 0x49a   : > { %v8259_v0 = vld [vmem:[#allocation161_spill] sm:$0xff] }
 0x49b   : > { %4286 = vmatmul.msk.f32.gmra.mxu0 %vm2023_vm9, %v1988_v3  ;;  %v1761_v3 = vsel %vm223_vm0, %v4428_v30, %v8232_v26  ;;  %v8252_v30 = vld [vmem:[#allocation90_spill] sm:$0xff]  ;;  %v8269_v61 = vld [vmem:[#allocation29_spill] sm:$0xff] }
 0x49c   : > { %v1793_v29 = vsel %vm279_vm2, %v1761_v3, %v8233_v42  ;;  %v1837_v42 = vsel %vm1816_vm4, %v1804_v60, %v8253_v21  ;;  %v4434_v60 = vld [vmem:[#allocation2 + $0x108] sm:$0xff] }
 0x49d   : > { %v1826_v23 = vsel %vm1816_vm4, %v1793_v29, %v8236_v57  ;;  %v8254_v29 = vld [vmem:[#allocation94_spill] sm:$0xff] }
 0x49e   : > { %v1859_v50 = vsel %vm1849_vm5, %v1826_v23, %v8241_v19  ;;  %v1870_v51 = vsel %vm1849_vm5, %v1837_v42, %v8254_v29  ;;  %v8257_v23 = vld [vmem:[#allocation133_spill] sm:$0xff]  ;;  %v4432_v19 = vld [vmem:[#allocation2 + $0x80] sm:$0xff]  ;;  %v8275_v42 = vld [vmem:[#allocation28_spill] sm:$0xff] }
 0x49f   : > { %v1903_v10 = vsel %vm1882_vm6, %v1870_v51, %v8255_v45  ;;  %v8276_v51 = vld [vmem:[#allocation127_spill] sm:$0xff] }
 0x4a1   : > { %v1691_v24 = vpop.permute.xlu1 %1690 }
 0x4a2   : > { %v1999_v13 = vsel %vm1981_vm10, %v1966_v14, %v1691_v24  ;;  %v1762_v14 = vsel %vm223_vm0, %v4429_v31, %v8242_v39  ;;  %v8243_v24 = vld [vmem:[#allocation110_spill] sm:$0xff]  ;;  %v8263_v39 = vld [vmem:[#allocation75_spill] sm:$0xff] }
 0x4a3   : > { %4287 = vmatmul.msk.f32.gmra.mxu0 %vm2023_vm9, %v1989_v46  ;;  %4297 = vmatmul.msk.f32.vlgmr.msra.gmra.mxu3 %vm2023_vm9, %v1999_v13  ;;  %v1892_v37 = vsel %vm1882_vm6, %v1859_v50, %v8243_v24  ;;  %v1902_v46 = vsel %vm1882_vm6, %v1869_v1, %v8244_v47  ;;  %v1794_v32 = vsel %vm279_vm2, %v1762_v14, %v8247_v2  ;;  %v8262_v50 = vld [vmem:[#allocation18_spill] sm:$0xff]  ;;  %v8264_v24 = vld [vmem:[#allocation165_spill] sm:$0xff]  ;;  %v8265_v47 = vld [vmem:[#allocation27_spill] sm:$0xff] }
 0x4a4   : > { %v1925_v13 = vsel %vm1915_vm7, %v1892_v37, %v8245_v28  ;;  %v1935_v38 = vsel %vm1915_vm7, %v1902_v46, %v8246_v43  ;;  %v1827_v40 = vsel %vm1816_vm4, %v1794_v32, %v8249_v59  ;;  %v1805_v1 = vsel %vm279_vm2, %v1773_v25, %v8260_v41  ;;  %v8266_v43 = vld [vmem:[#allocation62_spill] sm:$0xff]  ;;  %v8268_v32 = vld [vmem:[#allocation77_spill] sm:$0xff] }
 0x4a5   : > { %v1968_v20 = vsel %vm1948_vm8, %v1935_v38, %v5744_v54  ;;  %v1958_v33 = vsel %vm1948_vm8, %v1925_v13, %v8250_v12  ;;  %v1860_v54 = vsel %vm1849_vm5, %v1827_v40, %v8252_v30  ;;  %v1763_v31 = vsel %vm223_vm0, %v4432_v19, %v8262_v50  ;;  %v8273_v30 = vld [vmem:[#allocation13_spill] sm:$0xff]  ;;  %v8284_v50 = vld [vmem:[#allocation107_spill] sm:$0xff] }
 0x4a6   : > { %v1991_v26 = vsel %vm1981_vm10, %v1958_v33, %v5844_v62  ;;  %v2001_v3 = vsel %vm1981_vm10, %v1968_v20, %v1695_v35  ;;  %v1893_v57 = vsel %vm1882_vm6, %v1860_v54, %v8256_v52  ;;  %v1838_v14 = vsel %vm1816_vm4, %v1805_v1, %v8263_v39  ;;  %v8267_v20 = vld [vmem:[#allocation88_spill] sm:$0xff]  ;;  %v8271_v35 = vld [vmem:[#allocation119_spill] sm:$0xff]  ;;  %v8282_v1 = vld [vmem:[#allocation69_spill] sm:$0xff] }
 0x4a7   : > { %v1926_v62 = vsel %vm1915_vm7, %v1893_v57, %v8257_v23  ;;  %v1795_v46 = vsel %vm279_vm2, %v1763_v31, %v8265_v47  ;;  %v1871_v27 = vsel %vm1849_vm5, %v1838_v14, %v8268_v32  ;;  %v1764_v59 = vsel %vm223_vm0, %v4433_v8, %v8269_v61  ;;  %v8272_v33 = vld [vmem:[#allocation147_spill] sm:$0xff]  ;;  %v8278_v57 = vld [vmem:[#allocation70_spill] sm:$0xff]  ;;  %v8285_v39 = vld [vmem:[#allocation140_spill] sm:$0xff]  ;;  %v1701_v61 = vpop.permute.xlu0 %1700 }
 0x4a8   : > { %v1959_v6 = vsel %vm1948_vm8, %v1926_v62, %v8259_v0  ;;  %v1828_v38 = vsel %vm1816_vm4, %v1795_v46, %v8266_v43  ;;  %v1904_v12 = vsel %vm1882_vm6, %v1871_v27, %v8271_v35  ;;  %v1774_v54 = vsel %vm223_vm0, %v4434_v60, %v8273_v30  ;;  %v8279_v62 = vld [vmem:[#allocation156_spill] sm:$0xff]  ;;  %v8281_v0 = vld [vmem:[#allocation101_spill] sm:$0xff]  ;;  %v4435_v47 = vld [vmem:[#allocation2 + $0x98] sm:$0xff] }
 0x4a9   : > { %v1697_v22 = vpop.permute.xlu1 %1696  ;;  %v1992_v28 = vsel %vm1981_vm10, %v1959_v6, %v5871_v44  ;;  %v1861_v2 = vsel %vm1849_vm5, %v1828_v38, %v8267_v20  ;;  %v8270_v44 = vld [vmem:[#allocation116_spill] sm:$0xff]  ;;  %v1937_v4 = vsel %vm1915_vm7, %v1904_v12, %v8272_v33  ;;  %v1796_v29 = vsel %vm279_vm2, %v1764_v59, %v8275_v42  ;;  %v8289_v43 = vld [vmem:[#allocation37_spill] sm:$0xff]  ;;  %v8292_v59 = vld [vmem:[#allocation155_spill] sm:$0xff] }
 0x4aa   : > { %v1894_v40 = vsel %vm1882_vm6, %v1861_v2, %v8270_v44  ;;  %v1970_v25 = vsel %vm1948_vm8, %v1937_v4, %v8280_v9  ;;  %v8288_v46 = vld [vmem:[#allocation24_spill] sm:$0xff]  ;;  %v4436_v20 = vld [vmem:[#allocation2 + $0x110] sm:$0xff]  ;;  %v8290_v2 = vld [vmem:[#allocation11_spill] sm:$0xff] }
 0x4ab   : > { %4288 = vmatmul.msk.f32.gmra.mxu0 %vm2023_vm9, %v1990_v48  ;;  %4298 = vmatmul.msk.f32.gmra.mxu3 %vm2023_vm9, %v2000_v11  ;;  %v8261_v48 = vld [vmem:[#allocation134_spill] sm:$0xff]  ;;  %v1927_v45 = vsel %vm1915_vm7, %v1894_v40, %v8276_v51  ;;  %v1775_v32 = vsel %vm223_vm0, %v4436_v20, %v8290_v2  ;;  %v8291_v27 = vld [vmem:[#allocation65_spill] sm:$0xff]  ;;  %v8299_v51 = vld [vmem:[#allocation135_spill] sm:$0xff] }
 0x4ac   : > { %v1936_v11 = vsel %vm1915_vm7, %v1903_v10, %v8261_v48  ;;  %v8277_v10 = vld [vmem:[#allocation59_spill] sm:$0xff]  ;;  %v1960_v53 = vsel %vm1948_vm8, %v1927_v45, %v8279_v62  ;;  %v8293_v44 = vld [vmem:[#allocation49_spill] sm:$0xff]  ;;  %v8295_v60 = vld [vmem:[#allocation78_spill] sm:$0xff] }
 0x4ad   : > { %v1969_v37 = vsel %vm1948_vm8, %v1936_v11, %v8264_v24  ;;  %v1829_v52 = vsel %vm1816_vm4, %v1796_v29, %v8277_v10  ;;  %v8283_v11 = vld [vmem:[#allocation111_spill] sm:$0xff]  ;;  %v1807_v40 = vsel %vm279_vm2, %v1775_v32, %v8293_v44  ;;  %v8294_v35 = vld [vmem:[#allocation93_spill] sm:$0xff]  ;;  %v8302_v9 = vld [vmem:[#allocation164_spill] sm:$0xff] }
 0x4ae   : > { %v2002_v13 = vsel %vm1981_vm10, %v1969_v37, %v1697_v22  ;;  %v1993_v22 = vsel %vm1981_vm10, %v1960_v53, %v5868_v17  ;;  %v1862_v48 = vsel %vm1849_vm5, %v1829_v52, %v8282_v1  ;;  %v8286_v17 = vld [vmem:[#allocation144_spill] sm:$0xff]  ;;  %v8287_v37 = vmov 0.0   ;;  %v2334_v29 = vld [vmem:[#allocation3 + $0x1] sm:$0xff]  ;;  %v4437_v10 = vld [vmem:[#allocation2 + $0x120] sm:$0xff] }
 0x4af   : > { %v1895_v19 = vsel %vm1882_vm6, %v1862_v48, %v8283_v11  ;;  %286 = vst.msk [vmem:[#allocation3 + $0x28] sm:$0x3] %vm282_vm11, %v8287_v37  ;;  %v1840_v30 = vsel %vm1816_vm4, %v1807_v40, %v8295_v60  ;;  %2623 = vrot.lane.b32.xlu1 %v2334_v29, %s4517_s10  ;;  %v8300_v52 = vld [vmem:[#allocation19_spill] sm:$0xff]  ;;  %v8301_v62 = vld [vmem:[#allocation33_spill] sm:$0xff]  ;;  %v8315_v44 = vld [vmem:[#allocation30_spill] sm:$0xff] }
 0x4b0   : > { %v1928_v14 = vsel %vm1915_vm7, %v1895_v19, %v8285_v39  ;;  %283 = vst.msk [vmem:[#allocation3 + $0x10] sm:$0x3] %vm282_vm11, %v8287_v37  ;;  %v8305_v48 = vld [vmem:[#allocation73_spill] sm:$0xff]  ;;  %v8306_v19 = vld [vmem:[#allocation167_spill] sm:$0xff] }
 0x4b1   : > { %289 = vst.msk [vmem:[#allocation3 + $0x40] sm:$0x3] %vm282_vm11, %v8287_v37  ;;  %v8312_v20 = vld [vmem:[#allocation121_spill] sm:$0xff] }
 0x4b2   : > { %292 = vst.msk [vmem:[#allocation3 + $0x58] sm:$0x3] %vm282_vm11, %v8287_v37  ;;  %v8313_v32 = vld [vmem:[#allocation149_spill] sm:$0xff] }
 0x4b3   : > { %4289 = vmatmul.msk.f32.gmra.mxu0 %vm2023_vm9, %v1991_v26  ;;  %4299 = vmatmul.msk.f32.gmra.mxu3 %vm2023_vm9, %v2001_v3  ;;  %v1699_v26 = vpop.permute.xlu2 %1698  ;;  %v8274_v3 = vld [vmem:[#allocation44_spill] sm:$0xff]  ;;  %295 = vst.msk [vmem:[#allocation3 + $0x70] sm:$0x3] %vm282_vm11, %v8287_v37 }
 0x4b4   : > { %v1806_v21 = vsel %vm279_vm2, %v1774_v54, %v8274_v3  ;;  %v2003_v41 = vsel %vm1981_vm10, %v1970_v25, %v1699_v26  ;;  %298 = vst.msk [vmem:[#allocation3 + $0x88] sm:$0x3] %vm282_vm11, %v8287_v37  ;;  %v8296_v54 = vld [vmem:[#allocation97_spill] sm:$0xff] }
 0x4b5   : > { %v1839_v23 = vsel %vm1816_vm4, %v1806_v21, %v8278_v57  ;;  %v1873_v26 = vsel %vm1849_vm5, %v1840_v30, %v8296_v54  ;;  %301 = vst.msk [vmem:[#allocation3 + $0xa0] sm:$0x3] %vm282_vm11, %v8287_v37  ;;  %v8298_v21 = vld [vmem:[#allocation98_spill] sm:$0xff]  ;;  %v1776_v57 = vsel %vm223_vm0, %v4437_v10, %v8300_v52  ;;  %v8318_v30 = vld [vmem:[#allocation129_spill] sm:$0xff] }
 0x4b6   : > { %v1872_v6 = vsel %vm1849_vm5, %v1839_v23, %v8281_v0  ;;  %304 = vst.msk [vmem:[#allocation3 + $0xb8] sm:$0x3] %vm282_vm11, %v8287_v37  ;;  %v4438_v23 = vld [vmem:[#allocation2 + $0xa8] sm:$0xff]  ;;  %v1703_v0 = vpop.permute.xlu1 %1702 }
 0x4b7   : > { %v1905_v31 = vsel %vm1882_vm6, %v1872_v6, %v8284_v50  ;;  %307 = vst.msk [vmem:[#allocation3 + $0xd0] sm:$0x3] %vm282_vm11, %v8287_v37  ;;  %v1766_v53 = vsel %vm223_vm0, %v4438_v23, %v8301_v62  ;;  %v8303_v6 = vld [vmem:[#allocation46_spill] sm:$0xff]  ;;  %v8324_v23 = vld [vmem:[#allocation71_spill] sm:$0xff] }
 0x4b8   : > { %v1938_v24 = vsel %vm1915_vm7, %v1905_v31, %v8286_v17  ;;  %310 = vst.msk [vmem:[#allocation3 + $0xe8] sm:$0x3] %vm282_vm11, %v8287_v37  ;;  %v8307_v31 = vld [vmem:[#allocation34_spill] sm:$0xff] }
 0x4b9   : > { %313 = vst.msk [vmem:[#allocation3 + $0x100] sm:$0x3] %vm282_vm11, %v8287_v37  ;;  %v1798_v39 = vsel %vm279_vm2, %v1766_v53, %v8307_v31  ;;  %v4441_v53 = vld [vmem:[#allocation2 + $0xc0] sm:$0xff] }
 0x4ba   : > { %316 = vst.msk [vmem:[#allocation3 + $0x118] sm:$0x3] %vm282_vm11, %v8287_v37 }
 0x4bb   : > { %4290 = vmatmul.msk.f32.gmra.mxu0 %vm2023_vm9, %v1992_v28  ;;  %4300 = vmatmul.msk.f32.gmra.mxu3 %vm2023_vm9, %v2002_v13  ;;  %v1765_v28 = vsel %vm223_vm0, %v4435_v47, %v8288_v46  ;;  %v1971_v13 = vsel %vm1948_vm8, %v1938_v24, %v5757_v63  ;;  %v1961_v63 = vsel %vm1948_vm8, %v1928_v14, %v8292_v59  ;;  %v8308_v24 = vld [vmem:[#allocation61_spill] sm:$0xff] }
 0x4bc   : > { %v1797_v38 = vsel %vm279_vm2, %v1765_v28, %v8289_v43  ;;  %v1994_v33 = vsel %vm1981_vm10, %v1961_v63, %v5873_v55  ;;  %v2004_v4 = vsel %vm1981_vm10, %v1971_v13, %v1701_v61  ;;  %v8297_v55 = vld [vmem:[#allocation125_spill] sm:$0xff]  ;;  %319 = vst.msk [vmem:[#allocation3 + $0x130] sm:$0x3] %vm282_vm11, %v8287_v37  ;;  %v1831_v47 = vsel %vm1816_vm4, %v1798_v39, %v8308_v24  ;;  %v8310_v13 = vld [vmem:[#allocation82_spill] sm:$0xff] }
 0x4bd   : > { %v1830_v8 = vsel %vm1816_vm4, %v1797_v38, %v8291_v27  ;;  %v1906_v3 = vsel %vm1882_vm6, %v1873_v26, %v8297_v55  ;;  %322 = vst.msk [vmem:[#allocation3 + $0x148] sm:$0x3] %vm282_vm11, %v8287_v37  ;;  %v8309_v46 = vld [vmem:[#allocation89_spill] sm:$0xff]  ;;  %v8311_v43 = vld [vmem:[#allocation118_spill] sm:$0xff]  ;;  %v8319_v26 = vld [vmem:[#allocation67_spill] sm:$0xff] }
 0x4be   : > { %v1863_v12 = vsel %vm1849_vm5, %v1830_v8, %v8294_v35  ;;  %v1864_v28 = vsel %vm1849_vm5, %v1831_v47, %v8309_v46  ;;  %325 = vst.msk [vmem:[#allocation3 + $0x160] sm:$0x3] %vm282_vm11, %v8287_v37  ;;  %v4439_v8 = vld [vmem:[#allocation2 + $0x128] sm:$0xff]  ;;  %v8314_v61 = vld [vmem:[#allocation14_spill] sm:$0xff]  ;;  %v4440_v63 = vld [vmem:[#allocation2 + $0xb0] sm:$0xff]  ;;  %v1705_v35 = vpop.permute.xlu2 %1704 }
 0x4bf   : > { %v1896_v42 = vsel %vm1882_vm6, %v1863_v12, %v8298_v21  ;;  %v1897_v38 = vsel %vm1882_vm6, %v1864_v28, %v8311_v43  ;;  %328 = vst.msk [vmem:[#allocation3 + $0x178] sm:$0x3] %vm282_vm11, %v8287_v37  ;;  %v1777_v59 = vsel %vm223_vm0, %v4439_v8, %v8314_v61  ;;  %v1767_v40 = vsel %vm223_vm0, %v4440_v63, %v8315_v44  ;;  %v8316_v12 = vld [vmem:[#allocation41_spill] sm:$0xff]  ;;  %v8330_v39 = vld [vmem:[#allocation38_spill] sm:$0xff]  ;;  %v8332_v28 = vld [vmem:[#allocation63_spill] sm:$0xff] }
 0x4c0   : > { %v1929_v45 = vsel %vm1915_vm7, %v1896_v42, %v8299_v51  ;;  %331 = vst.msk [vmem:[#allocation3 + $0x190] sm:$0x3] %vm282_vm11, %v8287_v37  ;;  %v1930_v54 = vsel %vm1915_vm7, %v1897_v38, %v8318_v30  ;;  %v8321_v42 = vld [vmem:[#allocation159_spill] sm:$0xff]  ;;  %v8322_v51 = vld [vmem:[#allocation168_spill] sm:$0xff]  ;;  %v4442_v24 = vld [vmem:[#allocation2 + $0x138] sm:$0xff] }
 0x4c1   : > { %v1962_v25 = vsel %vm1948_vm8, %v1929_v45, %v8302_v9  ;;  %334 = vst.msk [vmem:[#allocation3 + $0x1a8] sm:$0x3] %vm282_vm11, %v8287_v37  ;;  %v1963_v29 = vsel %vm1948_vm8, %v1930_v54, %v8321_v42  ;;  %v8323_v45 = vld [vmem:[#allocation104_spill] sm:$0xff]  ;;  %v8325_v9 = vld [vmem:[#allocation39_spill] sm:$0xff]  ;;  %v8331_v47 = vld [vmem:[#allocation25_spill] sm:$0xff]  ;;  %v1709_v42 = vpop.permute.xlu1 %1708 }
 0x4c2   : > { %v1995_v14 = vsel %vm1981_vm10, %v1962_v25, %v5906_v15  ;;  %v1996_v52 = vsel %vm1981_vm10, %v1963_v29, %v5890_v34  ;;  %v1768_v25 = vsel %vm223_vm0, %v4441_v53, %v8325_v9  ;;  %v6219_v34 = vld [vmem:[%s7987_s2] ss:$0 sm:$0xff]  ;;  %v1778_v46 = vsel %vm223_vm0, %v4442_v24, %v8331_v47  ;;  %v8333_v38 = vld [vmem:[#allocation157_spill] sm:$0xff]  ;;  %v4443_v54 = vld [vmem:[#allocation2 + $0x140] sm:$0xff] }
 0x4c3   : > { %4291 = vmatmul.msk.f32.gmra.mxu0 %vm2023_vm9, %v1993_v22  ;;  %4301 = vmatmul.msk.f32.gmra.mxu3 %vm2023_vm9, %v2003_v41  ;;  %v1808_v22 = vsel %vm279_vm2, %v1776_v57, %v8303_v6  ;;  %v8304_v41 = vld [vmem:[#allocation136_spill] sm:$0xff]  ;;  %v8343_v29 = vld [vmem:[#allocation53_spill] sm:$0xff]  ;;  %v8352_v24 = vld [vmem:[#allocation79_spill] sm:$0xff] }
 0x4c4   : > { %v1939_v1 = vsel %vm1915_vm7, %v1906_v3, %v8304_v41  ;;  %v1841_v11 = vsel %vm1816_vm4, %v1808_v22, %v8305_v48  ;;  %v8320_v3 = vld [vmem:[#allocation80_spill] sm:$0xff]  ;;  %v8327_v22 = vld [vmem:[#allocation109_spill] sm:$0xff]  ;;  %v8328_v48 = vld [vmem:[#allocation143_spill] sm:$0xff] }
 0x4c5   : > { %v1972_v50 = vsel %vm1948_vm8, %v1939_v1, %v8306_v19  ;;  %v1874_v15 = vsel %vm1849_vm5, %v1841_v11, %v8310_v13  ;;  %v2335_v1 = vld [vmem:[#allocation3 + $0x9] sm:$0xff] }
 0x4c6   : > { %v2005_v17 = vsel %vm1981_vm10, %v1972_v50, %v1703_v0  ;;  %v1907_v2 = vsel %vm1882_vm6, %v1874_v15, %v8312_v20  ;;  %v8326_v0 = vld [vmem:[#allocation114_spill] sm:$0xff]  ;;  %2625 = vrot.lane.b32.xlu2 %v2335_v1, %s4517_s10  ;;  %v1707_v15 = vpop.permute.xlu0 %1706  ;;  %v8348_v1 = vld [vmem:[#allocation123_spill] sm:$0xff] }
 0x4c7   : > { %v1940_v27 = vsel %vm1915_vm7, %v1907_v2, %v8313_v32  ;;  %v8329_v19 = vld [vmem:[#allocation146_spill] sm:$0xff]  ;;  %v8334_v2 = vld [vmem:[#allocation48_spill] sm:$0xff] }
 0x4c8   : > { %v1973_v37 = vsel %vm1948_vm8, %v1940_v27, %v8322_v51  ;;  %v8335_v32 = vld [vmem:[#allocation96_spill] sm:$0xff] }
 0x4c9   : > { %v2006_v57 = vsel %vm1981_vm10, %v1973_v37, %v1705_v35  ;;  %v8344_v37 = vld [vmem:[#allocation139_spill] sm:$0xff] }
 0x4cb   : > { %4292 = vmatmul.msk.f32.gmra.mxu0 %vm2023_vm9, %v1994_v33  ;;  %4302 = vmatmul.msk.f32.gmra.mxu3 %vm2023_vm9, %v2004_v4  ;;  %v1799_v33 = vsel %vm279_vm2, %v1767_v40, %v8316_v12  ;;  %v8317_v4 = vld [vmem:[#allocation51_spill] sm:$0xff]  ;;  %v8337_v40 = vld [vmem:[#allocation100_spill] sm:$0xff] }
 0x4cc   : > { %v1809_v60 = vsel %vm279_vm2, %v1777_v59, %v8317_v4  ;;  %v1832_v55 = vsel %vm1816_vm4, %v1799_v33, %v8319_v26  ;;  %v8336_v59 = vld [vmem:[#allocation76_spill] sm:$0xff]  ;;  %v8339_v4 = vld [vmem:[#allocation103_spill] sm:$0xff] }
 0x4cd   : > { %v1842_v21 = vsel %vm1816_vm4, %v1809_v60, %v8320_v3  ;;  %v1865_v62 = vsel %vm1849_vm5, %v1832_v55, %v8324_v23  ;;  %v8338_v12 = vld [vmem:[#allocation128_spill] sm:$0xff]  ;;  %v8342_v3 = vld [vmem:[#allocation166_spill] sm:$0xff]  ;;  %v8346_v23 = vld [vmem:[#allocation169_spill] sm:$0xff] }
 0x4ce   : > { %v1875_v10 = vsel %vm1849_vm5, %v1842_v21, %v8323_v45  ;;  %v1898_v6 = vsel %vm1882_vm6, %v1865_v62, %v8326_v0  ;;  %v8341_v26 = vld [vmem:[#allocation20_spill] sm:$0xff] }
 0x4cf   : > { %v1908_v41 = vsel %vm1882_vm6, %v1875_v10, %v8327_v22  ;;  %v1931_v11 = vsel %vm1915_vm7, %v1898_v6, %v8328_v48  ;;  %v1779_v55 = vsel %vm223_vm0, %v4443_v54, %v8341_v26  ;;  %v8347_v6 = vld [vmem:[#allocation84_spill] sm:$0xff]  ;;  %v8361_v26 = vld [vmem:[#allocation35_spill] sm:$0xff] }
 0x4d0   : > { %v1941_v50 = vsel %vm1915_vm7, %v1908_v41, %v8329_v19  ;;  %v1964_v20 = vsel %vm1948_vm8, %v1931_v11, %v8333_v38  ;;  %v1811_v51 = vsel %vm279_vm2, %v1779_v55, %v8343_v29  ;;  %v4444_v19 = vld [vmem:[#allocation2 + $0x150] sm:$0xff]  ;;  %v8354_v38 = vld [vmem:[#allocation112_spill] sm:$0xff]  ;;  %v8363_v29 = vld [vmem:[#allocation142_spill] sm:$0xff] }
 0x4d1   : > { %v1974_v31 = vsel %vm1948_vm8, %v1941_v50, %v5775_v16  ;;  %v1810_v16 = vsel %vm279_vm2, %v1778_v46, %v8334_v2  ;;  %v1997_v8 = vsel %vm1981_vm10, %v1964_v20, %v5910_v56  ;;  %v8340_v56 = vld [vmem:[#allocation138_spill] sm:$0xff]  ;;  %v8350_v50 = vld [vmem:[#allocation31_spill] sm:$0xff]  ;;  %v8355_v2 = vld [vmem:[#allocation148_spill] sm:$0xff] }
 0x4d2   : > { %v2007_v61 = vsel %vm1981_vm10, %v1974_v31, %v1707_v15  ;;  %v1843_v63 = vsel %vm1816_vm4, %v1810_v16, %v8336_v59  ;;  %v1780_v31 = vsel %vm223_vm0, %v4444_v19, %v8350_v50  ;;  %v4446_v54 = vld [vmem:[#allocation2 + $0x168] sm:$0xff]  ;;  %v8369_v19 = vld [vmem:[#allocation55_spill] sm:$0xff] }
 0x4d3   : > { %4293 = vmatmul.msk.f32.gmra.mxu0 %vm2023_vm9, %v1995_v14  ;;  %4303 = vmatmul.msk.f32.gmra.mxu3 %vm2023_vm9, %v2005_v17  ;;  %v1800_v14 = vsel %vm279_vm2, %v1768_v25, %v8330_v39  ;;  %v1876_v35 = vsel %vm1849_vm5, %v1843_v63, %v8337_v40  ;;  %v1711_v39 = vpop.permute.xlu2 %1710  ;;  %v1782_v55 = vsel %vm223_vm0, %v4446_v54, %v8361_v26 }
 0x4d4   : > { %v1833_v13 = vsel %vm1816_vm4, %v1800_v14, %v8332_v28  ;;  %v1909_v33 = vsel %vm1882_vm6, %v1876_v35, %v8338_v12  ;;  %v8351_v14 = vld [vmem:[#allocation50_spill] sm:$0xff]  ;;  %v8358_v12 = vld [vmem:[#allocation56_spill] sm:$0xff] }
 0x4d5   : > { %v1866_v27 = vsel %vm1849_vm5, %v1833_v13, %v8335_v32  ;;  %v1942_v45 = vsel %vm1915_vm7, %v1909_v33, %v8344_v37  ;;  %v8353_v28 = vld [vmem:[#allocation106_spill] sm:$0xff] }
 0x4d6   : > { %v1899_v60 = vsel %vm1882_vm6, %v1866_v27, %v8339_v4  ;;  %v1975_v62 = vsel %vm1948_vm8, %v1942_v45, %v8346_v23  ;;  %v4445_v32 = vld [vmem:[#allocation2 + $0x158] sm:$0xff]  ;;  %v8364_v45 = vld [vmem:[#allocation85_spill] sm:$0xff] }
 0x4d7   : > { %v1932_v30 = vsel %vm1915_vm7, %v1899_v60, %v8340_v56  ;;  %v2008_v25 = vsel %vm1981_vm10, %v1975_v62, %v1709_v42  ;;  %v8359_v60 = vld [vmem:[#allocation102_spill] sm:$0xff] }
 0x4d8   : > { %v1965_v21 = vsel %vm1948_vm8, %v1932_v30, %v8342_v3  ;;  %v8360_v30 = vld [vmem:[#allocation130_spill] sm:$0xff]  ;;  %v1715_v3 = vpop.permute.xlu1 %1714 }
 0x4d9   : > { %v1998_v9 = vsel %vm1981_vm10, %v1965_v21, %v5950_v7  ;;  %v8349_v7 = vld [vmem:[#allocation151_spill] sm:$0xff]  ;;  %v8362_v21 = vld [vmem:[#allocation52_spill] sm:$0xff] }
 0x4da   : > { %v1814_v42 = vsel %vm279_vm2, %v1782_v55, %v8362_v21 }
 0x4db   : > { %4294 = vmatmul.msk.f32.gmra.mxu0 %vm2023_vm9, %v1996_v52  ;;  %4304 = vmatmul.msk.f32.gmra.mxu3 %vm2023_vm9, %v2006_v57  ;;  %v8345_v52 = vld [vmem:[#allocation83_spill] sm:$0xff] }
 0x4dc   : > { %v1844_v57 = vsel %vm1816_vm4, %v1811_v51, %v8345_v52 }
 0x4dd   : > { %v1877_v22 = vsel %vm1849_vm5, %v1844_v57, %v8347_v6 }
 0x4de   : > { %v1910_v48 = vsel %vm1882_vm6, %v1877_v22, %v8348_v1  ;;  %v4447_v1 = vld [vmem:[#allocation2 + $0x170] sm:$0xff] }
 0x4df   : > { %v1943_v11 = vsel %vm1915_vm7, %v1910_v48, %v8349_v7  ;;  %v8368_v48 = vld [vmem:[#allocation32_spill] sm:$0xff] }
 0x4e0   : > { %v2141_v17 = vpop.f32.mrf.mxu0  ;;  %v1976_v46 = vsel %vm1948_vm8, %v1943_v11, %v5750_v36  ;;  %v8356_v36 = vld [vmem:[#allocation26_spill] sm:$0xff]  ;;  %v1783_v7 = vsel %vm223_vm0, %v4447_v1, %v8368_v48  ;;  %v1717_v11 = vpop.permute.xlu2 %1716 }
 0x4e1   : > { %v2142_v43 = vadd.f32 %v6219_v34, %v2141_v17  ;;  %v1812_v17 = vsel %vm279_vm2, %v1780_v31, %v8351_v14  ;;  %v2009_v15 = vsel %vm1981_vm10, %v1976_v46, %v1711_v39  ;;  %v1781_v27 = vsel %vm223_vm0, %v4445_v32, %v8356_v36  ;;  %v8370_v39 = vld [vmem:[#allocation81_spill] sm:$0xff] }
 0x4e2   : > { %v1845_v47 = vsel %vm1816_vm4, %v1812_v17, %v8352_v24  ;;  %v1815_v50 = vsel %vm279_vm2, %v1783_v7, %v8369_v19  ;;  %vm3888_vm0 = vcmask 588800  }
 0x4e3   : > { %v2237_v44 = vmax.f32 %v2142_v43, 0.0  ;;  %4295 = vmatmul.msk.f32.gmra.mxu0 %vm2023_vm9, %v1997_v8  ;;  %4305 = vmatmul.msk.f32.gmra.mxu3 %vm2023_vm9, %v2007_v61  ;;  %v1878_v13 = vsel %vm1849_vm5, %v1845_v47, %v8353_v28  ;;  %v8357_v61 = vld [vmem:[#allocation54_spill] sm:$0xff]  ;;  %v1848_v14 = vsel %vm1816_vm4, %v1815_v50, %v8370_v39  ;;  %v8371_v47 = vld [vmem:[#allocation108_spill] sm:$0xff] }
 0x4e4   : > { %v1911_v20 = vsel %vm1882_vm6, %v1878_v13, %v8354_v38  ;;  %v1813_v59 = vsel %vm279_vm2, %v1781_v27, %v8357_v61  ;;  %v1881_v46 = vsel %vm1849_vm5, %v1848_v14, %v8371_v47  ;;  %v8372_v38 = vld [vmem:[#allocation115_spill] sm:$0xff] }
 0x4e5   : > { %2270 = vst.msk [vmem:[#allocation3 + $0x19] sm:$0xff] %vm279_vm2, %v2237_v44  ;;  %v1944_v16 = vsel %vm1915_vm7, %v1911_v20, %v8355_v2  ;;  %v1713_v44 = vpop.permute.xlu0 %1712  ;;  %v1846_v33 = vsel %vm1816_vm4, %v1813_v59, %v8358_v12  ;;  %v1914_v20 = vsel %vm1882_vm6, %v1881_v46, %v8372_v38  ;;  %v8373_v2 = vld [vmem:[#allocation150_spill] sm:$0xff] }
 0x4e6   : > { %v1977_v8 = vsel %vm1948_vm8, %v1944_v16, %v5789_v5  ;;  %v1879_v56 = vsel %vm1849_vm5, %v1846_v33, %v8359_v60 }
 0x4e7   : > { %v2010_v35 = vsel %vm1981_vm10, %v1977_v8, %v1713_v44  ;;  %v1912_v5 = vsel %vm1882_vm6, %v1879_v56, %v8360_v30 }
 0x4e8   : > { %v2144_v10 = vpop.f32.mrf.mxu0  ;;  %v1945_v51 = vsel %vm1915_vm7, %v1912_v5, %v8363_v29 }
 0x4e9   : > { %v2145_v53 = vadd.f32 %v6219_v34, %v2144_v10  ;;  %v1847_v10 = vsel %vm1816_vm4, %v1814_v42, %v8364_v45  ;;  %v1978_v52 = vsel %vm1948_vm8, %v1945_v51, %v5759_v49  ;;  %v8367_v49 = vld [vmem:[#allocation153_spill] sm:$0xff] }
 0x4ea   : > { %v2011_v23 = vsel %vm1981_vm10, %v1978_v52, %v1715_v3 }
 0x4eb   : > { %v2238_v0 = vmax.f32 %v2145_v53, 0.0  ;;  %4296 = vmatmul.msk.f32.gmra.mxu0 %vm2023_vm9, %v1998_v9  ;;  %4306 = vmatmul.msk.f32.gmra.mxu3 %vm2023_vm9, %v2008_v25  ;;  %v8365_v53 = vld [vmem:[#allocation86_spill] sm:$0xff] }
 0x4ec   : > { %v6277_v41 = vld [vmem:[#allocation3 + $0x19] sm:$0xff]  ;;  %v1880_v9 = vsel %vm1849_vm5, %v1847_v10, %v8365_v53 }
 0x4ed   : > { %2271 = vst.msk [vmem:[#allocation3 + $0x21] sm:$0xff] %vm279_vm2, %v2238_v0  ;;  %2627 = vrot.lane.b32.xlu0 %v6277_v41, %s4517_s10  ;;  %v8366_v0 = vld [vmem:[#allocation126_spill] sm:$0xff]  ;;  %v1719_v32 = vpop.permute.xlu0 %1718 }
 0x4ee   : > { %v1913_v6 = vsel %vm1882_vm6, %v1880_v9, %v8366_v0 }
 0x4ef   : > { %v1946_v22 = vsel %vm1915_vm7, %v1913_v6, %v8367_v49 }
 0x4f0   : > { %v1979_v24 = vsel %vm1948_vm8, %v1946_v22, %v5769_v18  ;;  %v1947_v18 = vsel %vm1915_vm7, %v1914_v20, %v8373_v2 }
 0x4f1   : > { %v2012_v28 = vsel %vm1981_vm10, %v1979_v24, %v1717_v11  ;;  %v1980_v16 = vsel %vm1948_vm8, %v1947_v18, %v5796_v58 }
 0x4f2   : > { %v2013_v8 = vsel %vm1981_vm10, %v1980_v16, %v1719_v32 }
 0x4f3   : > { %4307 = vmatmul.msk.f32.gmra.mxu3 %vm2023_vm9, %v2009_v15 }
 0x4f4   : > { %v6298_v43 = vld [vmem:[#allocation3 + $0x21] sm:$0xff] }
 0x4f5   : > { %2629 = vrot.lane.b32.xlu1 %v6298_v43, %s4517_s10 }
 0x4f8   : > { %v2147_v63 = vpop.f32.mrf.mxu0 }
 0x4f9   : > { %v2148_v40 = vadd.f32 %v6219_v34, %v2147_v63 }
 0x4fb   : > { %v2239_v4 = vmax.f32 %v2148_v40, 0.0  ;;  %4308 = vmatmul.msk.f32.gmra.mxu3 %vm2023_vm9, %v2010_v35 }
 0x4fd   : > { %2272 = vst.msk [vmem:[#allocation3 + $0x31] sm:$0xff] %vm279_vm2, %v2239_v4 }
 0x500   : > { %v2150_v37 = vpop.f32.mrf.mxu0 }
 0x501   : > { %v2151_v57 = vadd.f32 %v6219_v34, %v2150_v37 }
 0x503   : > { %v2240_v62 = vmax.f32 %v2151_v57, 0.0  ;;  %4309 = vmatmul.msk.f32.gmra.mxu3 %vm2023_vm9, %v2011_v23 }
 0x504   : > { %v6337_v25 = vld [vmem:[#allocation3 + $0x31] sm:$0xff] }
 0x505   : > { %2273 = vst.msk [vmem:[#allocation3 + $0x39] sm:$0xff] %vm279_vm2, %v2240_v62  ;;  %2631 = vrot.lane.b32.xlu2 %v6337_v25, %s4517_s10 }
 0x508   : > { %v2153_v31 = vpop.f32.mrf.mxu0 }
 0x509   : > { %v2154_v17 = vadd.f32 %v6219_v34, %v2153_v31 }
 0x50b   : > { %v2241_v13 = vmax.f32 %v2154_v17, 0.0  ;;  %4310 = vmatmul.msk.f32.gmra.mxu3 %vm2023_vm9, %v2012_v28 }
 0x50c   : > { %v6359_v15 = vld [vmem:[#allocation3 + $0x39] sm:$0xff] }
 0x50d   : > { %2274 = vst.msk [vmem:[#allocation3 + $0x49] sm:$0xff] %vm279_vm2, %v2241_v13  ;;  %2633 = vrot.lane.b32.xlu0 %v6359_v15, %s4517_s10 }
 0x510   : > { %v2156_v36 = vpop.f32.mrf.mxu0 }
 0x511   : > { %v2157_v27 = vadd.f32 %v6219_v34, %v2156_v36 }
 0x513   : > { %v2242_v61 = vmax.f32 %v2157_v27, 0.0  ;;  %4311 = vmatmul.msk.f32.gmra.mxu3 %vm2023_vm9, %v2013_v8 }
 0x514   : > { %v6373_v59 = vld [vmem:[#allocation3 + $0x49] sm:$0xff] }
 0x515   : > { %2275 = vst.msk [vmem:[#allocation3 + $0x51] sm:$0xff] %vm279_vm2, %v2242_v61  ;;  %2635 = vrot.lane.b32.xlu1 %v6373_v59, %s4517_s10 }
 0x518   : > { %v2159_v63 = vpop.f32.mrf.mxu0 }
 0x519   : > { %v2160_v44 = vadd.f32 %v6219_v34, %v2159_v63 }
 0x51b   : > { %v2243_v58 = vmax.f32 %v2160_v44, 0.0 }
 0x51c   : > { %v6379_v40 = vld [vmem:[#allocation3 + $0x51] sm:$0xff] }
 0x51d   : > { %2276 = vst.msk [vmem:[#allocation3 + $0x61] sm:$0xff] %vm279_vm2, %v2243_v58  ;;  %2637 = vrot.lane.b32.xlu2 %v6379_v40, %s4517_s10 }
 0x520   : > { %v2162_v35 = vpop.f32.mrf.mxu0 }
 0x521   : > { %v2163_v12 = vadd.f32 %v6219_v34, %v2162_v35 }
 0x523   : > { %v2244_v33 = vmax.f32 %v2163_v12, 0.0 }
 0x524   : > { %v6385_v4 = vld [vmem:[#allocation3 + $0x61] sm:$0xff] }
 0x525   : > { %2277 = vst.msk [vmem:[#allocation3 + $0x69] sm:$0xff] %vm279_vm2, %v2244_v33  ;;  %2639 = vrot.lane.b32.xlu0 %v6385_v4, %s4517_s10 }
 0x526   : > { %v2192_v60 = vpop.f32.mrf.mxu3 }
 0x527   : > { %v2193_v56 = vadd.f32 %v6219_v34, %v2192_v60 }
 0x528   : > { %v2165_v30 = vpop.f32.mrf.mxu0 }
 0x529   : > { %v2254_v5 = vmax.f32 %v2193_v56, 0.0  ;;  %v2166_v54 = vadd.f32 %v6219_v34, %v2165_v30 }
 0x52b   : > { %2287 = vst.msk [vmem:[#allocation3 + $0xe1] sm:$0xff] %vm279_vm2, %v2254_v5  ;;  %v2245_v26 = vmax.f32 %v2166_v54, 0.0 }
 0x52c   : > { %v6393_v55 = vld [vmem:[#allocation3 + $0x69] sm:$0xff] }
 0x52d   : > { %2278 = vst.msk [vmem:[#allocation3 + $0x79] sm:$0xff] %vm279_vm2, %v2245_v26  ;;  %2641 = vrot.lane.b32.xlu1 %v6393_v55, %s4517_s10 }
 0x52e   : > { %v2195_v3 = vpop.f32.mrf.mxu3 }
 0x52f   : > { %v2196_v21 = vadd.f32 %v6219_v34, %v2195_v3 }
 0x530   : > { %v2168_v42 = vpop.f32.mrf.mxu0 }
 0x531   : > { %v2255_v29 = vmax.f32 %v2196_v21, 0.0  ;;  %v2169_v51 = vadd.f32 %v6219_v34, %v2168_v42 }
 0x532   : > { %v6459_v21 = vld [vmem:[#allocation3 + $0xe1] sm:$0xff] }
 0x533   : > { %2288 = vst.msk [vmem:[#allocation3 + $0xf1] sm:$0xff] %vm279_vm2, %v2255_v29  ;;  %v2246_v37 = vmax.f32 %v2169_v51, 0.0 }
 0x534   : > { %v6401_v45 = vld [vmem:[#allocation3 + $0x79] sm:$0xff] }
 0x535   : > { %2279 = vst.msk [vmem:[#allocation3 + $0x81] sm:$0xff] %vm279_vm2, %v2246_v37  ;;  %2643 = vrot.lane.b32.xlu2 %v6401_v45, %s4517_s10 }
 0x536   : > { %v2198_v10 = vpop.f32.mrf.mxu3 }
 0x537   : > { %v2199_v52 = vadd.f32 %v6219_v34, %v2198_v10 }
 0x538   : > { %v2171_v57 = vpop.f32.mrf.mxu0 }
 0x539   : > { %v2256_v23 = vmax.f32 %v2199_v52, 0.0  ;;  %v2172_v62 = vadd.f32 %v6219_v34, %v2171_v57 }
 0x53a   : > { %v6468_v37 = vld [vmem:[#allocation3 + $0xf1] sm:$0xff] }
 0x53b   : > { %2289 = vst.msk [vmem:[#allocation3 + $0xf9] sm:$0xff] %vm279_vm2, %v2256_v23  ;;  %v2247_v53 = vmax.f32 %v2172_v62, 0.0 }
 0x53c   : > { %v6409_v9 = vld [vmem:[#allocation3 + $0x81] sm:$0xff] }
 0x53d   : > { %2280 = vst.msk [vmem:[#allocation3 + $0x91] sm:$0xff] %vm279_vm2, %v2247_v53  ;;  %2645 = vrot.lane.b32.xlu0 %v6409_v9, %s4517_s10 }
 0x53e   : > { %v2201_v0 = vpop.f32.mrf.mxu3 }
 0x53f   : > { %v2202_v6 = vadd.f32 %v6219_v34, %v2201_v0 }
 0x540   : > { %v2174_v49 = vpop.f32.mrf.mxu0 }
 0x541   : > { %v2257_v22 = vmax.f32 %v2202_v6, 0.0  ;;  %v2175_v1 = vadd.f32 %v6219_v34, %v2174_v49 }
 0x542   : > { %v6484_v0 = vld [vmem:[#allocation3 + $0xf9] sm:$0xff] }
 0x543   : > { %2290 = vst.msk [vmem:[#allocation3 + $0x109] sm:$0xff] %vm279_vm2, %v2257_v22  ;;  %v2248_v48 = vmax.f32 %v2175_v1, 0.0 }
 0x544   : > { %v6417_v7 = vld [vmem:[#allocation3 + $0x91] sm:$0xff] }
 0x545   : > { %2281 = vst.msk [vmem:[#allocation3 + $0x99] sm:$0xff] %vm279_vm2, %v2248_v48  ;;  %2647 = vrot.lane.b32.xlu1 %v6417_v7, %s4517_s10 }
 0x546   : > { %v2204_v11 = vpop.f32.mrf.mxu3 }
 0x547   : > { %v2205_v19 = vadd.f32 %v6219_v34, %v2204_v11 }
 0x548   : > { %v2177_v50 = vpop.f32.mrf.mxu0 }
 0x549   : > { %v2258_v31 = vmax.f32 %v2205_v19, 0.0  ;;  %v2178_v39 = vadd.f32 %v6219_v34, %v2177_v50 }
 0x54a   : > { %v6476_v52 = vld [vmem:[#allocation3 + $0x109] sm:$0xff] }
 0x54b   : > { %2291 = vst.msk [vmem:[#allocation3 + $0x111] sm:$0xff] %vm279_vm2, %v2258_v31  ;;  %v2249_v14 = vmax.f32 %v2178_v39, 0.0 }
 0x54c   : > { %v6425_v17 = vld [vmem:[#allocation3 + $0x99] sm:$0xff] }
 0x54d   : > { %2282 = vst.msk [vmem:[#allocation3 + $0xa9] sm:$0xff] %vm279_vm2, %v2249_v14  ;;  %2649 = vrot.lane.b32.xlu2 %v6425_v17, %s4517_s10 }
 0x54e   : > { %v2207_v24 = vpop.f32.mrf.mxu3 }
 0x54f   : > { %v2208_v47 = vadd.f32 %v6219_v34, %v2207_v24 }
 0x550   : > { %v2180_v46 = vpop.f32.mrf.mxu0 }
 0x551   : > { %v2259_v28 = vmax.f32 %v2208_v47, 0.0  ;;  %v2181_v13 = vadd.f32 %v6219_v34, %v2180_v46 }
 0x552   : > { %v6482_v53 = vld [vmem:[#allocation3 + $0x111] sm:$0xff] }
 0x553   : > { %2292 = vst.msk [vmem:[#allocation3 + $0x121] sm:$0xff] %vm279_vm2, %v2259_v28  ;;  %v2250_v38 = vmax.f32 %v2181_v13, 0.0 }
 0x554   : > { %v6433_v20 = vld [vmem:[#allocation3 + $0xa9] sm:$0xff] }
 0x555   : > { %2283 = vst.msk [vmem:[#allocation3 + $0xb1] sm:$0xff] %vm279_vm2, %v2250_v38  ;;  %2651 = vrot.lane.b32.xlu0 %v6433_v20, %s4517_s10  ;;  %v2366_v38 = vld [vmem:[#allocation3 + $0x2] sm:$0xff] }
 0x556   : > { %v2210_v2 = vpop.f32.mrf.mxu3 }
 0x557   : > { %v2211_v18 = vadd.f32 %v6219_v34, %v2210_v2 }
 0x558   : > { %v2183_v16 = vpop.f32.mrf.mxu0 }
 0x559   : > { %v2260_v32 = vmax.f32 %v2211_v18, 0.0  ;;  %v2184_v36 = vadd.f32 %v6219_v34, %v2183_v16  ;;  %v6526_v18 = vpop.permute.xlu2 %2625 }
 0x55a   : > { %v6498_v11 = vld [vmem:[#allocation3 + $0x121] sm:$0xff]  ;;  %8374 = vst [vmem:[#allocation15_spill] sm:$0xff] %v6526_v18 }
 0x55b   : > { %2293 = vst.msk [vmem:[#allocation3 + $0x129] sm:$0xff] %vm279_vm2, %v2260_v32  ;;  %v2251_v27 = vmax.f32 %v2184_v36, 0.0 }
 0x55c   : > { %v6441_v8 = vld [vmem:[#allocation3 + $0xb1] sm:$0xff] }
 0x55d   : > { %2284 = vst.msk [vmem:[#allocation3 + $0xc1] sm:$0xff] %vm279_vm2, %v2251_v27  ;;  %2653 = vrot.lane.b32.xlu1 %v6441_v8, %s4517_s10  ;;  %v6532_v27 = vld [vmem:[#allocation3 + $0x1a] sm:$0xff] }
 0x55e   : > { %v2213_v61 = vpop.f32.mrf.mxu3 }
 0x55f   : > { %v2214_v63 = vadd.f32 %v6219_v34, %v2213_v61  ;;  %v2367_v61 = vld [vmem:[#allocation3 + $0xa] sm:$0xff] }
 0x560   : > { %v2186_v44 = vpop.f32.mrf.mxu0 }
 0x561   : > { %v2261_v58 = vmax.f32 %v2214_v63, 0.0  ;;  %v2187_v35 = vadd.f32 %v6219_v34, %v2186_v44  ;;  %v6537_v63 = vld [vmem:[#allocation3 + $0x22] sm:$0xff]  ;;  %v6542_v44 = vpop.permute.xlu2 %2631 }
 0x562   : > { %v6490_v6 = vld [vmem:[#allocation3 + $0x129] sm:$0xff]  ;;  %8375 = vst [vmem:[#allocation36_spill] sm:$0xff] %v6542_v44 }
 0x563   : > { %2294 = vst.msk [vmem:[#allocation3 + $0x139] sm:$0xff] %vm279_vm2, %v2261_v58  ;;  %v2252_v12 = vmax.f32 %v2187_v35, 0.0  ;;  %v6544_v58 = vld [vmem:[#allocation3 + $0x3a] sm:$0xff]  ;;  %v6550_v35 = vld [vmem:[#allocation3 + $0x32] sm:$0xff] }
 0x564   : > { %v6449_v33 = vld [vmem:[#allocation3 + $0xc1] sm:$0xff] }
 0x565   : > { %2285 = vst.msk [vmem:[#allocation3 + $0xc9] sm:$0xff] %vm279_vm2, %v2252_v12  ;;  %2655 = vrot.lane.b32.xlu2 %v6449_v33, %s4517_s10 }
 0x566   : > { %v2216_v60 = vpop.f32.mrf.mxu3 }
 0x567   : > { %v2217_v56 = vadd.f32 %v6219_v34, %v2216_v60  ;;  %v6558_v60 = vld [vmem:[#allocation3 + $0x62] sm:$0xff] }
 0x568   : > { %v2189_v30 = vpop.f32.mrf.mxu0 }
 0x569   : > { %v2262_v5 = vmax.f32 %v2217_v56, 0.0  ;;  %v2190_v54 = vadd.f32 %v6219_v34, %v2189_v30  ;;  %v6562_v56 = vld [vmem:[#allocation3 + $0x6a] sm:$0xff]  ;;  %v6564_v30 = vld [vmem:[#allocation3 + $0x52] sm:$0xff] }
 0x56a   : > { %v6496_v48 = vld [vmem:[#allocation3 + $0x139] sm:$0xff] }
 0x56b   : > { %2295 = vst.msk [vmem:[#allocation3 + $0x141] sm:$0xff] %vm279_vm2, %v2262_v5  ;;  %v2253_v26 = vmax.f32 %v2190_v54, 0.0  ;;  %v6572_v54 = vld [vmem:[#allocation3 + $0x82] sm:$0xff] }
 0x56c   : > { %v6457_v3 = vld [vmem:[#allocation3 + $0xc9] sm:$0xff] }
 0x56d   : > { %2286 = vst.msk [vmem:[#allocation3 + $0xd9] sm:$0xff] %vm279_vm2, %v2253_v26  ;;  %2657 = vrot.lane.b32.xlu0 %v6457_v3, %s4517_s10  ;;  %2661 = vrot.lane.b32.xlu2 %v6459_v21, %s4517_s10  ;;  %v6576_v26 = vpop.permute.xlu1 %2623 }
 0x56e   : > { %v2219_v42 = vpop.f32.mrf.mxu3  ;;  %8378 = vst [vmem:[#allocation120_spill] sm:$0xff] %v6576_v26 }
 0x56f   : > { %v2220_v29 = vadd.f32 %v6219_v34, %v2219_v42  ;;  %v6578_v42 = vld [vmem:[#allocation3 + $0x92] sm:$0xff] }
 0x571   : > { %v2263_v51 = vmax.f32 %v2220_v29, 0.0  ;;  %v6580_v29 = vld [vmem:[#allocation3 + $0x7a] sm:$0xff] }
 0x572   : > { %v6512_v24 = vld [vmem:[#allocation3 + $0x141] sm:$0xff] }
 0x573   : > { %2296 = vst.msk [vmem:[#allocation3 + $0x151] sm:$0xff] %vm279_vm2, %v2263_v51  ;;  %v6586_v51 = vpop.permute.xlu0 %2627  ;;  %v6660_v44 = vld [vmem:[#allocation3 + $0x13a] sm:$0xff] }
 0x574   : > { %v6470_v10 = vld [vmem:[#allocation3 + $0xd9] sm:$0xff]  ;;  %8379 = vst [vmem:[#allocation92_spill] sm:$0xff] %v6586_v51 }
 0x575   : > { %2663 = vrot.lane.b32.xlu0 %v6468_v37, %s4517_s10  ;;  %2659 = vrot.lane.b32.xlu1 %v6470_v10, %s4517_s10 }
 0x576   : > { %2667 = vrot.lane.b32.xlu2 %v6476_v52, %s4517_s10  ;;  %v2222_v57 = vpop.f32.mrf.mxu3 }
 0x577   : > { %v2223_v23 = vadd.f32 %v6219_v34, %v2222_v57  ;;  %v6556_v12 = vpop.permute.xlu2 %2637 }
 0x578   : > { %8376 = vst [vmem:[#allocation43_spill] sm:$0xff] %v6556_v12  ;;  %v6650_v12 = vld [vmem:[#allocation3 + $0x10a] sm:$0xff] }
 0x579   : > { %v2264_v62 = vmax.f32 %v2223_v23, 0.0  ;;  %v6590_v23 = vld [vmem:[#allocation3 + $0xaa] sm:$0xff] }
 0x57a   : > { %v6504_v19 = vld [vmem:[#allocation3 + $0x151] sm:$0xff] }
 0x57b   : > { %2297 = vst.msk [vmem:[#allocation3 + $0x159] sm:$0xff] %vm279_vm2, %v2264_v62  ;;  %v6594_v62 = vld [vmem:[#allocation3 + $0xb2] sm:$0xff] }
 0x57d   : > { %2669 = vrot.lane.b32.xlu0 %v6482_v53, %s4517_s10  ;;  %2665 = vrot.lane.b32.xlu1 %v6484_v0, %s4517_s10 }
 0x57e   : > { %2673 = vrot.lane.b32.xlu2 %v6490_v6, %s4517_s10  ;;  %v2225_v49 = vpop.f32.mrf.mxu3 }
 0x57f   : > { %v2226_v22 = vadd.f32 %v6219_v34, %v2225_v49  ;;  %v6596_v49 = vld [vmem:[#allocation3 + $0x9a] sm:$0xff] }
 0x581   : > { %v2265_v1 = vmax.f32 %v2226_v22, 0.0  ;;  %v6602_v22 = vpop.permute.xlu1 %2629 }
 0x582   : > { %v6510_v14 = vld [vmem:[#allocation3 + $0x159] sm:$0xff]  ;;  %8381 = vst [vmem:[#allocation8_spill] sm:$0xff] %v6602_v22 }
 0x583   : > { %2298 = vst.msk [vmem:[#allocation3 + $0x169] sm:$0xff] %vm279_vm2, %v2265_v1  ;;  %v6604_v1 = vpop.permute.xlu0 %2633  ;;  %v6678_v22 = vld [vmem:[#allocation3 + $0x15a] sm:$0xff] }
 0x584   : > { %8382 = vst [vmem:[#allocation17_spill] sm:$0xff] %v6604_v1  ;;  %v6648_v1 = vld [vmem:[#allocation3 + $0x122] sm:$0xff] }
 0x585   : > { %2675 = vrot.lane.b32.xlu0 %v6496_v48, %s4517_s10  ;;  %2671 = vrot.lane.b32.xlu1 %v6498_v11, %s4517_s10  ;;  %8396 = vst [vmem:[#allocation12_spill] sm:$0xff] %v6678_v22 }
 0x586   : > { %2679 = vrot.lane.b32.xlu2 %v6504_v19, %s4517_s10  ;;  %v2228_v50 = vpop.f32.mrf.mxu3 }
 0x587   : > { %v2229_v31 = vadd.f32 %v6219_v34, %v2228_v50 }
 0x589   : > { %v2266_v39 = vmax.f32 %v2229_v31, 0.0  ;;  %v6608_v31 = vld [vmem:[#allocation3 + $0xca] sm:$0xff] }
 0x58a   : > { %v6524_v2 = vld [vmem:[#allocation3 + $0x169] sm:$0xff] }
 0x58b   : > { %2299 = vst.msk [vmem:[#allocation3 + $0x171] sm:$0xff] %vm279_vm2, %v2266_v39  ;;  %v6612_v39 = vld [vmem:[#allocation3 + $0xda] sm:$0xff] }
 0x58d   : > { %2681 = vrot.lane.b32.xlu0 %v6510_v14, %s4517_s10  ;;  %2677 = vrot.lane.b32.xlu1 %v6512_v24, %s4517_s10 }
 0x58e   : > { %v2231_v47 = vpop.f32.mrf.mxu3 }
 0x58f   : > { %v2232_v46 = vadd.f32 %v6219_v34, %v2231_v47  ;;  %v6570_v5 = vpop.permute.xlu2 %2643  ;;  %v6614_v47 = vld [vmem:[#allocation3 + $0xc2] sm:$0xff] }
 0x590   : > { %8377 = vst [vmem:[#allocation91_spill] sm:$0xff] %v6570_v5  ;;  %v6644_v5 = vld [vmem:[#allocation3 + $0x112] sm:$0xff] }
 0x591   : > { %v2267_v28 = vmax.f32 %v2232_v46, 0.0  ;;  %v6620_v46 = vpop.permute.xlu1 %2635 }
 0x592   : > { %v6519_v13 = vld [vmem:[#allocation3 + $0x171] sm:$0xff]  ;;  %8384 = vst [vmem:[#allocation40_spill] sm:$0xff] %v6620_v46 }
 0x593   : > { %2300 = vst.msk [vmem:[#allocation3 + $0x181] sm:$0xff] %vm279_vm2, %v2267_v28  ;;  %2685 = vrot.lane.b32.xlu2 %v6519_v13, %s4517_s10  ;;  %v6668_v46 = vld [vmem:[#allocation3 + $0x12a] sm:$0xff] }
 0x595   : > { %2751 = vrot.lane.b32.xlu0 %v2366_v38, %s4520_s13  ;;  %2683 = vrot.lane.b32.xlu1 %v6524_v2, %s4517_s10  ;;  %s4525_s10 = smov 40  }
 0x596   : > { %v2234_v16 = vpop.f32.mrf.mxu3 }
 0x597   : > { %v2235_v32 = vadd.f32 %v6219_v34, %v2234_v16  ;;  %v6548_v34 = vld [vmem:[#allocation3 + $0x4a] sm:$0xff]  ;;  %v6622_v28 = vpop.permute.xlu0 %2639  ;;  %v6626_v16 = vld [vmem:[#allocation3 + $0xf2] sm:$0xff] }
 0x598   : > { %8385 = vst [vmem:[#allocation131_spill] sm:$0xff] %v6622_v28 }
 0x599   : > { %v2268_v36 = vmax.f32 %v2235_v32, 0.0  ;;  %v6630_v32 = vld [vmem:[#allocation3 + $0xfa] sm:$0xff] }
 0x59b   : > { %2301 = vst.msk [vmem:[#allocation3 + $0x189] sm:$0xff] %vm279_vm2, %v2268_v36  ;;  %2755 = vrot.lane.b32.xlu2 %v6532_v27, %s4520_s13  ;;  %v6632_v36 = vld [vmem:[#allocation3 + $0xe2] sm:$0xff] }
 0x59d   : > { %2757 = vrot.lane.b32.xlu0 %v6537_v63, %s4520_s13  ;;  %2753 = vrot.lane.b32.xlu1 %v2367_v61, %s4520_s13 }
 0x59f   : > { %v6638_v61 = vpop.permute.xlu1 %2641 }
 0x5a0   : > { %8387 = vst [vmem:[#allocation162_spill] sm:$0xff] %v6638_v61  ;;  %v6666_v61 = vld [vmem:[#allocation3 + $0x142] sm:$0xff] }
 0x5a1   : > { %8393 = vst [vmem:[#allocation117_spill] sm:$0xff] %v6666_v61 }
 0x5a3   : > { %2761 = vrot.lane.b32.xlu2 %v6544_v58, %s4520_s13 }
 0x5a5   : > { %2763 = vrot.lane.b32.xlu0 %v6548_v34, %s4520_s13  ;;  %2759 = vrot.lane.b32.xlu1 %v6550_v35, %s4520_s13 }
 0x5a7   : > { %v6588_v57 = vpop.permute.xlu2 %2649 }
 0x5a8   : > { %8380 = vst [vmem:[#allocation132_spill] sm:$0xff] %v6588_v57 }
 0x5ab   : > { %2767 = vrot.lane.b32.xlu2 %v6558_v60, %s4520_s13 }
 0x5ad   : > { %2769 = vrot.lane.b32.xlu0 %v6562_v56, %s4520_s13  ;;  %2765 = vrot.lane.b32.xlu1 %v6564_v30, %s4520_s13 }
 0x5af   : > { %v6640_v57 = vpop.permute.xlu0 %2645 }
 0x5b0   : > { %8388 = vst [vmem:[#allocation16_spill] sm:$0xff] %v6640_v57 }
 0x5b3   : > { %2773 = vrot.lane.b32.xlu2 %v6572_v54, %s4520_s13 }
 0x5b5   : > { %2775 = vrot.lane.b32.xlu0 %v6578_v42, %s4520_s13  ;;  %2771 = vrot.lane.b32.xlu1 %v6580_v29, %s4520_s13 }
 0x5b7   : > { %v6656_v51 = vpop.permute.xlu1 %2647 }
 0x5b8   : > { %8390 = vst [vmem:[#allocation87_spill] sm:$0xff] %v6656_v51 }
 0x5bb   : > { %2779 = vrot.lane.b32.xlu2 %v6590_v23, %s4520_s13 }
 0x5bd   : > { %2781 = vrot.lane.b32.xlu0 %v6594_v62, %s4520_s13  ;;  %2777 = vrot.lane.b32.xlu1 %v6596_v49, %s4520_s13 }
 0x5bf   : > { %v6606_v50 = vpop.permute.xlu2 %2655 }
 0x5c0   : > { %8383 = vst [vmem:[#allocation158_spill] sm:$0xff] %v6606_v50 }
 0x5c3   : > { %2785 = vrot.lane.b32.xlu2 %v6608_v31, %s4520_s13 }
 0x5c5   : > { %2787 = vrot.lane.b32.xlu0 %v6612_v39, %s4520_s13  ;;  %2783 = vrot.lane.b32.xlu1 %v6614_v47, %s4520_s13 }
 0x5c7   : > { %v6624_v38 = vpop.permute.xlu2 %2661  ;;  %v6658_v57 = vpop.permute.xlu0 %2651 }
 0x5c8   : > { %8386 = vst [vmem:[#allocation66_spill] sm:$0xff] %v6624_v38 }
 0x5c9   : > { %8391 = vst [vmem:[#allocation74_spill] sm:$0xff] %v6658_v57 }
 0x5cb   : > { %2791 = vrot.lane.b32.xlu2 %v6626_v16, %s4520_s13 }
 0x5cd   : > { %2793 = vrot.lane.b32.xlu0 %v6630_v32, %s4520_s13  ;;  %2789 = vrot.lane.b32.xlu1 %v6632_v36, %s4520_s13 }
 0x5cf   : > { %v6674_v51 = vpop.permute.xlu1 %2653 }
 0x5d0   : > { %v6642_v28 = vpop.permute.xlu2 %2667  ;;  %8394 = vst [vmem:[#allocation145_spill] sm:$0xff] %v6674_v51  ;;  %v6696_v51 = vld [vmem:[#allocation3 + $0x18] sm:$0xff] }
 0x5d1   : > { %8389 = vst [vmem:[#allocation57_spill] sm:$0xff] %v6642_v28  ;;  %v6684_v28 = vld [vmem:[#allocation3 + $0x152] sm:$0xff] }
 0x5d2   : > { %8398 = vst [vmem:[#allocation45_spill] sm:$0xff] %v6684_v28 }
 0x5d3   : > { %2797 = vrot.lane.b32.xlu2 %v6644_v5, %s4520_s13  ;;  %8402 = vst [vmem:[#allocation154_spill] sm:$0xff] %v6696_v51 }
 0x5d5   : > { %2799 = vrot.lane.b32.xlu0 %v6648_v1, %s4520_s13  ;;  %2795 = vrot.lane.b32.xlu1 %v6650_v12, %s4520_s13 }
 0x5d8   : > { %v6662_v18 = vpop.permute.xlu2 %2673 }
 0x5d9   : > { %8392 = vst [vmem:[#allocation113_spill] sm:$0xff] %v6662_v18  ;;  %v6682_v18 = vld [vmem:[#allocation3 + $0x16a] sm:$0xff] }
 0x5da   : > { %8397 = vst [vmem:[#allocation21_spill] sm:$0xff] %v6682_v18 }
 0x5db   : > { %2803 = vrot.lane.b32.xlu2 %v6660_v44, %s4520_s13 }
 0x5dd   : > { %2805 = vrot.lane.b32.xlu0 %v6666_v61, %s4520_s13  ;;  %2801 = vrot.lane.b32.xlu1 %v6668_v46, %s4520_s13  ;;  %v6720_v61 = vld [vmem:[#allocation3 + $0x48] sm:$0xff] }
 0x5de   : > { %8410 = vst [vmem:[#allocation141_spill] sm:$0xff] %v6720_v61 }
 0x5df   : > { %v6676_v57 = vpop.permute.xlu0 %2657 }
 0x5e0   : > { %8395 = vst [vmem:[#allocation7_spill] sm:$0xff] %v6676_v57  ;;  %v6686_v26 = vpop.permute.xlu2 %2679  ;;  %v6700_v57 = vld [vmem:[#allocation3 + $0x20] sm:$0xff] }
 0x5e1   : > { %8399 = vst [vmem:[#allocation124_spill] sm:$0xff] %v6686_v26 }
 0x5e2   : > { %8403 = vst [vmem:[#allocation160_spill] sm:$0xff] %v6700_v57 }
 0x5e3   : > { %2809 = vrot.lane.b32.xlu2 %v6678_v22, %s4520_s13  ;;  %v6702_v22 = vld [vmem:[#allocation3 + $0x172] sm:$0xff] }
 0x5e4   : > { %8404 = vst [vmem:[#allocation99_spill] sm:$0xff] %v6702_v22 }
 0x5e5   : > { %2811 = vrot.lane.b32.xlu0 %v6682_v18, %s4520_s13  ;;  %2807 = vrot.lane.b32.xlu1 %v6684_v28, %s4520_s13  ;;  %v6714_v18 = vld [vmem:[#allocation3 + $0x38] sm:$0xff] }
 0x5e6   : > { %8408 = vst [vmem:[#allocation105_spill] sm:$0xff] %v6714_v18 }
 0x5e7   : > { %v6692_v38 = vpop.permute.xlu1 %2659  ;;  %v6694_v50 = vpop.permute.xlu0 %2663 }
 0x5e8   : > { %8400 = vst [vmem:[#allocation60_spill] sm:$0xff] %v6692_v38 }
 0x5e9   : > { %8401 = vst [vmem:[#allocation72_spill] sm:$0xff] %v6694_v50 }
 0x5eb   : > { %2879 = vrot.lane.b32.xlu2 %v6696_v51, %s4522_s15  ;;  %v6718_v51 = vld [vmem:[#allocation3 + $0x30] sm:$0xff] }
 0x5ec   : > { %8409 = vst [vmem:[#allocation137_spill] sm:$0xff] %v6718_v51 }
 0x5ed   : > { %v6704_v26 = vpop.permute.xlu2 %2685  ;;  %2881 = vrot.lane.b32.xlu0 %v6700_v57, %s4522_s15  ;;  %2813 = vrot.lane.b32.xlu1 %v6702_v22, %s4520_s13  ;;  %v6738_v22 = vld [vmem:[#allocation3 + $0x68] sm:$0xff]  ;;  %s4526_s13 = smov 48  }
 0x5ee   : > { %8405 = vst [vmem:[#allocation64_spill] sm:$0xff] %v6704_v26 }
 0x5ef   : > { %v6710_v38 = vpop.permute.xlu1 %2665  ;;  %v6712_v50 = vpop.permute.xlu0 %2669  ;;  %8416 = vst [vmem:[#allocation90_spill] sm:$0xff] %v6738_v22 }
 0x5f0   : > { %8406 = vst [vmem:[#allocation23_spill] sm:$0xff] %v6710_v38 }
 0x5f1   : > { %8407 = vst [vmem:[#allocation110_spill] sm:$0xff] %v6712_v50  ;;  %v6732_v50 = vld [vmem:[#allocation3 + $0x60] sm:$0xff] }
 0x5f2   : > { %8414 = vst [vmem:[#allocation152_spill] sm:$0xff] %v6732_v50 }
 0x5f3   : > { %2885 = vrot.lane.b32.xlu2 %v6714_v18, %s4522_s15  ;;  %v6736_v18 = vld [vmem:[#allocation3 + $0x50] sm:$0xff] }
 0x5f4   : > { %8415 = vst [vmem:[#allocation42_spill] sm:$0xff] %v6736_v18 }
 0x5f5   : > { %v6722_v26 = vpop.permute.xlu2 %2755  ;;  %2887 = vrot.lane.b32.xlu0 %v6720_v61, %s4522_s15  ;;  %2883 = vrot.lane.b32.xlu1 %v6718_v51, %s4522_s15 }
 0x5f6   : > { %8411 = vst [vmem:[#allocation22_spill] sm:$0xff] %v6722_v26 }
 0x5f7   : > { %v6728_v57 = vpop.permute.xlu1 %2671  ;;  %v6730_v38 = vpop.permute.xlu0 %2675 }
 0x5f8   : > { %8412 = vst [vmem:[#allocation10_spill] sm:$0xff] %v6728_v57  ;;  %v6750_v57 = vld [vmem:[#allocation3 + $0x80] sm:$0xff] }
 0x5f9   : > { %8413 = vst [vmem:[#allocation58_spill] sm:$0xff] %v6730_v38  ;;  %v6756_v38 = vld [vmem:[#allocation3 + $0x90] sm:$0xff] }
 0x5fa   : > { %8420 = vst [vmem:[#allocation95_spill] sm:$0xff] %v6750_v57 }
 0x5fb   : > { %2891 = vrot.lane.b32.xlu2 %v6732_v50, %s4522_s15  ;;  %v6754_v50 = vld [vmem:[#allocation3 + $0x78] sm:$0xff]  ;;  %8422 = vst [vmem:[#allocation9_spill] sm:$0xff] %v6756_v38 }
 0x5fc   : > { %8421 = vst [vmem:[#allocation133_spill] sm:$0xff] %v6754_v50 }
 0x5fd   : > { %v6740_v26 = vpop.permute.xlu2 %2761  ;;  %2893 = vrot.lane.b32.xlu0 %v6738_v22, %s4522_s15  ;;  %2889 = vrot.lane.b32.xlu1 %v6736_v18, %s4522_s15 }
 0x5fe   : > { %8417 = vst [vmem:[#allocation68_spill] sm:$0xff] %v6740_v26 }
 0x5ff   : > { %v6746_v51 = vpop.permute.xlu1 %2677  ;;  %v6748_v61 = vpop.permute.xlu0 %2681 }
 0x600   : > { %8418 = vst [vmem:[#allocation94_spill] sm:$0xff] %v6746_v51  ;;  %v6768_v51 = vld [vmem:[#allocation3 + $0xa8] sm:$0xff] }
 0x601   : > { %8419 = vst [vmem:[#allocation122_spill] sm:$0xff] %v6748_v61  ;;  %v6772_v61 = vld [vmem:[#allocation3 + $0x98] sm:$0xff] }
 0x602   : > { %8426 = vst [vmem:[#allocation18_spill] sm:$0xff] %v6768_v51 }
 0x603   : > { %2897 = vrot.lane.b32.xlu2 %v6750_v57, %s4522_s15  ;;  %8427 = vst [vmem:[#allocation75_spill] sm:$0xff] %v6772_v61  ;;  %v6774_v57 = vld [vmem:[#allocation3 + $0xb0] sm:$0xff] }
 0x604   : > { %8428 = vst [vmem:[#allocation165_spill] sm:$0xff] %v6774_v57 }
 0x605   : > { %v6758_v26 = vpop.permute.xlu2 %2767  ;;  %2899 = vrot.lane.b32.xlu0 %v6756_v38, %s4522_s15  ;;  %2895 = vrot.lane.b32.xlu1 %v6754_v50, %s4522_s15  ;;  %v6792_v38 = vld [vmem:[#allocation3 + $0xd8] sm:$0xff] }
 0x606   : > { %8423 = vst [vmem:[#allocation161_spill] sm:$0xff] %v6758_v26 }
 0x607   : > { %v6764_v18 = vpop.permute.xlu1 %2683  ;;  %v6766_v22 = vpop.permute.xlu0 %2751  ;;  %8434 = vst [vmem:[#allocation116_spill] sm:$0xff] %v6792_v38 }
 0x608   : > { %8424 = vst [vmem:[#allocation47_spill] sm:$0xff] %v6764_v18 }
 0x609   : > { %8425 = vst [vmem:[#allocation134_spill] sm:$0xff] %v6766_v22  ;;  %v6786_v22 = vld [vmem:[#allocation3 + $0xc8] sm:$0xff] }
 0x60a   : > { %8432 = vst [vmem:[#allocation77_spill] sm:$0xff] %v6786_v22 }
 0x60b   : > { %2903 = vrot.lane.b32.xlu2 %v6768_v51, %s4522_s15  ;;  %v6790_v51 = vld [vmem:[#allocation3 + $0xc0] sm:$0xff] }
 0x60c   : > { %8433 = vst [vmem:[#allocation29_spill] sm:$0xff] %v6790_v51 }
 0x60d   : > { %v6776_v26 = vpop.permute.xlu2 %2773  ;;  %2905 = vrot.lane.b32.xlu0 %v6774_v57, %s4522_s15  ;;  %2901 = vrot.lane.b32.xlu1 %v6772_v61, %s4522_s15  ;;  %v6810_v57 = vld [vmem:[#allocation3 + $0xf8] sm:$0xff] }
 0x60e   : > { %8429 = vst [vmem:[#allocation27_spill] sm:$0xff] %v6776_v26 }
 0x60f   : > { %v6782_v50 = vpop.permute.xlu1 %2753  ;;  %v6784_v18 = vpop.permute.xlu0 %2757  ;;  %8440 = vst [vmem:[#allocation127_spill] sm:$0xff] %v6810_v57 }
 0x610   : > { %8430 = vst [vmem:[#allocation62_spill] sm:$0xff] %v6782_v50 }
 0x611   : > { %8431 = vst [vmem:[#allocation88_spill] sm:$0xff] %v6784_v18  ;;  %v6804_v18 = vld [vmem:[#allocation3 + $0xf0] sm:$0xff] }
 0x612   : > { %8438 = vst [vmem:[#allocation44_spill] sm:$0xff] %v6804_v18 }
 0x613   : > { %2909 = vrot.lane.b32.xlu2 %v6786_v22, %s4522_s15  ;;  %v6808_v22 = vld [vmem:[#allocation3 + $0xe0] sm:$0xff] }
 0x614   : > { %8439 = vst [vmem:[#allocation28_spill] sm:$0xff] %v6808_v22 }
 0x615   : > { %v6794_v26 = vpop.permute.xlu2 %2779  ;;  %2911 = vrot.lane.b32.xlu0 %v6792_v38, %s4522_s15  ;;  %2907 = vrot.lane.b32.xlu1 %v6790_v51, %s4522_s15  ;;  %v6822_v38 = vld [vmem:[#allocation3 + $0x110] sm:$0xff]  ;;  %v6828_v51 = vld [vmem:[#allocation3 + $0x120] sm:$0xff] }
 0x616   : > { %8435 = vst [vmem:[#allocation119_spill] sm:$0xff] %v6794_v26 }
 0x617   : > { %v6800_v61 = vpop.permute.xlu1 %2759  ;;  %v6802_v50 = vpop.permute.xlu0 %2763  ;;  %8444 = vst [vmem:[#allocation163_spill] sm:$0xff] %v6822_v38 }
 0x618   : > { %8436 = vst [vmem:[#allocation147_spill] sm:$0xff] %v6800_v61 }
 0x619   : > { %8437 = vst [vmem:[#allocation13_spill] sm:$0xff] %v6802_v50 }
 0x61a   : > { %8446 = vst [vmem:[#allocation69_spill] sm:$0xff] %v6828_v51 }
 0x61b   : > { %2915 = vrot.lane.b32.xlu2 %v6804_v18, %s4522_s15  ;;  %v6826_v18 = vld [vmem:[#allocation3 + $0x108] sm:$0xff] }
 0x61c   : > { %8445 = vst [vmem:[#allocation101_spill] sm:$0xff] %v6826_v18 }
 0x61d   : > { %v6812_v26 = vpop.permute.xlu2 %2785  ;;  %2917 = vrot.lane.b32.xlu0 %v6810_v57, %s4522_s15  ;;  %2913 = vrot.lane.b32.xlu1 %v6808_v22, %s4522_s15  ;;  %v6840_v57 = vld [vmem:[#allocation3 + $0x138] sm:$0xff]  ;;  %v6846_v22 = vld [vmem:[#allocation3 + $0x140] sm:$0xff] }
 0x61e   : > { %8441 = vst [vmem:[#allocation59_spill] sm:$0xff] %v6812_v26 }
 0x61f   : > { %v6818_v61 = vpop.permute.xlu1 %2765  ;;  %v6820_v50 = vpop.permute.xlu0 %2769  ;;  %8450 = vst [vmem:[#allocation144_spill] sm:$0xff] %v6840_v57 }
 0x620   : > { %8442 = vst [vmem:[#allocation70_spill] sm:$0xff] %v6818_v61 }
 0x621   : > { %8443 = vst [vmem:[#allocation156_spill] sm:$0xff] %v6820_v50 }
 0x622   : > { %8452 = vst [vmem:[#allocation37_spill] sm:$0xff] %v6846_v22 }
 0x623   : > { %2921 = vrot.lane.b32.xlu2 %v6822_v38, %s4522_s15  ;;  %v6844_v38 = vld [vmem:[#allocation3 + $0x128] sm:$0xff] }
 0x624   : > { %8451 = vst [vmem:[#allocation24_spill] sm:$0xff] %v6844_v38 }
 0x625   : > { %v6830_v26 = vpop.permute.xlu2 %2791  ;;  %2923 = vrot.lane.b32.xlu0 %v6828_v51, %s4522_s15  ;;  %2919 = vrot.lane.b32.xlu1 %v6826_v18, %s4522_s15  ;;  %v6858_v51 = vld [vmem:[#allocation3 + $0x158] sm:$0xff]  ;;  %v6864_v18 = vld [vmem:[#allocation3 + $0x168] sm:$0xff] }
 0x626   : > { %8447 = vst [vmem:[#allocation111_spill] sm:$0xff] %v6830_v26 }
 0x627   : > { %v6836_v61 = vpop.permute.xlu1 %2771  ;;  %v6838_v50 = vpop.permute.xlu0 %2775  ;;  %8456 = vst [vmem:[#allocation49_spill] sm:$0xff] %v6858_v51 }
 0x628   : > { %8448 = vst [vmem:[#allocation107_spill] sm:$0xff] %v6836_v61 }
 0x629   : > { %8449 = vst [vmem:[#allocation140_spill] sm:$0xff] %v6838_v50 }
 0x62a   : > { %8457 = vst [vmem:[#allocation93_spill] sm:$0xff] %v6864_v18 }
 0x62b   : > { %2927 = vrot.lane.b32.xlu2 %v6840_v57, %s4522_s15  ;;  %v6862_v57 = vld [vmem:[#allocation3 + $0x150] sm:$0xff] }
 0x62d   : > { %v6848_v26 = vpop.permute.xlu2 %2797  ;;  %2929 = vrot.lane.b32.xlu0 %v6846_v22, %s4522_s15  ;;  %2925 = vrot.lane.b32.xlu1 %v6844_v38, %s4522_s15  ;;  %v2429_v38 = vld [vmem:[#allocation3 + $0x188] sm:$0xff] }
 0x62e   : > { %8453 = vst [vmem:[#allocation11_spill] sm:$0xff] %v6848_v26 }
 0x62f   : > { %v6854_v61 = vpop.permute.xlu1 %2777  ;;  %v6856_v50 = vpop.permute.xlu0 %2781 }
 0x630   : > { %8454 = vst [vmem:[#allocation65_spill] sm:$0xff] %v6854_v61 }
 0x631   : > { %8455 = vst [vmem:[#allocation155_spill] sm:$0xff] %v6856_v50  ;;  %v2428_v50 = vld [vmem:[#allocation3 + $0x180] sm:$0xff] }
 0x633   : > { %2933 = vrot.lane.b32.xlu2 %v6858_v51, %s4522_s15  ;;  %v6877_v51 = vld [vmem:[#allocation3 + $0x170] sm:$0xff] }
 0x634   : > { %8460 = vst [vmem:[#allocation125_spill] sm:$0xff] %v6877_v51 }
 0x635   : > { %v6866_v26 = vpop.permute.xlu2 %2803  ;;  %2935 = vrot.lane.b32.xlu0 %v6864_v18, %s4522_s15  ;;  %2931 = vrot.lane.b32.xlu1 %v6862_v57, %s4522_s15 }
 0x636   : > { %8458 = vst [vmem:[#allocation78_spill] sm:$0xff] %v6866_v26 }
 0x637   : > { %v6872_v61 = vpop.permute.xlu1 %2783  ;;  %v6874_v22 = vpop.permute.xlu0 %2787 }
 0x638   : > { %8459 = vst [vmem:[#allocation97_spill] sm:$0xff] %v6874_v22 }
 0x63b   : > { %2939 = vrot.lane.b32.xlu2 %v2428_v50, %s4522_s15 }
 0x63d   : > { %v6879_v28 = vpop.permute.xlu2 %2809  ;;  %2937 = vrot.lane.b32.xlu1 %v6877_v51, %s4522_s15  ;;  %2941 = vrot.lane.b32.xlu0 %v2429_v38, %s4522_s15  ;;  %s4527_s15 = smov 56  }
 0x63f   : > { %v6884_v18 = vpop.permute.xlu1 %2789  ;;  %v6886_v26 = vpop.permute.xlu0 %2793 }
 0x643   : > { %3009 = vrot.lane.b32.xlu2 %v6298_v43, %s4524_s17 }
 0x645   : > { %v6890_v22 = vpop.permute.xlu2 %2879  ;;  %3007 = vrot.lane.b32.xlu1 %v6277_v41, %s4524_s17  ;;  %3011 = vrot.lane.b32.xlu0 %v6337_v25, %s4524_s17 }
 0x647   : > { %v6896_v50 = vpop.permute.xlu1 %2795  ;;  %v6898_v51 = vpop.permute.xlu0 %2799 }
 0x64b   : > { %3015 = vrot.lane.b32.xlu2 %v6373_v59, %s4524_s17 }
 0x64d   : > { %v6902_v38 = vpop.permute.xlu2 %2885  ;;  %3013 = vrot.lane.b32.xlu1 %v6359_v15, %s4524_s17  ;;  %3017 = vrot.lane.b32.xlu0 %v6379_v40, %s4524_s17 }
 0x64f   : > { %v6908_v43 = vpop.permute.xlu1 %2801  ;;  %v6910_v41 = vpop.permute.xlu0 %2805 }
 0x653   : > { %3021 = vrot.lane.b32.xlu2 %v6393_v55, %s4524_s17 }
 0x655   : > { %v6914_v25 = vpop.permute.xlu2 %2891  ;;  %3019 = vrot.lane.b32.xlu1 %v6385_v4, %s4524_s17  ;;  %3023 = vrot.lane.b32.xlu0 %v6401_v45, %s4524_s17 }
 0x657   : > { %v6920_v59 = vpop.permute.xlu1 %2807  ;;  %v6922_v15 = vpop.permute.xlu0 %2811 }
 0x65b   : > { %3027 = vrot.lane.b32.xlu2 %v6417_v7, %s4524_s17 }
 0x65d   : > { %v6926_v40 = vpop.permute.xlu2 %2897  ;;  %3025 = vrot.lane.b32.xlu1 %v6409_v9, %s4524_s17  ;;  %3029 = vrot.lane.b32.xlu0 %v6425_v17, %s4524_s17 }
 0x65e   : > { %8461 = vst [vmem:[#allocation98_spill] sm:$0xff] %v6926_v40 }
 0x65f   : > { %v6932_v55 = vpop.permute.xlu1 %2813  ;;  %v6934_v4 = vpop.permute.xlu0 %2881 }
 0x660   : > { %8462 = vst [vmem:[#allocation135_spill] sm:$0xff] %v6932_v55  ;;  %v8516_v55 = vld [vmem:[#allocation7_spill] sm:$0xff] }
 0x661   : > { %8463 = vst [vmem:[#allocation19_spill] sm:$0xff] %v6934_v4 }
 0x663   : > { %3033 = vrot.lane.b32.xlu2 %v6441_v8, %s4524_s17 }
 0x665   : > { %v6938_v45 = vpop.permute.xlu2 %2903  ;;  %3031 = vrot.lane.b32.xlu1 %v6433_v20, %s4524_s17  ;;  %3035 = vrot.lane.b32.xlu0 %v6449_v33, %s4524_s17 }
 0x666   : > { %8464 = vst [vmem:[#allocation33_spill] sm:$0xff] %v6938_v45 }
 0x667   : > { %v6944_v7 = vpop.permute.xlu1 %2883  ;;  %v6946_v9 = vpop.permute.xlu0 %2887 }
 0x668   : > { %8465 = vst [vmem:[#allocation164_spill] sm:$0xff] %v6944_v7 }
 0x669   : > { %8466 = vst [vmem:[#allocation46_spill] sm:$0xff] %v6946_v9  ;;  %v8501_v9 = vld [vmem:[#allocation9_spill] sm:$0xff] }
 0x66b   : > { %3039 = vrot.lane.b32.xlu2 %v6470_v10, %s4524_s17 }
 0x66d   : > { %v6950_v17 = vpop.permute.xlu2 %2909  ;;  %3037 = vrot.lane.b32.xlu1 %v6457_v3, %s4524_s17  ;;  %3041 = vrot.lane.b32.xlu0 %v6459_v21, %s4524_s17 }
 0x66f   : > { %v6956_v8 = vpop.permute.xlu1 %2889  ;;  %v6958_v20 = vpop.permute.xlu0 %2893 }
 0x670   : > { %8467 = vst [vmem:[#allocation136_spill] sm:$0xff] %v6956_v8 }
 0x671   : > { %8468 = vst [vmem:[#allocation73_spill] sm:$0xff] %v6958_v20  ;;  %v2499_v20 = vld [vmem:[#allocation3 + $0x60] sm:$0xff] }
 0x673   : > { %3045 = vrot.lane.b32.xlu2 %v6484_v0, %s4524_s17 }
 0x675   : > { %v6962_v33 = vpop.permute.xlu2 %2915  ;;  %3043 = vrot.lane.b32.xlu1 %v6468_v37, %s4524_s17  ;;  %3047 = vrot.lane.b32.xlu0 %v6476_v52, %s4524_s17 }
 0x677   : > { %v6968_v10 = vpop.permute.xlu1 %2895  ;;  %v6970_v3 = vpop.permute.xlu0 %2899 }
 0x678   : > { %8469 = vst [vmem:[#allocation167_spill] sm:$0xff] %v6968_v10 }
 0x679   : > { %8470 = vst [vmem:[#allocation34_spill] sm:$0xff] %v6970_v3  ;;  %v7139_v3 = vld [vmem:[#allocation3 + $0x18a] sm:$0xff] }
 0x67a   : > { %8496 = vst [vmem:[#allocation143_spill] sm:$0xff] %v7139_v3 }
 0x67b   : > { %3051 = vrot.lane.b32.xlu2 %v6498_v11, %s4524_s17 }
 0x67d   : > { %v6974_v21 = vpop.permute.xlu2 %2921  ;;  %3049 = vrot.lane.b32.xlu1 %v6482_v53, %s4524_s17  ;;  %3053 = vrot.lane.b32.xlu0 %v6490_v6, %s4524_s17 }
 0x67f   : > { %v6980_v0 = vpop.permute.xlu1 %2901  ;;  %v6982_v37 = vpop.permute.xlu0 %2905 }
 0x680   : > { %8471 = vst [vmem:[#allocation61_spill] sm:$0xff] %v6980_v0 }
 0x681   : > { %8472 = vst [vmem:[#allocation89_spill] sm:$0xff] %v6982_v37 }
 0x683   : > { %3057 = vrot.lane.b32.xlu2 %v6512_v24, %s4524_s17 }
 0x685   : > { %v6986_v52 = vpop.permute.xlu2 %2927  ;;  %3055 = vrot.lane.b32.xlu1 %v6496_v48, %s4524_s17  ;;  %3059 = vrot.lane.b32.xlu0 %v6504_v19, %s4524_s17  ;;  %v2461_v19 = vld [vmem:[#allocation3 + $0x189] sm:$0xff] }
 0x687   : > { %v6992_v11 = vpop.permute.xlu1 %2907  ;;  %v6994_v53 = vpop.permute.xlu0 %2911 }
 0x688   : > { %8473 = vst [vmem:[#allocation82_spill] sm:$0xff] %v6992_v11  ;;  %v2460_v11 = vld [vmem:[#allocation3 + $0x181] sm:$0xff] }
 0x68b   : > { %3063 = vrot.lane.b32.xlu2 %v6524_v2, %s4524_s17 }
 0x68d   : > { %v6998_v6 = vpop.permute.xlu2 %2933  ;;  %3061 = vrot.lane.b32.xlu1 %v6510_v14, %s4524_s17  ;;  %3065 = vrot.lane.b32.xlu0 %v6519_v13, %s4524_s17 }
 0x68f   : > { %v7004_v24 = vpop.permute.xlu1 %2913  ;;  %v7006_v48 = vpop.permute.xlu0 %2917 }
 0x693   : > { %3069 = vrot.lane.b32.xlu2 %v2461_v19, %s4524_s17 }
 0x695   : > { %v7009_v37 = vpop.permute.xlu2 %2939  ;;  %3067 = vrot.lane.b32.xlu1 %v2460_v11, %s4524_s17  ;;  %3135 = vrot.lane.b32.xlu0 %v6532_v27, %s4525_s10  ;;  %s4528_s17 = smov 64  }
 0x696   : > { %8474 = vst [vmem:[#allocation118_spill] sm:$0xff] %v7009_v37  ;;  %v8520_v37 = vld [vmem:[#allocation163_spill] sm:$0xff] }
 0x697   : > { %v7014_v14 = vpop.permute.xlu1 %2919  ;;  %v7016_v2 = vpop.permute.xlu0 %2923 }
 0x69b   : > { %3139 = vrot.lane.b32.xlu2 %v6550_v35, %s4525_s10 }
 0x69d   : > { %v7020_v13 = vpop.permute.xlu2 %3009  ;;  %3137 = vrot.lane.b32.xlu1 %v6537_v63, %s4525_s10  ;;  %3141 = vrot.lane.b32.xlu0 %v6544_v58, %s4525_s10 }
 0x69e   : > { %8475 = vst [vmem:[#allocation121_spill] sm:$0xff] %v7020_v13  ;;  %v8513_v13 = vld [vmem:[#allocation44_spill] sm:$0xff] }
 0x69f   : > { %v7026_v11 = vpop.permute.xlu1 %2925  ;;  %v7028_v19 = vpop.permute.xlu0 %2929 }
 0x6a3   : > { %3145 = vrot.lane.b32.xlu2 %v6564_v30, %s4525_s10 }
 0x6a5   : > { %v7032_v27 = vpop.permute.xlu2 %3015  ;;  %3143 = vrot.lane.b32.xlu1 %v6548_v34, %s4525_s10  ;;  %3147 = vrot.lane.b32.xlu0 %v6558_v60, %s4525_s10 }
 0x6a6   : > { %8476 = vst [vmem:[#allocation149_spill] sm:$0xff] %v7032_v27 }
 0x6a7   : > { %v7038_v35 = vpop.permute.xlu1 %2931  ;;  %v7040_v63 = vpop.permute.xlu0 %2935 }
 0x6a8   : > { %8477 = vst [vmem:[#allocation14_spill] sm:$0xff] %v7040_v63 }
 0x6ab   : > { %3151 = vrot.lane.b32.xlu2 %v6580_v29, %s4525_s10 }
 0x6ad   : > { %v7044_v58 = vpop.permute.xlu2 %3021  ;;  %3149 = vrot.lane.b32.xlu1 %v6562_v56, %s4525_s10  ;;  %3153 = vrot.lane.b32.xlu0 %v6572_v54, %s4525_s10 }
 0x6ae   : > { %8478 = vst [vmem:[#allocation30_spill] sm:$0xff] %v7044_v58  ;;  %v2497_v58 = vld [vmem:[#allocation3 + $0x48] sm:$0xff] }
 0x6af   : > { %v7050_v30 = vpop.permute.xlu1 %2937  ;;  %v7052_v34 = vpop.permute.xlu0 %2941 }
 0x6b0   : > { %8479 = vst [vmem:[#allocation41_spill] sm:$0xff] %v7052_v34 }
 0x6b3   : > { %3157 = vrot.lane.b32.xlu2 %v6596_v49, %s4525_s10 }
 0x6b5   : > { %v7056_v60 = vpop.permute.xlu2 %3027  ;;  %3155 = vrot.lane.b32.xlu1 %v6578_v42, %s4525_s10  ;;  %3159 = vrot.lane.b32.xlu0 %v6590_v23, %s4525_s10 }
 0x6b6   : > { %8480 = vst [vmem:[#allocation51_spill] sm:$0xff] %v7056_v60 }
 0x6b7   : > { %v7062_v29 = vpop.permute.xlu1 %3007  ;;  %v7064_v56 = vpop.permute.xlu0 %3011 }
 0x6b8   : > { %8481 = vst [vmem:[#allocation129_spill] sm:$0xff] %v7064_v56  ;;  %v2500_v56 = vld [vmem:[#allocation3 + $0x68] sm:$0xff] }
 0x6bb   : > { %3163 = vrot.lane.b32.xlu2 %v6614_v47, %s4525_s10 }
 0x6bd   : > { %v7068_v54 = vpop.permute.xlu2 %3033  ;;  %3161 = vrot.lane.b32.xlu1 %v6594_v62, %s4525_s10  ;;  %3165 = vrot.lane.b32.xlu0 %v6608_v31, %s4525_s10 }
 0x6be   : > { %8482 = vst [vmem:[#allocation67_spill] sm:$0xff] %v7068_v54 }
 0x6bf   : > { %v7074_v49 = vpop.permute.xlu1 %3013  ;;  %v7076_v42 = vpop.permute.xlu0 %3017 }
 0x6c0   : > { %8483 = vst [vmem:[#allocation80_spill] sm:$0xff] %v7076_v42  ;;  %v2498_v42 = vld [vmem:[#allocation3 + $0x50] sm:$0xff] }
 0x6c3   : > { %3169 = vrot.lane.b32.xlu2 %v6632_v36, %s4525_s10 }
 0x6c5   : > { %v7080_v23 = vpop.permute.xlu2 %3039  ;;  %3167 = vrot.lane.b32.xlu1 %v6612_v39, %s4525_s10  ;;  %3171 = vrot.lane.b32.xlu0 %v6626_v16, %s4525_s10 }
 0x6c7   : > { %v7086_v47 = vpop.permute.xlu1 %3019  ;;  %v7088_v62 = vpop.permute.xlu0 %3023 }
 0x6c8   : > { %8484 = vst [vmem:[#allocation159_spill] sm:$0xff] %v7088_v62  ;;  %v7126_v62 = vld [vmem:[#allocation3 + $0x182] sm:$0xff] }
 0x6c9   : > { %8493 = vst [vmem:[#allocation114_spill] sm:$0xff] %v7126_v62 }
 0x6cb   : > { %3175 = vrot.lane.b32.xlu2 %v6650_v12, %s4525_s10 }
 0x6cd   : > { %v7092_v31 = vpop.permute.xlu2 %3045  ;;  %3173 = vrot.lane.b32.xlu1 %v6630_v32, %s4525_s10  ;;  %3177 = vrot.lane.b32.xlu0 %v6644_v5, %s4525_s10  ;;  %v8489_v5 = vld [vmem:[#allocation45_spill] sm:$0xff] }
 0x6cf   : > { %v7098_v36 = vpop.permute.xlu1 %3025  ;;  %v7100_v39 = vpop.permute.xlu0 %3029 }
 0x6d0   : > { %8485 = vst [vmem:[#allocation168_spill] sm:$0xff] %v7098_v36  ;;  %v8517_v36 = vld [vmem:[#allocation59_spill] sm:$0xff] }
 0x6d1   : > { %8486 = vst [vmem:[#allocation104_spill] sm:$0xff] %v7100_v39  ;;  %v8490_v39 = vld [vmem:[#allocation117_spill] sm:$0xff] }
 0x6d3   : > { %3181 = vrot.lane.b32.xlu2 %v6668_v46, %s4525_s10  ;;  %v8491_v46 = vld [vmem:[#allocation12_spill] sm:$0xff] }
 0x6d5   : > { %v7104_v16 = vpop.permute.xlu2 %3051  ;;  %3179 = vrot.lane.b32.xlu1 %v6648_v1, %s4525_s10  ;;  %3183 = vrot.lane.b32.xlu0 %v6660_v44, %s4525_s10  ;;  %v8492_v44 = vld [vmem:[#allocation99_spill] sm:$0xff] }
 0x6d7   : > { %v7110_v12 = vpop.permute.xlu1 %3031  ;;  %v7112_v32 = vpop.permute.xlu0 %3035 }
 0x6d8   : > { %8487 = vst [vmem:[#allocation71_spill] sm:$0xff] %v7110_v12  ;;  %v8506_v12 = vld [vmem:[#allocation165_spill] sm:$0xff] }
 0x6d9   : > { %8488 = vst [vmem:[#allocation39_spill] sm:$0xff] %v7112_v32 }
 0x6db   : > { %3187 = vrot.lane.b32.xlu2 %v8489_v5, %s4525_s10  ;;  %v8495_v5 = vld [vmem:[#allocation21_spill] sm:$0xff] }
 0x6dd   : > { %v7116_v54 = vpop.permute.xlu2 %3057  ;;  %3185 = vrot.lane.b32.xlu1 %v8490_v39, %s4525_s10  ;;  %3189 = vrot.lane.b32.xlu0 %v8491_v46, %s4525_s10  ;;  %v2495_v46 = vld [vmem:[#allocation3 + $0x30] sm:$0xff] }
 0x6df   : > { %v7122_v0 = vpop.permute.xlu1 %3037  ;;  %v3042_v1 = vpop.permute.xlu0 %3041 }
 0x6e3   : > { %3193 = vrot.lane.b32.xlu2 %v8492_v44, %s4525_s10  ;;  %v2496_v44 = vld [vmem:[#allocation3 + $0x38] sm:$0xff] }
 0x6e5   : > { %v7128_v32 = vpop.permute.xlu2 %3063  ;;  %3191 = vrot.lane.b32.xlu1 %v8495_v5, %s4525_s10  ;;  %3195 = vrot.lane.b32.xlu0 %v7126_v62, %s4525_s10 }
 0x6e6   : > { %8494 = vst [vmem:[#allocation109_spill] sm:$0xff] %v7128_v32 }
 0x6e7   : > { %v7134_v39 = vpop.permute.xlu1 %3043  ;;  %v7136_v60 = vpop.permute.xlu0 %3047 }
 0x6eb   : > { %3263 = vrot.lane.b32.xlu2 %v2495_v46, %s4526_s13 }
 0x6ed   : > { %3197 = vrot.lane.b32.xlu1 %v7139_v3, %s4525_s10  ;;  %v7143_v10 = vpop.permute.xlu2 %3069  ;;  %3265 = vrot.lane.b32.xlu0 %v2496_v44, %s4526_s13  ;;  %v2501_v44 = vld [vmem:[#allocation3 + $0x78] sm:$0xff]  ;;  %s4212_s10 = sshll.u32 %s4208_s14, 4  ;;  %s4213_s10 = int_to_ptr.hbm [resolvable:$true] %s4212_s10 }
 0x6ee   : > { %8497 = vst [vmem:[#allocation146_spill] sm:$0xff] %v7143_v10  ;;  %v8511_v10 = vld [vmem:[#allocation116_spill] sm:$0xff]  ;;  %s4466_s25 = sshra.s32 %s4213_s10, 4  ;;  %s4467_s25 = int_to_ptr.hbm [resolvable:$true] %s4466_s25 }
 0x6ef   : > { %v7146_v5 = vpop.permute.xlu1 %3049  ;;  %v7148_v62 = vpop.permute.xlu0 %3053  ;;  %s4468_s26 = scalar_lea.hbm %s4467_s25, 16  ;;  %p4473_p0 = scmp.lt.s32.totalorder %s4467_s25, %s7990_s5 }
 0x6f0   : > { %p4469_p11 = scmp.ne.s32.totalorder %s4467_s25, %s4468_s26  ;;  %p4474_p1 = scmp.lt.s32.totalorder %s4472_s6, %s4468_s26 }
 0x6f2   : > { %p4470_p12 = pnand %p4469_p11, %p4597_p5  ;;  %p4475_p2 = por %p4474_p1, %p4473_p0 }
 0x6f3   : > { %3269 = vrot.lane.b32.xlu2 %v2498_v42, %s4526_s13  ;;  %v8500_v42 = vld [vmem:[#allocation95_spill] sm:$0xff] }
 0x6f4   : > { %p4471_p13 = pneg %p4470_p12 }
 0x6f5   : > { %3267 = vrot.lane.b32.xlu1 %v2497_v58, %s4526_s13  ;;  %v7152_v46 = vpop.permute.xlu2 %3139  ;;  %3271 = vrot.lane.b32.xlu0 %v2499_v20, %s4526_s13  ;;  %v2504_v20 = vld [vmem:[#allocation3 + $0x98] sm:$0xff] }
 0x6f6   : > { %8498 = vst [vmem:[#allocation38_spill] sm:$0xff] %v7152_v46  ;;  %p4476_p3 = pnand %p4475_p2, %p4471_p13 }
 0x6f7   : > { %v7155_v3 = vpop.permute.xlu1 %3055  ;;  %v7157_v8 = vpop.permute.xlu0 %3059 }
 0x6fb   : > { %3275 = vrot.lane.b32.xlu2 %v2501_v44, %s4526_s13  ;;  %v8503_v44 = vld [vmem:[#allocation18_spill] sm:$0xff] }
 0x6fd   : > { %3273 = vrot.lane.b32.xlu1 %v2500_v56, %s4526_s13  ;;  %v7161_v27 = vpop.permute.xlu2 %3145  ;;  %3277 = vrot.lane.b32.xlu0 %v8500_v42, %s4526_s13  ;;  %v8505_v42 = vld [vmem:[#allocation29_spill] sm:$0xff] }
 0x6fe   : > { %8499 = vst [vmem:[#allocation25_spill] sm:$0xff] %v7161_v27 }
 0x6ff   : > { %v7165_v58 = vpop.permute.xlu1 %3061  ;;  %v7167_v46 = vpop.permute.xlu0 %3065 }
 0x703   : > { %3281 = vrot.lane.b32.xlu2 %v2504_v20, %s4526_s13  ;;  %v8508_v20 = vld [vmem:[#allocation77_spill] sm:$0xff] }
 0x705   : > { %3279 = vrot.lane.b32.xlu1 %v8501_v9, %s4526_s13  ;;  %v7172_v7 = vpop.permute.xlu2 %3151  ;;  %3283 = vrot.lane.b32.xlu0 %v8503_v44, %s4526_s13  ;;  %v8510_v44 = vld [vmem:[#allocation28_spill] sm:$0xff] }
 0x706   : > { %8502 = vst [vmem:[#allocation63_spill] sm:$0xff] %v7172_v7 }
 0x707   : > { %v7176_v56 = vpop.permute.xlu1 %3067  ;;  %v7178_v27 = vpop.permute.xlu0 %3135 }
 0x708   : > { %8504 = vst [vmem:[#allocation157_spill] sm:$0xff] %v7176_v56  ;;  %v8518_v56 = vld [vmem:[#allocation101_spill] sm:$0xff] }
 0x70b   : > { %3287 = vrot.lane.b32.xlu2 %v8505_v42, %s4526_s13 }
 0x70d   : > { %3285 = vrot.lane.b32.xlu1 %v8506_v12, %s4526_s13  ;;  %v7184_v45 = vpop.permute.xlu2 %3157  ;;  %3289 = vrot.lane.b32.xlu0 %v8508_v20, %s4526_s13 }
 0x70e   : > { %8507 = vst [vmem:[#allocation48_spill] sm:$0xff] %v7184_v45 }
 0x70f   : > { %v7188_v9 = vpop.permute.xlu1 %3137  ;;  %v7190_v7 = vpop.permute.xlu0 %3141 }
 0x710   : > { %8509 = vst [vmem:[#allocation96_spill] sm:$0xff] %v7188_v9  ;;  %v3632_v9 = vsel %vm279_vm2, %v8508_v20, %v8516_v55  ;;  %v8524_v20 = vld [vmem:[#allocation72_spill] sm:$0xff] }
 0x711   : > { %v3664_v40 = vsel %vm1849_vm5, %v3632_v9, %v8517_v36 }
 0x713   : > { %3293 = vrot.lane.b32.xlu2 %v8510_v44, %s4526_s13 }
 0x715   : > { %3291 = vrot.lane.b32.xlu1 %v8511_v10, %s4526_s13  ;;  %v7196_v34 = vpop.permute.xlu2 %3163  ;;  %3295 = vrot.lane.b32.xlu0 %v8513_v13, %s4526_s13 }
 0x716   : > { %8512 = vst [vmem:[#allocation76_spill] sm:$0xff] %v7196_v34  ;;  %v3696_v34 = vsel %vm1915_vm7, %v3664_v40, %v7004_v24  ;;  %v3635_v40 = vsel %vm279_vm2, %v8513_v13, %v8524_v20  ;;  %v8525_v24 = vld [vmem:[#allocation111_spill] sm:$0xff] }
 0x717   : > { %v7200_v4 = vpop.permute.xlu1 %3143  ;;  %v7202_v45 = vpop.permute.xlu0 %3147  ;;  %v3728_v32 = vsel %vm1981_vm10, %v3696_v34, %v3042_v1  ;;  %v3667_v34 = vsel %vm1849_vm5, %v3635_v40, %v8525_v24  ;;  %v8526_v1 = vld [vmem:[#allocation24_spill] sm:$0xff]  ;;  %v8532_v24 = vld [vmem:[#allocation110_spill] sm:$0xff] }
 0x718   : > { %8514 = vst [vmem:[#allocation100_spill] sm:$0xff] %v7200_v4  ;;  %v8519_v4 = vld [vmem:[#allocation127_spill] sm:$0xff] }
 0x719   : > { %8515 = vst [vmem:[#allocation128_spill] sm:$0xff] %v7202_v45  ;;  %v3699_v45 = vsel %vm1915_vm7, %v3667_v34, %v7014_v14  ;;  %v3638_v14 = vsel %vm279_vm2, %v8520_v37, %v8532_v24  ;;  %v8533_v34 = vld [vmem:[#allocation11_spill] sm:$0xff] }
 0x71b   : > { %3299 = vrot.lane.b32.xlu2 %v8518_v56, %s4526_s13 }
 0x71d   : > { %3297 = vrot.lane.b32.xlu1 %v8519_v4, %s4526_s13  ;;  %v3170_v63 = vpop.permute.xlu2 %3169  ;;  %3301 = vrot.lane.b32.xlu0 %v8520_v37, %s4526_s13  ;;  %v8536_v37 = vld [vmem:[#allocation37_spill] sm:$0xff] }
 0x71e   : > { %v7219_v55 = vsel %vm3743_vm12, %v3728_v32, %v3170_v63  ;;  %v3731_v63 = vsel %vm1981_vm10, %v3699_v45, %v7136_v60  ;;  %v8527_v32 = vld [vmem:[#allocation69_spill] sm:$0xff]  ;;  %v3670_v45 = vsel %vm1849_vm5, %v3638_v14, %v8533_v34 }
 0x71f   : > { %8521 = vst [vmem:[#allocation103_spill] sm:$0xff] %v7219_v55  ;;  %v7221_v9 = vpop.permute.xlu1 %3149  ;;  %v7223_v36 = vpop.permute.xlu0 %3153  ;;  %v8534_v60 = vld [vmem:[#allocation145_spill] sm:$0xff] }
 0x720   : > { %8522 = vst [vmem:[#allocation138_spill] sm:$0xff] %v7221_v9  ;;  %v8528_v9 = vld [vmem:[#allocation144_spill] sm:$0xff]  ;;  %v8537_v14 = vld [vmem:[#allocation49_spill] sm:$0xff] }
 0x721   : > { %8523 = vst [vmem:[#allocation20_spill] sm:$0xff] %v7223_v36  ;;  %v3630_v36 = vsel %vm279_vm2, %v8506_v12, %v8534_v60  ;;  %v8538_v60 = vld [vmem:[#allocation58_spill] sm:$0xff] }
 0x723   : > { %3305 = vrot.lane.b32.xlu2 %v8526_v1, %s4526_s13 }
 0x725   : > { %3303 = vrot.lane.b32.xlu1 %v8527_v32, %s4526_s13  ;;  %v3176_v55 = vpop.permute.xlu2 %3175  ;;  %3307 = vrot.lane.b32.xlu0 %v8528_v9, %s4526_s13 }
 0x726   : > { %v7241_v13 = vsel %vm3743_vm12, %v3731_v63, %v3176_v55  ;;  %v3702_v55 = vsel %vm1915_vm7, %v3670_v45, %v7026_v11  ;;  %v8535_v63 = vld [vmem:[#allocation155_spill] sm:$0xff] }
 0x727   : > { %8529 = vst [vmem:[#allocation166_spill] sm:$0xff] %v7241_v13  ;;  %v7243_v20 = vpop.permute.xlu1 %3155  ;;  %v7245_v40 = vpop.permute.xlu0 %3159  ;;  %v3662_v13 = vsel %vm1849_vm5, %v3630_v36, %v8535_v63  ;;  %v2543_v63 = vld [vmem:[#allocation3 + $0xf1] sm:$0xff] }
 0x728   : > { %8530 = vst [vmem:[#allocation53_spill] sm:$0xff] %v7243_v20  ;;  %v3734_v20 = vsel %vm1981_vm10, %v3702_v55, %v7148_v62  ;;  %v3694_v34 = vsel %vm1915_vm7, %v3662_v13, %v6950_v17  ;;  %v3641_v55 = vsel %vm279_vm2, %v8528_v9, %v8538_v60  ;;  %v8540_v13 = vld [vmem:[#allocation158_spill] sm:$0xff] }
 0x729   : > { %8531 = vst [vmem:[#allocation139_spill] sm:$0xff] %v7245_v40  ;;  %v3726_v11 = vsel %vm1981_vm10, %v3694_v34, %v7122_v0  ;;  %v8539_v40 = vld [vmem:[#allocation78_spill] sm:$0xff]  ;;  %v3631_v0 = vsel %vm279_vm2, %v8505_v42, %v8540_v13 }
 0x72a   : > { %v3673_v17 = vsel %vm1849_vm5, %v3641_v55, %v8539_v40  ;;  %v3663_v9 = vsel %vm1849_vm5, %v3631_v0, %v6872_v61  ;;  %v8543_v55 = vld [vmem:[#allocation93_spill] sm:$0xff] }
 0x72b   : > { %3311 = vrot.lane.b32.xlu2 %v6862_v57, %s4526_s13  ;;  %v3705_v34 = vsel %vm1915_vm7, %v3673_v17, %v7038_v35  ;;  %v3695_v35 = vsel %vm1915_vm7, %v3663_v9, %v6994_v53 }
 0x72c   : > { %v3737_v60 = vsel %vm1981_vm10, %v3705_v34, %v7157_v8 }
 0x72d   : > { %3309 = vrot.lane.b32.xlu1 %v8536_v37, %s4526_s13  ;;  %v3182_v24 = vpop.permute.xlu2 %3181  ;;  %3313 = vrot.lane.b32.xlu0 %v8537_v14, %s4526_s13 }
 0x72e   : > { %v7270_v12 = vsel %vm3743_vm12, %v3734_v20, %v3182_v24  ;;  %v8541_v20 = vld [vmem:[#allocation60_spill] sm:$0xff] }
 0x72f   : > { %v7274_v36 = vpop.permute.xlu1 %3161  ;;  %v3166_v45 = vpop.permute.xlu0 %3165  ;;  %v3633_v24 = vsel %vm279_vm2, %v8511_v10, %v8541_v20 }
 0x730   : > { %v7277_v62 = vsel %vm3743_vm12, %v3726_v11, %v3166_v45  ;;  %v2575_v11 = vld [vmem:[#allocation3 + $0xf2] sm:$0xff]  ;;  %v8542_v45 = vld [vmem:[#allocation97_spill] sm:$0xff] }
 0x731   : > { %v3665_v40 = vsel %vm1849_vm5, %v3633_v24, %v8542_v45  ;;  %v2559_v24 = vld [vmem:[#allocation3 + $0x32] sm:$0xff] }
 0x732   : > { %v3697_v10 = vsel %vm1915_vm7, %v3665_v40, %v6962_v33  ;;  %v8544_v33 = vld [vmem:[#allocation122_spill] sm:$0xff]  ;;  %v2527_v40 = vld [vmem:[#allocation3 + $0x31] sm:$0xff] }
 0x733   : > { %3423 = vrot.lane.b32.xlu2 %v2543_v63, %s4527_s15  ;;  %v3727_v63 = vsel %vm1981_vm10, %v3695_v35, %v7080_v23  ;;  %v3729_v8 = vsel %vm1981_vm10, %v3697_v10, %v7134_v39  ;;  %v3644_v53 = vsel %vm279_vm2, %v8537_v14, %v8544_v33  ;;  %v8545_v23 = vld [vmem:[#allocation66_spill] sm:$0xff] }
 0x734   : > { %v3676_v34 = vsel %vm1849_vm5, %v3644_v53, %v6879_v28  ;;  %v3634_v39 = vsel %vm279_vm2, %v8510_v44, %v8545_v23  ;;  %v2528_v53 = vld [vmem:[#allocation3 + $0x39] sm:$0xff] }
 0x735   : > { %3315 = vrot.lane.b32.xlu1 %v8543_v55, %s4526_s13  ;;  %v3188_v42 = vpop.permute.xlu2 %3187  ;;  %3551 = vrot.lane.b32.xlu0 %v2575_v11, %s4528_s17  ;;  %v8546_v11 = vld [vmem:[#allocation23_spill] sm:$0xff]  ;;  %v3708_v45 = vsel %vm1915_vm7, %v3676_v34, %v7050_v30  ;;  %v3666_v14 = vsel %vm1849_vm5, %v3634_v39, %v6884_v18  ;;  %v8550_v34 = vld [vmem:[#allocation10_spill] sm:$0xff] }
 0x736   : > { %v7307_v61 = vsel %vm3743_vm12, %v3737_v60, %v3188_v42  ;;  %v3636_v9 = vsel %vm279_vm2, %v8519_v4, %v8546_v11  ;;  %v2544_v60 = vld [vmem:[#allocation3 + $0xf9] sm:$0xff]  ;;  %v3740_v42 = vsel %vm1981_vm10, %v3708_v45, %v7167_v46  ;;  %v3698_v10 = vsel %vm1915_vm7, %v3666_v14, %v7006_v48 }
 0x737   : > { %v3168_v17 = vpop.permute.xlu1 %3167  ;;  %v3172_v13 = vpop.permute.xlu0 %3171  ;;  %v3668_v28 = vsel %vm1849_vm5, %v3636_v9, %v6886_v26  ;;  %v2302_v4 = vld [vmem:[#allocation3] sm:$0xff]  ;;  %v3730_v26 = vsel %vm1981_vm10, %v3698_v10, %v7092_v31  ;;  %v3639_v23 = vsel %vm279_vm2, %v8527_v32, %v8550_v34  ;;  %v2577_v10 = vld [vmem:[#allocation3 + $0x10a] sm:$0xff] }
 0x738   : > { %v7314_v0 = vsel %vm3743_vm12, %v3727_v63, %v3168_v17  ;;  %v7317_v20 = vsel %vm3743_vm12, %v3729_v8, %v3172_v13  ;;  %v3700_v30 = vsel %vm1915_vm7, %v3668_v28, %v6974_v21  ;;  %v8547_v21 = vld [vmem:[#allocation120_spill] sm:$0xff]  ;;  %v8548_v13 = vld [vmem:[#allocation134_spill] sm:$0xff]  ;;  %v8557_v34 = vld [vmem:[#allocation141_spill] sm:$0xff] }
 0x739   : > { %v3732_v46 = vsel %vm1981_vm10, %v3700_v30, %v7146_v5  ;;  %v3615_v48 = vsel %vm279_vm2, %v2302_v4, %v8547_v21  ;;  %v8549_v5 = vld [vmem:[#allocation57_spill] sm:$0xff]  ;;  %v8553_v4 = vld [vmem:[#allocation88_spill] sm:$0xff]  ;;  %v2545_v21 = vld [vmem:[#allocation3 + $0x109] sm:$0xff] }
 0x73a   : > { %v3647_v33 = vsel %vm1849_vm5, %v3615_v48, %v8548_v13  ;;  %v2576_v11 = vld [vmem:[#allocation3 + $0xfa] sm:$0xff]  ;;  %v2529_v48 = vld [vmem:[#allocation3 + $0x49] sm:$0xff] }
 0x73b   : > { %3519 = vrot.lane.b32.xlu2 %v2559_v24, %s4528_s17  ;;  %v3679_v31 = vsel %vm1915_vm7, %v3647_v33, %v6890_v22  ;;  %v3637_v24 = vsel %vm279_vm2, %v8518_v56, %v8549_v5  ;;  %v2560_v9 = vld [vmem:[#allocation3 + $0x3a] sm:$0xff]  ;;  %v3671_v22 = vsel %vm1849_vm5, %v3639_v23, %v6898_v51 }
 0x73c   : > { %v3711_v39 = vsel %vm1981_vm10, %v3679_v31, %v7062_v29  ;;  %v3669_v45 = vsel %vm1849_vm5, %v3637_v24, %v6896_v50  ;;  %v3703_v32 = vsel %vm1915_vm7, %v3671_v22, %v6986_v52  ;;  %v8551_v52 = vld [vmem:[#allocation8_spill] sm:$0xff]  ;;  %v8558_v23 = vld [vmem:[#allocation13_spill] sm:$0xff] }
 0x73d   : > { %3391 = vrot.lane.b32.xlu1 %v2527_v40, %s4527_s15  ;;  %v3194_v44 = vpop.permute.xlu2 %3193  ;;  %3425 = vrot.lane.b32.xlu0 %v2544_v60, %s4527_s15  ;;  %v3744_v40 = vsel %vm3743_vm12, %v3711_v39, %v7178_v27  ;;  %v3701_v29 = vsel %vm1915_vm7, %v3669_v45, %v7016_v2  ;;  %v3735_v50 = vsel %vm1981_vm10, %v3703_v32, %v7155_v3  ;;  %v8554_v3 = vld [vmem:[#allocation113_spill] sm:$0xff]  ;;  %v8560_v45 = vld [vmem:[#allocation47_spill] sm:$0xff] }
 0x73e   : > { %v7346_v18 = vsel %vm3743_vm12, %v3740_v42, %v3194_v44  ;;  %v3733_v51 = vsel %vm1981_vm10, %v3701_v29, %v7104_v16  ;;  %v8552_v44 = vld [vmem:[#allocation160_spill] sm:$0xff]  ;;  %v3645_v22 = vsel %vm279_vm2, %v8543_v55, %v8560_v45  ;;  %v8562_v55 = vld [vmem:[#allocation118_spill] sm:$0xff] }
 0x73f   : > { %v3174_v35 = vpop.permute.xlu1 %3173  ;;  %v3178_v63 = vpop.permute.xlu0 %3177  ;;  %v3618_v2 = vsel %vm279_vm2, %v8552_v44, %v8551_v52  ;;  %v2578_v32 = vld [vmem:[#allocation3 + $0x112] sm:$0xff]  ;;  %v8565_v44 = vld [vmem:[#allocation157_spill] sm:$0xff] }
 0x740   : > { %v7353_v8 = vsel %vm3743_vm12, %v3730_v26, %v3174_v35  ;;  %v7356_v17 = vsel %vm3743_vm12, %v3732_v46, %v3178_v63  ;;  %v3650_v30 = vsel %vm1849_vm5, %v3618_v2, %v8553_v4  ;;  %v3640_v26 = vsel %vm279_vm2, %v8526_v1, %v8554_v3  ;;  %v8555_v46 = vld [vmem:[#allocation94_spill] sm:$0xff] }
 0x741   : > { %v3682_v16 = vsel %vm1915_vm7, %v3650_v30, %v6902_v38  ;;  %v3642_v35 = vsel %vm279_vm2, %v8536_v37, %v8555_v46  ;;  %v3672_v13 = vsel %vm1849_vm5, %v3640_v26, %v6908_v43  ;;  %v8566_v26 = vld [vmem:[#allocation162_spill] sm:$0xff] }
 0x742   : > { %v3714_v63 = vsel %vm1981_vm10, %v3682_v16, %v7074_v49  ;;  %v3674_v38 = vsel %vm1849_vm5, %v3642_v35, %v6910_v41  ;;  %v3704_v49 = vsel %vm1915_vm7, %v3672_v13, %v7028_v19  ;;  %v8567_v46 = vld [vmem:[#allocation90_spill] sm:$0xff]  ;;  %v8569_v13 = vld [vmem:[#allocation15_spill] sm:$0xff] }
 0x743   : > { %3393 = vrot.lane.b32.xlu2 %v2528_v53, %s4527_s15  ;;  %v3747_v33 = vsel %vm3743_vm12, %v3714_v63, %v7190_v7  ;;  %v3706_v37 = vsel %vm1915_vm7, %v3674_v38, %v6998_v6  ;;  %v3736_v43 = vsel %vm1981_vm10, %v3704_v49, %v7116_v54  ;;  %v8556_v6 = vld [vmem:[#allocation40_spill] sm:$0xff]  ;;  %v3624_v35 = vsel %vm279_vm2, %v8567_v46, %v8566_v26  ;;  %v8572_v49 = vld [vmem:[#allocation125_spill] sm:$0xff] }
 0x744   : > { %v3738_v41 = vsel %vm1981_vm10, %v3706_v37, %v7165_v58  ;;  %v3621_v19 = vsel %vm279_vm2, %v8557_v34, %v8556_v6  ;;  %v8559_v58 = vld [vmem:[#allocation124_spill] sm:$0xff]  ;;  %v8586_v26 = vld [vmem:[#allocation137_spill] sm:$0xff] }
 0x745   : > { %3553 = vrot.lane.b32.xlu1 %v2576_v11, %s4528_s17  ;;  %v3264_v56 = vpop.permute.xlu2 %3263  ;;  %3521 = vrot.lane.b32.xlu0 %v2560_v9, %s4528_s17  ;;  %v3653_v39 = vsel %vm1849_vm5, %v3621_v19, %v8558_v23  ;;  %v2546_v11 = vld [vmem:[#allocation3 + $0x111] sm:$0xff]  ;;  %v3643_v9 = vsel %vm279_vm2, %v6862_v57, %v8559_v58  ;;  %v2547_v19 = vld [vmem:[#allocation3 + $0x121] sm:$0xff] }
 0x746   : > { %v7386_v60 = vsel %vm3776_vm13, %v3744_v40, %v3264_v56  ;;  %v3685_v54 = vsel %vm1915_vm7, %v3653_v39, %v6914_v25  ;;  %v2561_v56 = vld [vmem:[#allocation3 + $0x4a] sm:$0xff]  ;;  %v3675_v29 = vsel %vm1849_vm5, %v3643_v9, %v6920_v59  ;;  %v3677_v25 = vsel %vm1849_vm5, %v3645_v22, %v6922_v15  ;;  %v8564_v59 = vld [vmem:[#allocation109_spill] sm:$0xff]  ;;  %v8568_v63 = vld [vmem:[#allocation156_spill] sm:$0xff] }
 0x747   : > { %v3180_v27 = vpop.permute.xlu1 %3179  ;;  %v3184_v14 = vpop.permute.xlu0 %3183  ;;  %v3717_v40 = vsel %vm1981_vm10, %v3685_v54, %v7086_v47  ;;  %v8563_v47 = vld [vmem:[#allocation14_spill] sm:$0xff]  ;;  %v8571_v37 = vld [vmem:[#allocation64_spill] sm:$0xff]  ;;  %v8575_v23 = vld [vmem:[#allocation135_spill] sm:$0xff] }
 0x748   : > { %v7393_v28 = vsel %vm3743_vm12, %v3733_v51, %v3180_v27  ;;  %v7396_v42 = vsel %vm3743_vm12, %v3735_v50, %v3184_v14  ;;  %v8561_v51 = vld [vmem:[#allocation128_spill] sm:$0xff]  ;;  %v3709_v27 = vsel %vm1915_vm7, %v3677_v25, %v8562_v55  ;;  %v3707_v14 = vsel %vm1915_vm7, %v3675_v29, %v8563_v47  ;;  %v8578_v22 = vld [vmem:[#allocation121_spill] sm:$0xff]  ;;  %v8580_v25 = vld [vmem:[#allocation146_spill] sm:$0xff] }
 0x749   : > { %v3750_v50 = vsel %vm3743_vm12, %v3717_v40, %v8561_v51  ;;  %v3739_v15 = vsel %vm1981_vm10, %v3707_v14, %v8564_v59  ;;  %v3741_v2 = vsel %vm1981_vm10, %v3709_v27, %v8565_v44  ;;  %v2530_v34 = vld [vmem:[#allocation3 + $0x51] sm:$0xff] }
 0x74a   : > { %v8577_v58 = vld [vmem:[#allocation20_spill] sm:$0xff]  ;;  %v8582_v59 = vld [vmem:[#allocation87_spill] sm:$0xff] }
 0x74b   : > { %3555 = vrot.lane.b32.xlu2 %v2577_v10, %s4528_s17  ;;  %v2303_v10 = vld [vmem:[#allocation3 + $0x8] sm:$0xff] }
 0x74c   : > { %v3616_v38 = vsel %vm279_vm2, %v2303_v10, %v8569_v13  ;;  %v8585_v10 = vld [vmem:[#allocation36_spill] sm:$0xff] }
 0x74d   : > { %3427 = vrot.lane.b32.xlu1 %v2545_v21, %s4527_s15  ;;  %v3270_v1 = vpop.permute.xlu2 %3269  ;;  %3395 = vrot.lane.b32.xlu0 %v2529_v48, %s4527_s15  ;;  %v3656_v21 = vsel %vm1849_vm5, %v3624_v35, %v8568_v63  ;;  %v2562_v48 = vld [vmem:[#allocation3 + $0x52] sm:$0xff]  ;;  %v3619_v46 = vsel %vm279_vm2, %v8586_v26, %v8585_v10  ;;  %v8588_v63 = vld [vmem:[#allocation154_spill] sm:$0xff] }
 0x74e   : > { %v7427_v53 = vsel %vm3776_vm13, %v3747_v33, %v3270_v1  ;;  %v8570_v33 = vld [vmem:[#allocation98_spill] sm:$0xff]  ;;  %v8587_v35 = vld [vmem:[#allocation92_spill] sm:$0xff] }
 0x74f   : > { %v3186_v7 = vpop.permute.xlu1 %3185  ;;  %v3190_v31 = vpop.permute.xlu0 %3189  ;;  %v3688_v1 = vsel %vm1915_vm7, %v3656_v21, %v8570_v33  ;;  %v3617_v21 = vsel %vm279_vm2, %v8588_v63, %v8587_v35  ;;  %v8604_v10 = vld [vmem:[#allocation68_spill] sm:$0xff]  ;;  %v2548_v63 = vld [vmem:[#allocation3 + $0x129] sm:$0xff] }
 0x750   : > { %v7434_v5 = vsel %vm3743_vm12, %v3736_v43, %v3186_v7  ;;  %v7437_v24 = vsel %vm3743_vm12, %v3738_v41, %v3190_v31  ;;  %v3646_v43 = vsel %vm279_vm2, %v8572_v49, %v8571_v37  ;;  %v8573_v41 = vld [vmem:[#allocation62_spill] sm:$0xff]  ;;  %v8574_v31 = vld [vmem:[#allocation168_spill] sm:$0xff]  ;;  %v8592_v49 = vld [vmem:[#allocation71_spill] sm:$0xff] }
 0x751   : > { %v3648_v7 = vsel %vm1849_vm5, %v3616_v38, %v8573_v41  ;;  %v3720_v6 = vsel %vm1981_vm10, %v3688_v1, %v8574_v31  ;;  %v3678_v39 = vsel %vm1849_vm5, %v3646_v43, %v8575_v23  ;;  %v8590_v38 = vld [vmem:[#allocation22_spill] sm:$0xff]  ;;  %v8591_v1 = vld [vmem:[#allocation147_spill] sm:$0xff]  ;;  %v8593_v31 = vld [vmem:[#allocation164_spill] sm:$0xff] }
 0x752   : > { %v3753_v9 = vsel %vm3743_vm12, %v3720_v6, %v8577_v58  ;;  %v3649_v33 = vsel %vm1849_vm5, %v3617_v21, %v8590_v38  ;;  %v3651_v37 = vsel %vm1849_vm5, %v3619_v46, %v8591_v1  ;;  %v2579_v41 = vld [vmem:[#allocation3 + $0x122] sm:$0xff]  ;;  %v8595_v23 = vld [vmem:[#allocation139_spill] sm:$0xff] }
 0x753   : > { %3429 = vrot.lane.b32.xlu2 %v2546_v11, %s4527_s15  ;;  %v8576_v11 = vld [vmem:[#allocation19_spill] sm:$0xff]  ;;  %v3681_v6 = vsel %vm1915_vm7, %v3649_v33, %v8593_v31  ;;  %v8605_v46 = vld [vmem:[#allocation70_spill] sm:$0xff]  ;;  %v8607_v38 = vld [vmem:[#allocation73_spill] sm:$0xff] }
 0x754   : > { %v3680_v54 = vsel %vm1915_vm7, %v3648_v7, %v8576_v11  ;;  %v2563_v7 = vld [vmem:[#allocation3 + $0x62] sm:$0xff] }
 0x755   : > { %3523 = vrot.lane.b32.xlu1 %v2561_v56, %s4528_s17  ;;  %v3276_v57 = vpop.permute.xlu2 %3275  ;;  %3557 = vrot.lane.b32.xlu0 %v2578_v32, %s4528_s17  ;;  %v3712_v40 = vsel %vm1981_vm10, %v3680_v54, %v8578_v22  ;;  %v8579_v56 = vld [vmem:[#allocation41_spill] sm:$0xff]  ;;  %v2532_v21 = vld [vmem:[#allocation3 + $0x69] sm:$0xff] }
 0x756   : > { %v7468_v52 = vsel %vm3776_vm13, %v3750_v50, %v3276_v57  ;;  %v3710_v32 = vsel %vm1915_vm7, %v3678_v39, %v8579_v56  ;;  %v8581_v50 = vld [vmem:[#allocation96_spill] sm:$0xff]  ;;  %v8596_v54 = vld [vmem:[#allocation149_spill] sm:$0xff] }
 0x757   : > { %v3192_v4 = vpop.permute.xlu1 %3191  ;;  %v3196_v30 = vpop.permute.xlu0 %3195  ;;  %v3742_v51 = vsel %vm1981_vm10, %v3710_v32, %v8580_v25  ;;  %v3745_v57 = vsel %vm3743_vm12, %v3712_v40, %v8581_v50  ;;  %v8598_v40 = vld [vmem:[#allocation38_spill] sm:$0xff]  ;;  %v8599_v32 = vld [vmem:[#allocation100_spill] sm:$0xff]  ;;  %v8610_v31 = vld [vmem:[#allocation25_spill] sm:$0xff] }
 0x758   : > { %v7475_v16 = vsel %vm3743_vm12, %v3739_v15, %v3192_v4  ;;  %v7478_v3 = vsel %vm3743_vm12, %v3741_v2, %v3196_v30  ;;  %v8583_v15 = vld [vmem:[#allocation9_spill] sm:$0xff]  ;;  %v8584_v2 = vld [vmem:[#allocation140_spill] sm:$0xff] }
 0x759   : > { %v3627_v44 = vsel %vm279_vm2, %v8583_v15, %v8582_v59  ;;  %v2531_v30 = vld [vmem:[#allocation3 + $0x61] sm:$0xff]  ;;  %v8600_v59 = vld [vmem:[#allocation43_spill] sm:$0xff] }
 0x75a   : > { %v3659_v4 = vsel %vm1849_vm5, %v3627_v44, %v8584_v2  ;;  %v8601_v15 = vld [vmem:[#allocation42_spill] sm:$0xff]  ;;  %v8602_v2 = vld [vmem:[#allocation17_spill] sm:$0xff] }
 0x75b   : > { %3525 = vrot.lane.b32.xlu2 %v2562_v48, %s4528_s17  ;;  %v8589_v48 = vld [vmem:[#allocation33_spill] sm:$0xff]  ;;  %v3622_v44 = vsel %vm279_vm2, %v8601_v15, %v8600_v59  ;;  %v2564_v59 = vld [vmem:[#allocation3 + $0x6a] sm:$0xff] }
 0x75c   : > { %v3691_v13 = vsel %vm1915_vm7, %v3659_v4, %v8589_v48  ;;  %v8603_v4 = vld [vmem:[#allocation105_spill] sm:$0xff]  ;;  %v3654_v35 = vsel %vm1849_vm5, %v3622_v44, %v8605_v46  ;;  %v8606_v48 = vld [vmem:[#allocation136_spill] sm:$0xff]  ;;  %v8618_v44 = vld [vmem:[#allocation167_spill] sm:$0xff] }
 0x75d   : > { %3397 = vrot.lane.b32.xlu1 %v2530_v34, %s4527_s15  ;;  %v3282_v45 = vpop.permute.xlu2 %3281  ;;  %3431 = vrot.lane.b32.xlu0 %v2547_v19, %s4527_s15  ;;  %v3723_v43 = vsel %vm1981_vm10, %v3691_v13, %v8592_v49  ;;  %v8594_v34 = vld [vmem:[#allocation46_spill] sm:$0xff]  ;;  %v3686_v33 = vsel %vm1915_vm7, %v3654_v35, %v8607_v38  ;;  %v2581_v15 = vld [vmem:[#allocation3 + $0x13a] sm:$0xff]  ;;  %v8621_v35 = vld [vmem:[#allocation159_spill] sm:$0xff] }
 0x75e   : > { %v7510_v29 = vsel %vm3776_vm13, %v3753_v9, %v3282_v45  ;;  %v3683_v19 = vsel %vm1915_vm7, %v3651_v37, %v8594_v34  ;;  %v3756_v39 = vsel %vm3743_vm12, %v3723_v43, %v8595_v23  ;;  %v8597_v9 = vld [vmem:[#allocation129_spill] sm:$0xff]  ;;  %v8608_v37 = vld [vmem:[#allocation30_spill] sm:$0xff]  ;;  %v8609_v43 = vld [vmem:[#allocation80_spill] sm:$0xff] }
 0x75f   : > { %v3198_v55 = vpop.permute.xlu1 %3197  ;;  %v3266_v27 = vpop.permute.xlu0 %3265  ;;  %v3715_v58 = vsel %vm1981_vm10, %v3683_v19, %v8596_v54  ;;  %v3713_v45 = vsel %vm1981_vm10, %v3681_v6, %v8597_v9  ;;  %v3718_v49 = vsel %vm1981_vm10, %v3686_v33, %v8608_v37  ;;  %v8611_v34 = vld [vmem:[#allocation138_spill] sm:$0xff]  ;;  %v8612_v9 = vld [vmem:[#allocation91_spill] sm:$0xff] }
 0x760   : > { %v7517_v47 = vsel %vm3743_vm12, %v3742_v51, %v3198_v55  ;;  %v7520_v14 = vsel %vm3776_vm13, %v3745_v57, %v3266_v27  ;;  %v3746_v56 = vsel %vm3743_vm12, %v3713_v45, %v8598_v40  ;;  %v3748_v25 = vsel %vm3743_vm12, %v3715_v58, %v8599_v32  ;;  %v2580_v27 = vld [vmem:[#allocation3 + $0x12a] sm:$0xff]  ;;  %v2549_v58 = vld [vmem:[#allocation3 + $0x139] sm:$0xff] }
 0x761   : > { %v3751_v19 = vsel %vm3743_vm12, %v3718_v49, %v8611_v34  ;;  %v8613_v45 = vld [vmem:[#allocation133_spill] sm:$0xff]  ;;  %v8614_v40 = vld [vmem:[#allocation131_spill] sm:$0xff] }
 0x762   : > { %v8625_v34 = vld [vmem:[#allocation75_spill] sm:$0xff] }
 0x763   : > { %3399 = vrot.lane.b32.xlu2 %v2531_v30, %s4527_s15  ;;  %v3620_v30 = vsel %vm279_vm2, %v8603_v4, %v8602_v2  ;;  %v8619_v4 = vld [vmem:[#allocation34_spill] sm:$0xff] }
 0x764   : > { %v3652_v26 = vsel %vm1849_vm5, %v3620_v30, %v8604_v10 }
 0x765   : > { %3559 = vrot.lane.b32.xlu1 %v2579_v41, %s4528_s17  ;;  %v3288_v11 = vpop.permute.xlu2 %3287  ;;  %3527 = vrot.lane.b32.xlu0 %v2563_v7, %s4528_s17  ;;  %v3684_v13 = vsel %vm1915_vm7, %v3652_v26, %v8606_v48  ;;  %v8620_v26 = vld [vmem:[#allocation51_spill] sm:$0xff] }
 0x766   : > { %v7555_v22 = vsel %vm3776_vm13, %v3756_v39, %v3288_v11  ;;  %v3716_v41 = vsel %vm1981_vm10, %v3684_v13, %v8609_v43  ;;  %v8623_v13 = vld [vmem:[#allocation53_spill] sm:$0xff]  ;;  %v3883_v43 = vld [vmem:[%s7988_s3 + $0x40] sm:$0xff] }
 0x767   : > { %v3268_v51 = vpop.permute.xlu1 %3267  ;;  %v3272_v50 = vpop.permute.xlu0 %3271  ;;  %v3749_v6 = vsel %vm3743_vm12, %v3716_v41, %v8610_v31  ;;  %v3882_v41 = vld [vmem:[%s7988_s3 + $0x38] sm:$0xff]  ;;  %4356 = vmatpush.msra.mxu2 %v3883_v43  ;;  %3992 = vmatpush.msra.mxu1 %v3883_v43 }
 0x768   : > { %v7562_v57 = vsel %vm3776_vm13, %v3746_v56, %v3268_v51  ;;  %v7565_v55 = vsel %vm3776_vm13, %v3748_v25, %v3272_v50  ;;  %v8615_v56 = vld [vmem:[#allocation152_spill] sm:$0xff]  ;;  %v8616_v25 = vld [vmem:[#allocation161_spill] sm:$0xff]  ;;  %v8617_v50 = vld [vmem:[#allocation107_spill] sm:$0xff] }
 0x769   : > { %v3623_v32 = vsel %vm279_vm2, %v8615_v56, %v8614_v40  ;;  %v2565_v31 = vld [vmem:[#allocation3 + $0x7a] sm:$0xff]  ;;  %4357 = vmatpush.msra.mxu2 %v3882_v41  ;;  %3993 = vmatpush.msra.mxu1 %v3882_v41  ;;  %v8634_v41 = vld [vmem:[#allocation74_spill] sm:$0xff] }
 0x76a   : > { %v3655_v51 = vsel %vm1849_vm5, %v3623_v32, %v8616_v25  ;;  %v8628_v40 = vld [vmem:[#allocation65_spill] sm:$0xff] }
 0x76b   : > { %3561 = vrot.lane.b32.xlu2 %v2580_v27, %s4528_s17  ;;  %v3687_v2 = vsel %vm1915_vm7, %v3655_v51, %v8618_v44  ;;  %v2533_v32 = vld [vmem:[#allocation3 + $0x79] sm:$0xff]  ;;  %v2550_v25 = vld [vmem:[#allocation3 + $0x141] sm:$0xff]  ;;  %v8631_v44 = vld [vmem:[#allocation67_spill] sm:$0xff] }
 0x76c   : > { %v8629_v51 = vld [vmem:[#allocation61_spill] sm:$0xff] }
 0x76d   : > { %3433 = vrot.lane.b32.xlu1 %v2548_v63, %s4527_s15  ;;  %v3294_v1 = vpop.permute.xlu2 %3293  ;;  %3401 = vrot.lane.b32.xlu0 %v2532_v21, %s4527_s15  ;;  %v3719_v63 = vsel %vm1981_vm10, %v3687_v2, %v8621_v35  ;;  %v8622_v21 = vld [vmem:[#allocation63_spill] sm:$0xff]  ;;  %v8633_v35 = vld [vmem:[#allocation48_spill] sm:$0xff]  ;;  %v2534_v43 = vld [vmem:[#allocation3 + $0x81] sm:$0xff] }
 0x76e   : > { %v7590_v7 = vsel %vm3776_vm13, %v7277_v62, %v3294_v1  ;;  %v3625_v62 = vsel %vm279_vm2, %v8613_v45, %v8612_v9  ;;  %v3752_v48 = vsel %vm3743_vm12, %v3719_v63, %v8622_v21  ;;  %v3881_v9 = vld [vmem:[%s7988_s3 + $0x30] sm:$0xff]  ;;  %v8627_v45 = vld [vmem:[#allocation27_spill] sm:$0xff] }
 0x76f   : > { %v3274_v23 = vpop.permute.xlu1 %3273  ;;  %v3278_v39 = vpop.permute.xlu0 %3277  ;;  %v3657_v27 = vsel %vm1849_vm5, %v3625_v62, %v8617_v50  ;;  %4358 = vmatpush.msra.mxu2 %v3881_v9  ;;  %3994 = vmatpush.msra.mxu1 %v3881_v9 }
 0x770   : > { %v7597_v11 = vsel %vm3776_vm13, %v3749_v6, %v3274_v23  ;;  %v7600_v54 = vsel %vm3776_vm13, %v3751_v19, %v3278_v39  ;;  %v3689_v30 = vsel %vm1915_vm7, %v3657_v27, %v8619_v4  ;;  %v8624_v6 = vld [vmem:[#allocation132_spill] sm:$0xff]  ;;  %v4448_v23 = vld [vmem:[#allocation3 + $0x80] sm:$0xff] }
 0x771   : > { %v3721_v46 = vsel %vm1981_vm10, %v3689_v30, %v8620_v26  ;;  %v3628_v19 = vsel %vm279_vm2, %v8625_v34, %v8624_v6  ;;  %v8626_v39 = vld [vmem:[#allocation16_spill] sm:$0xff]  ;;  %v8630_v27 = vld [vmem:[#allocation89_spill] sm:$0xff]  ;;  %v8635_v34 = vld [vmem:[#allocation119_spill] sm:$0xff] }
 0x772   : > { %v3754_v38 = vsel %vm3743_vm12, %v3721_v46, %v8623_v13  ;;  %v3660_v56 = vsel %vm1849_vm5, %v3628_v19, %v8628_v40  ;;  %v8632_v4 = vld [vmem:[#allocation104_spill] sm:$0xff]  ;;  %v3880_v46 = vld [vmem:[%s7988_s3 + $0x28] sm:$0xff] }
 0x773   : > { %3435 = vrot.lane.b32.xlu2 %v2549_v58, %s4527_s15  ;;  %v3626_v58 = vsel %vm279_vm2, %v4448_v23, %v8626_v39  ;;  %4359 = vmatpush.msra.mxu2 %v3880_v46  ;;  %v3877_v6 = vld [vmem:[%s7988_s3 + $0x10] sm:$0xff]  ;;  %v2582_v23 = vld [vmem:[#allocation3 + $0x142] sm:$0xff]  ;;  %v8637_v40 = vld [vmem:[#allocation39_spill] sm:$0xff] }
 0x774   : > { %v3658_v62 = vsel %vm1849_vm5, %v3626_v58, %v8627_v45  ;;  %3995 = vmatpush.msra.mxu1 %v3880_v46  ;;  %v2566_v39 = vld [vmem:[#allocation3 + $0x82] sm:$0xff] }
 0x775   : > { %3529 = vrot.lane.b32.xlu1 %v2564_v59, %s4528_s17  ;;  %v7618_v10 = vpop.permute.xlu2 %3299  ;;  %3563 = vrot.lane.b32.xlu0 %v2581_v15, %s4528_s17  ;;  %v3690_v50 = vsel %vm1915_vm7, %v3658_v62, %v8629_v51  ;;  %v3692_v59 = vsel %vm1915_vm7, %v3660_v56, %v8630_v27  ;;  %v8636_v58 = vld [vmem:[#allocation82_spill] sm:$0xff]  ;;  %v3876_v62 = vld [vmem:[%s7988_s3 + $0x8] sm:$0xff] }
 0x776   : > { %v3724_v2 = vsel %vm1981_vm10, %v3692_v59, %v8631_v44  ;;  %v3722_v30 = vsel %vm1981_vm10, %v3690_v50, %v8632_v4  ;;  %v2583_v44 = vld [vmem:[#allocation3 + $0x152] sm:$0xff] }
 0x777   : > { %v3280_v33 = vpop.permute.xlu1 %3279  ;;  %v3284_v1 = vpop.permute.xlu0 %3283  ;;  %v3755_v63 = vsel %vm3743_vm12, %v3722_v30, %v8633_v35  ;;  %v3757_v21 = vsel %vm3743_vm12, %v3724_v2, %v7274_v36  ;;  %v4449_v36 = vld [vmem:[#allocation3 + $0xa8] sm:$0xff]  ;;  %v2535_v2 = vld [vmem:[#allocation3 + $0x91] sm:$0xff]  ;;  %v2552_v35 = vld [vmem:[#allocation3 + $0x159] sm:$0xff] }
 0x778   : > { %v7630_v37 = vsel %vm3776_vm13, %v3752_v48, %v3280_v33  ;;  %v7633_v49 = vsel %vm3776_vm13, %v3754_v38, %v3284_v1  ;;  %v3879_v33 = vld [vmem:[%s7988_s3 + $0x20] sm:$0xff]  ;;  %v3878_v1 = vld [vmem:[%s7988_s3 + $0x18] sm:$0xff] }
 0x779   : > { %4360 = vmatpush.msra.mxu2 %v3879_v33  ;;  %3996 = vmatpush.msra.mxu1 %v3879_v33 }
 0x77b   : > { %3531 = vrot.lane.b32.xlu2 %v2565_v31, %s4528_s17  ;;  %v3629_v31 = vsel %vm279_vm2, %v4449_v36, %v8634_v41  ;;  %4361 = vmatpush.msra.mxu2 %v3878_v1  ;;  %v2536_v36 = vld [vmem:[#allocation3 + $0x99] sm:$0xff]  ;;  %v2553_v41 = vld [vmem:[#allocation3 + $0x169] sm:$0xff] }
 0x77c   : > { %v3661_v19 = vsel %vm1849_vm5, %v3629_v31, %v8635_v34  ;;  %3997 = vmatpush.msra.mxu1 %v3878_v1 }
 0x77d   : > { %3403 = vrot.lane.b32.xlu1 %v2533_v32, %s4527_s15  ;;  %v3306_v15 = vpop.permute.xlu2 %3305  ;;  %3437 = vrot.lane.b32.xlu0 %v2550_v25, %s4527_s15  ;;  %v3693_v9 = vsel %vm1915_vm7, %v3661_v19, %v8636_v58  ;;  %v8638_v25 = vld [vmem:[#allocation76_spill] sm:$0xff]  ;;  %v2522_v58 = vld [vmem:[#allocation3 + $0x170] sm:$0xff] }
 0x77e   : > { %v7666_v26 = vsel %vm3776_vm13, %v7356_v17, %v3306_v15  ;;  %v3725_v56 = vsel %vm1981_vm10, %v3693_v9, %v8637_v40  ;;  %4362 = vmatpush.msra.mxu2 %v3877_v6  ;;  %3998 = vmatpush.msra.mxu1 %v3877_v6  ;;  %v3875_v15 = vld [vmem:[%s7988_s3] sm:$0xff] }
 0x77f   : > { %v3286_v48 = vpop.permute.xlu1 %3285  ;;  %v3290_v13 = vpop.permute.xlu0 %3289  ;;  %v3758_v51 = vsel %vm3743_vm12, %v3725_v56, %v8638_v25  ;;  %v2554_v25 = vld [vmem:[#allocation3 + $0x171] sm:$0xff] }
 0x780   : > { %v7676_v38 = vsel %vm3776_vm13, %v3755_v63, %v3286_v48  ;;  %v7679_v17 = vsel %vm3776_vm13, %v3757_v21, %v3290_v13  ;;  %4363 = vmatpush.msra.mxu2 %v3876_v62  ;;  %3999 = vmatpush.msra.mxu1 %v3876_v62  ;;  %v2567_v63 = vld [vmem:[#allocation3 + $0x92] sm:$0xff]  ;;  %v2584_v21 = vld [vmem:[#allocation3 + $0x15a] sm:$0xff] }
 0x782   : > { %4364 = vmatpush.msra.mxu2 %v3875_v15  ;;  %4000 = vmatpush.msra.mxu1 %v3875_v15 }
 0x783   : > { %3405 = vrot.lane.b32.xlu2 %v2534_v43, %s4527_s15  ;;  %v2568_v43 = vld [vmem:[#allocation3 + $0x9a] sm:$0xff] }
 0x785   : > { %3565 = vrot.lane.b32.xlu1 %v2582_v23, %s4528_s17  ;;  %v3312_v45 = vpop.permute.xlu2 %3311  ;;  %3533 = vrot.lane.b32.xlu0 %v2566_v39, %s4528_s17  ;;  %v2537_v23 = vld [vmem:[#allocation3 + $0xa9] sm:$0xff] }
 0x786   : > { %v7706_v32 = vsel %vm3776_vm13, %v7396_v42, %v3312_v45  ;;  %v2551_v42 = vld [vmem:[#allocation3 + $0x151] sm:$0xff] }
 0x787   : > { %v3292_v50 = vpop.permute.xlu1 %3291  ;;  %v3296_v27 = vpop.permute.xlu0 %3295  ;;  %v2585_v39 = vld [vmem:[#allocation3 + $0x16a] sm:$0xff] }
 0x788   : > { %v7711_v59 = vsel %vm3776_vm13, %v3758_v51, %v3292_v50  ;;  %v2569_v51 = vld [vmem:[#allocation3 + $0xaa] sm:$0xff]  ;;  %v2586_v50 = vld [vmem:[#allocation3 + $0x172] sm:$0xff] }
 0x78b   : > { %3567 = vrot.lane.b32.xlu2 %v2583_v44, %s4528_s17 }
 0x78d   : > { %3439 = vrot.lane.b32.xlu1 %v2551_v42, %s4527_s15  ;;  %v3424_v4 = vpop.permute.xlu2 %3423  ;;  %3407 = vrot.lane.b32.xlu0 %v2535_v2, %s4527_s15  ;;  %v2523_v42 = vld [vmem:[#allocation3 + $0x180] sm:$0xff]  ;;  %v2538_v2 = vld [vmem:[#allocation3 + $0xb1] sm:$0xff] }
 0x78f   : > { %v3298_v30 = vpop.permute.xlu1 %3297  ;;  %v7719_v46 = vpop.permute.xlu0 %3301 }
 0x793   : > { %3441 = vrot.lane.b32.xlu2 %v2552_v35, %s4527_s15 }
 0x795   : > { %3535 = vrot.lane.b32.xlu1 %v2567_v63, %s4528_s17  ;;  %v3520_v48 = vpop.permute.xlu2 %3519  ;;  %3569 = vrot.lane.b32.xlu0 %v2584_v21, %s4528_s17  ;;  %v8639_v63 = vld [vmem:[#allocation103_spill] sm:$0xff] }
 0x796   : > { %v3794_v21 = vsel %vm3776_vm13, %v8639_v63, %v3298_v30  ;;  %v4450_v30 = vld [vmem:[#allocation3 + $0x181] sm:$0xff]  ;;  %v2572_v63 = vld [vmem:[#allocation3 + $0xca] sm:$0xff] }
 0x797   : > { %v7724_v13 = vpop.permute.xlu1 %3303  ;;  %v3308_v33 = vpop.permute.xlu0 %3307 }
 0x798   : > { %v7728_v1 = vsel %vm3776_vm13, %v7393_v28, %v3308_v33 }
 0x79b   : > { %3537 = vrot.lane.b32.xlu2 %v2568_v43, %s4528_s17 }
 0x79d   : > { %3409 = vrot.lane.b32.xlu1 %v2536_v36, %s4527_s15  ;;  %v3394_v31 = vpop.permute.xlu2 %3393  ;;  %3443 = vrot.lane.b32.xlu0 %v2553_v41, %s4527_s15 }
 0x79f   : > { %v3310_v6 = vpop.permute.xlu1 %3309  ;;  %v3314_v34 = vpop.permute.xlu0 %3313 }
 0x7a0   : > { %v7735_v19 = vsel %vm3776_vm13, %v7270_v12, %v3310_v6  ;;  %v7739_v28 = vsel %vm3776_vm13, %v7434_v5, %v3314_v34  ;;  %v3793_v12 = vsel %vm3776_vm13, %v7314_v0, %v3296_v27  ;;  %v8640_v6 = vld [vmem:[#allocation114_spill] sm:$0xff] }
 0x7a1   : > { %v3826_v45 = vsel %vm3809_vm14, %v3793_v12, %v3424_v4  ;;  %v2570_v4 = vld [vmem:[#allocation3 + $0xb2] sm:$0xff]  ;;  %v2539_v34 = vld [vmem:[#allocation3 + $0xc1] sm:$0xff] }
 0x7a3   : > { %3411 = vrot.lane.b32.xlu2 %v2537_v23, %s4527_s15 }
 0x7a5   : > { %3571 = vrot.lane.b32.xlu1 %v2585_v39, %s4528_s17  ;;  %v3556_v9 = vpop.permute.xlu2 %3555  ;;  %3317 = vrot.lane.b32.xlu0 %v2522_v58, %s4526_s13 }
 0x7a7   : > { %v3316_v5 = vpop.permute.xlu1 %3315  ;;  %v3552_v62 = vpop.permute.xlu0 %3551 }
 0x7a8   : > { %v7749_v40 = vsel %vm3776_vm13, %v7307_v61, %v3316_v5  ;;  %v3859_v56 = vsel %vm3842_vm15, %v3826_v45, %v3552_v62  ;;  %v2571_v45 = vld [vmem:[#allocation3 + $0xc2] sm:$0xff] }
 0x7a9   : > { %4328 = vmatmul.msk.f32.vlgmr.msra.gmra.mxu2 %vm3888_vm0, %v3859_v56  ;;  %v2524_v5 = vld [vmem:[#allocation3 + $0x188] sm:$0xff] }
 0x7aa   : > { %v4451_v56 = vld [vmem:[#allocation3 + $0x189] sm:$0xff] }
 0x7ab   : > { %3445 = vrot.lane.b32.xlu2 %v2554_v25, %s4527_s15 }
 0x7ad   : > { %3539 = vrot.lane.b32.xlu1 %v2569_v51, %s4528_s17  ;;  %v3430_v0 = vpop.permute.xlu2 %3429  ;;  %3573 = vrot.lane.b32.xlu0 %v2586_v50, %s4528_s17 }
 0x7af   : > { %v3392_v27 = vpop.permute.xlu1 %3391  ;;  %v3426_v15 = vpop.permute.xlu0 %3425 }
 0x7b0   : > { %v3810_v61 = vsel %vm3809_vm14, %v7386_v60, %v3392_v27  ;;  %v3811_v60 = vsel %vm3809_vm14, %v7520_v14, %v3394_v31  ;;  %v3795_v31 = vsel %vm3776_vm13, %v7317_v20, %v7618_v10  ;;  %v3796_v20 = vsel %vm3776_vm13, %v7353_v8, %v7719_v46  ;;  %v8641_v8 = vld [vmem:[#allocation143_spill] sm:$0xff] }
 0x7b1   : > { %v3843_v44 = vsel %vm3842_vm15, %v3810_v61, %v3520_v48  ;;  %v3827_v48 = vsel %vm3809_vm14, %v3794_v21, %v3426_v15  ;;  %v3829_v10 = vsel %vm3809_vm14, %v3796_v20, %v3430_v0  ;;  %v2540_v15 = vld [vmem:[#allocation3 + $0xc9] sm:$0xff]  ;;  %v2525_v61 = vld [vmem:[#allocation3 + $0x198] sm:$0xff] }
 0x7b2   : > { %4312 = vmatmul.msk.f32.vlgmr.msra.gmra.mxu1 %vm3888_vm0, %v3843_v44  ;;  %v8642_v21 = vld [vmem:[#allocation166_spill] sm:$0xff] }
 0x7b3   : > { %3319 = vrot.lane.b32.xlu2 %v2523_v42, %s4526_s13  ;;  %v2557_v42 = vld [vmem:[#allocation3 + $0x199] sm:$0xff] }
 0x7b5   : > { %3413 = vrot.lane.b32.xlu1 %v2538_v2, %s4527_s15  ;;  %v3526_v35 = vpop.permute.xlu2 %3525  ;;  %3541 = vrot.lane.b32.xlu0 %v2570_v4, %s4528_s17  ;;  %v2589_v4 = vld [vmem:[#allocation3 + $0x19a] sm:$0xff] }
 0x7b7   : > { %v3554_v33 = vpop.permute.xlu1 %3553  ;;  %v3522_v43 = vpop.permute.xlu0 %3521 }
 0x7b8   : > { %v3860_v36 = vsel %vm3842_vm15, %v3827_v48, %v3554_v33  ;;  %v3844_v41 = vsel %vm3842_vm15, %v3811_v60, %v3522_v43  ;;  %v3797_v60 = vsel %vm3776_vm13, %v8642_v21, %v7724_v13  ;;  %v2541_v13 = vld [vmem:[#allocation3 + $0xd9] sm:$0xff] }
 0x7b9   : > { %4329 = vmatmul.msk.f32.gmra.mxu2 %vm3888_vm0, %v3860_v36 }
 0x7ba   : > { %4313 = vmatmul.msk.f32.gmra.mxu1 %vm3888_vm0, %v3844_v41 }
 0x7bb   : > { %3575 = vrot.lane.b32.xlu2 %v8640_v6, %s4528_s17  ;;  %v2526_v6 = vld [vmem:[#allocation3 + $0x1a0] sm:$0xff] }
 0x7bd   : > { %3447 = vrot.lane.b32.xlu1 %v4450_v30, %s4527_s15  ;;  %v3400_v14 = vpop.permute.xlu2 %3399  ;;  %3415 = vrot.lane.b32.xlu0 %v2539_v34, %s4527_s15  ;;  %v2573_v34 = vld [vmem:[#allocation3 + $0xda] sm:$0xff] }
 0x7bf   : > { %v3428_v23 = vpop.permute.xlu1 %3427  ;;  %v3396_v39 = vpop.permute.xlu0 %3395 }
 0x7c0   : > { %v3828_v58 = vsel %vm3809_vm14, %v3795_v31, %v3428_v23  ;;  %v2590_v23 = vld [vmem:[#allocation3 + $0x1a2] sm:$0xff] }
 0x7c1   : > { %v3861_v12 = vsel %vm3842_vm15, %v3828_v58, %v3556_v9  ;;  %v3812_v9 = vsel %vm3809_vm14, %v7562_v57, %v3396_v39  ;;  %v2558_v58 = vld [vmem:[#allocation3 + $0x1a1] sm:$0xff] }
 0x7c2   : > { %4330 = vmatmul.msk.f32.gmra.mxu2 %vm3888_vm0, %v3861_v12  ;;  %v2542_v12 = vld [vmem:[#allocation3 + $0xe1] sm:$0xff] }
 0x7c3   : > { %3543 = vrot.lane.b32.xlu2 %v2571_v45, %s4528_s17 }
 0x7c5   : > { %3321 = vrot.lane.b32.xlu1 %v2524_v5, %s4526_s13  ;;  %v3562_v62 = vpop.permute.xlu2 %3561  ;;  %3449 = vrot.lane.b32.xlu0 %v4451_v56, %s4527_s15 }
 0x7c7   : > { %v3524_v25 = vpop.permute.xlu1 %3523  ;;  %v3558_v51 = vpop.permute.xlu0 %3557 }
 0x7c8   : > { %v3845_v50 = vsel %vm3842_vm15, %v3812_v9, %v3524_v25  ;;  %v3862_v27 = vsel %vm3842_vm15, %v3829_v10, %v3558_v51  ;;  %v2574_v9 = vld [vmem:[#allocation3 + $0xe2] sm:$0xff] }
 0x7c9   : > { %4314 = vmatmul.msk.f32.gmra.mxu1 %vm3888_vm0, %v3845_v50 }
 0x7ca   : > { %4331 = vmatmul.msk.f32.gmra.mxu2 %vm3888_vm0, %v3862_v27 }
 0x7cb   : > { %3417 = vrot.lane.b32.xlu2 %v2540_v15, %s4527_s15 }
 0x7cd   : > { %3577 = vrot.lane.b32.xlu1 %v8641_v8, %s4528_s17  ;;  %v3436_v46 = vpop.permute.xlu2 %3435  ;;  %3323 = vrot.lane.b32.xlu0 %v2525_v61, %s4526_s13 }
 0x7ce   : > { %v3832_v45 = vsel %vm3809_vm14, %v7728_v1, %v3436_v46 }
 0x7cf   : > { %v3398_v57 = vpop.permute.xlu1 %3397  ;;  %v3432_v0 = vpop.permute.xlu0 %3431 }
 0x7d0   : > { %v3813_v44 = vsel %vm3809_vm14, %v7427_v53, %v3398_v57  ;;  %v3814_v53 = vsel %vm3809_vm14, %v7565_v55, %v3400_v14 }
 0x7d1   : > { %v3846_v2 = vsel %vm3842_vm15, %v3813_v44, %v3526_v35  ;;  %v3830_v35 = vsel %vm3809_vm14, %v3797_v60, %v3432_v0 }
 0x7d2   : > { %4315 = vmatmul.msk.f32.gmra.mxu1 %vm3888_vm0, %v3846_v2 }
 0x7d3   : > { %3451 = vrot.lane.b32.xlu2 %v2557_v42, %s4527_s15 }
 0x7d5   : > { %3545 = vrot.lane.b32.xlu1 %v2572_v63, %s4528_s17  ;;  %3579 = vrot.lane.b32.xlu0 %v2589_v4, %s4528_s17  ;;  %v3532_v48 = vpop.permute.xlu2 %3531 }
 0x7d7   : > { %v3560_v33 = vpop.permute.xlu1 %3559  ;;  %v3528_v43 = vpop.permute.xlu0 %3527 }
 0x7d8   : > { %v3863_v36 = vsel %vm3842_vm15, %v3830_v35, %v3560_v33  ;;  %v3847_v41 = vsel %vm3842_vm15, %v3814_v53, %v3528_v43 }
 0x7d9   : > { %4332 = vmatmul.msk.f32.gmra.mxu2 %vm3888_vm0, %v3863_v36 }
 0x7da   : > { %4316 = vmatmul.msk.f32.gmra.mxu1 %vm3888_vm0, %v3847_v41 }
 0x7db   : > { %3325 = vrot.lane.b32.xlu2 %v2526_v6, %s4526_s13 }
 0x7dd   : > { %3419 = vrot.lane.b32.xlu1 %v2541_v13, %s4527_s15  ;;  %3547 = vrot.lane.b32.xlu0 %v2573_v34, %s4528_s17  ;;  %v3406_v14 = vpop.permute.xlu2 %3405 }
 0x7de   : > { %v3817_v27 = vsel %vm3809_vm14, %v7600_v54, %v3406_v14 }
 0x7df   : > { %v3434_v55 = vpop.permute.xlu1 %3433  ;;  %v3402_v30 = vpop.permute.xlu0 %3401 }
 0x7e0   : > { %v3831_v31 = vsel %vm3809_vm14, %v7666_v26, %v3434_v55  ;;  %v3815_v5 = vsel %vm3809_vm14, %v7597_v11, %v3402_v30 }
 0x7e1   : > { %v3864_v39 = vsel %vm3842_vm15, %v3831_v31, %v3562_v62 }
 0x7e2   : > { %4333 = vmatmul.msk.f32.gmra.mxu2 %vm3888_vm0, %v3864_v39 }
 0x7e3   : > { %3581 = vrot.lane.b32.xlu2 %v2590_v23, %s4528_s17 }
 0x7e5   : > { %3453 = vrot.lane.b32.xlu1 %v2558_v58, %s4527_s15  ;;  %3421 = vrot.lane.b32.xlu0 %v2542_v12, %s4527_s15  ;;  %v3568_v10 = vpop.permute.xlu2 %3567  ;;  %v7882_v58 = vld [vmem:[%s7989_s4] ss:$0 sm:$0xff] }
 0x7e7   : > { %v3530_v26 = vpop.permute.xlu1 %3529  ;;  %v3564_v56 = vpop.permute.xlu0 %3563 }
 0x7e8   : > { %v3848_v62 = vsel %vm3842_vm15, %v3815_v5, %v3530_v26  ;;  %v3865_v20 = vsel %vm3842_vm15, %v3832_v45, %v3564_v56 }
 0x7e9   : > { %4317 = vmatmul.msk.f32.gmra.mxu1 %vm3888_vm0, %v3848_v62 }
 0x7ea   : > { %4334 = vmatmul.msk.f32.gmra.mxu2 %vm3888_vm0, %v3865_v20 }
 0x7ed   : > { %3549 = vrot.lane.b32.xlu1 %v2574_v9, %s4528_s17  ;;  %v3442_v50 = vpop.permute.xlu2 %3441  ;;  %s215_s17 = sand.u32 1, %s4506_s19  }
 0x7ee   : > { %s4276_s7 = sshll.u32 %s215_s17, 4  ;;  %s4197_s23 = scalar_lea.sflag [#allocation5], %s215_s17 }
 0x7ef   : > { %v3404_v25 = vpop.permute.xlu1 %3403  ;;  %v3438_v51 = vpop.permute.xlu0 %3437  ;;  %s217_s9 = scalar_lea.vmem [#allocation4], %s4276_s7 }
 0x7f0   : > { %v3816_v1 = vsel %vm3809_vm14, %v7468_v52, %v3404_v25  ;;  %v3833_v15 = vsel %vm3809_vm14, %v7735_v19, %v3438_v51  ;;  %v3835_v19 = vsel %vm3809_vm14, %v7739_v28, %v3442_v50  ;;  %s4210_s16 = sshll.u32 %s217_s9, 4  ;;  %s4211_s16 = int_to_ptr.vmem [resolvable:$true] %s4210_s16 }
 0x7f1   : > { %v3849_v11 = vsel %vm3842_vm15, %v3816_v1, %v3532_v48 }
 0x7f2   : > { %4318 = vmatmul.msk.f32.gmra.mxu1 %vm3888_vm0, %v3849_v11 }
 0x7f5   : > { %v3538_v52 = vpop.permute.xlu2 %3537 }
 0x7f7   : > { %v3566_v61 = vpop.permute.xlu1 %3565  ;;  %v3534_v8 = vpop.permute.xlu0 %3533 }
 0x7f8   : > { %v3866_v46 = vsel %vm3842_vm15, %v3833_v15, %v3566_v61  ;;  %v3850_v57 = vsel %vm3842_vm15, %v3817_v27, %v3534_v8 }
 0x7f9   : > { %4335 = vmatmul.msk.f32.gmra.mxu2 %vm3888_vm0, %v3866_v46 }
 0x7fa   : > { %4319 = vmatmul.msk.f32.gmra.mxu1 %vm3888_vm0, %v3850_v57 }
 0x7fd   : > { %v3412_v21 = vpop.permute.xlu2 %3411 }
 0x7ff   : > { %v3440_v0 = vpop.permute.xlu1 %3439  ;;  %v3408_v44 = vpop.permute.xlu0 %3407 }
 0x800   : > { %v3834_v42 = vsel %vm3809_vm14, %v7706_v32, %v3440_v0  ;;  %v3818_v2 = vsel %vm3809_vm14, %v7630_v37, %v3408_v44 }
 0x801   : > { %v3867_v54 = vsel %vm3842_vm15, %v3834_v42, %v3568_v10 }
 0x802   : > { %4336 = vmatmul.msk.f32.gmra.mxu2 %vm3888_vm0, %v3867_v54 }
 0x805   : > { %v3446_v33 = vpop.permute.xlu2 %3445 }
 0x807   : > { %v3536_v4 = vpop.permute.xlu1 %3535  ;;  %v3570_v63 = vpop.permute.xlu0 %3569 }
 0x808   : > { %v3851_v60 = vsel %vm3842_vm15, %v3818_v2, %v3536_v4  ;;  %v3868_v48 = vsel %vm3842_vm15, %v3835_v19, %v3570_v63 }
 0x809   : > { %4320 = vmatmul.msk.f32.gmra.mxu1 %vm3888_vm0, %v3851_v60 }
 0x80a   : > { %4337 = vmatmul.msk.f32.gmra.mxu2 %vm3888_vm0, %v3868_v48 }
 0x80d   : > { %v3320_v6 = vpop.permute.xlu2 %3319 }
 0x80e   : > { %v3805_v5 = vsel %vm3776_vm13, %v7475_v16, %v3320_v6 }
 0x80f   : > { %v3410_v32 = vpop.permute.xlu1 %3409  ;;  %v3444_v53 = vpop.permute.xlu0 %3443 }
 0x810   : > { %v3819_v35 = vsel %vm3809_vm14, %v7510_v29, %v3410_v32  ;;  %v3836_v37 = vsel %vm3809_vm14, %v7749_v40, %v3444_v53  ;;  %v3820_v29 = vsel %vm3809_vm14, %v7633_v49, %v3412_v21 }
 0x811   : > { %v3852_v28 = vsel %vm3842_vm15, %v3819_v35, %v3538_v52 }
 0x812   : > { %4321 = vmatmul.msk.f32.gmra.mxu1 %vm3888_vm0, %v3852_v28 }
 0x815   : > { %v3576_v31 = vpop.permute.xlu2 %3575 }
 0x817   : > { %v3572_v43 = vpop.permute.xlu1 %3571  ;;  %v3318_v36 = vpop.permute.xlu0 %3317 }
 0x818   : > { %v3869_v41 = vsel %vm3842_vm15, %v3836_v37, %v3572_v43  ;;  %v3804_v13 = vsel %vm3776_vm13, %v7437_v24, %v3318_v36 }
 0x819   : > { %4338 = vmatmul.msk.f32.gmra.mxu2 %vm3888_vm0, %v3869_v41  ;;  %v3837_v30 = vsel %vm3809_vm14, %v3804_v13, %v3446_v33 }
 0x81d   : > { %v3544_v20 = vpop.permute.xlu2 %3543 }
 0x81f   : > { %v3540_v34 = vpop.permute.xlu1 %3539  ;;  %v3574_v55 = vpop.permute.xlu0 %3573 }
 0x820   : > { %v3853_v14 = vsel %vm3842_vm15, %v3820_v29, %v3540_v34  ;;  %v3870_v40 = vsel %vm3842_vm15, %v3837_v30, %v3574_v55 }
 0x821   : > { %4322 = vmatmul.msk.f32.gmra.mxu1 %vm3888_vm0, %v3853_v14  ;;  %4339 = vmatmul.msk.f32.gmra.mxu2 %vm3888_vm0, %v3870_v40 }
 0x825   : > { %v3418_v61 = vpop.permute.xlu2 %3417 }
 0x826   : > { %v3823_v21 = vsel %vm3809_vm14, %v7679_v17, %v3418_v61 }
 0x827   : > { %v3414_v23 = vpop.permute.xlu1 %3413  ;;  %v3542_v39 = vpop.permute.xlu0 %3541 }
 0x828   : > { %v3821_v24 = vsel %vm3809_vm14, %v7676_v38, %v3414_v23 }
 0x829   : > { %v3854_v49 = vsel %vm3842_vm15, %v3821_v24, %v3542_v39 }
 0x82a   : > { %4323 = vmatmul.msk.f32.gmra.mxu1 %vm3888_vm0, %v3854_v49 }
 0x82c   : > { %v4050_v12 = vpop.f32.mrf.mxu2 }
 0x82d   : > { %v4051_v45 = vadd.f32 %v7882_v58, %v4050_v12  ;;  %v3452_v19 = vpop.permute.xlu2 %3451 }
 0x82f   : > { %v4114_v26 = vmax.f32 %v4051_v45, 0.0  ;;  %v3448_v56 = vpop.permute.xlu1 %3447  ;;  %v4002_v62 = vpop.f32.mrf.mxu1 }
 0x830   : > { %v3838_v38 = vsel %vm3809_vm14, %v3805_v5, %v3448_v56  ;;  %v4003_v10 = vadd.f32 %v7882_v58, %v4002_v62  ;;  %v3416_v9 = vpop.permute.xlu0 %3415 }
 0x831   : > { %v3822_v25 = vsel %vm3809_vm14, %v7555_v22, %v3416_v9  ;;  %4162 = vxpose.xlu0.b32.start [1/16] (narrow) %v4114_v26, 8  ;;  %v3871_v51 = vsel %vm3842_vm15, %v3838_v38, %v3576_v31 }
 0x832   : > { %v4098_v1 = vmax.f32 %v4003_v10, 0.0  ;;  %v3855_v11 = vsel %vm3842_vm15, %v3822_v25, %v3544_v20  ;;  %4340 = vmatmul.msk.f32.gmra.mxu2 %vm3888_vm0, %v3871_v51 }
 0x833   : > { %4324 = vmatmul.msk.f32.gmra.mxu1 %vm3888_vm0, %v3855_v11 }
 0x834   : > { %4130 = vxpose.xlu2.b32.start [1/16] (narrow) %v4098_v1, 8 }
 0x835   : > { %v3326_v17 = vpop.permute.xlu2 %3325 }
 0x836   : > { %v3808_v40 = vsel %vm3776_vm13, %v7517_v47, %v3326_v17 }
 0x837   : > { %v3322_v16 = vpop.permute.xlu1 %3321  ;;  %v4005_v50 = vpop.f32.mrf.mxu1 }
 0x838   : > { %v4006_v27 = vadd.f32 %v7882_v58, %v4005_v50  ;;  %v3450_v15 = vpop.permute.xlu0 %3449  ;;  %v3806_v22 = vsel %vm3776_vm13, %v7346_v18, %v3322_v16 }
 0x839   : > { %v3839_v52 = vsel %vm3809_vm14, %v3806_v22, %v3450_v15 }
 0x83a   : > { %v4099_v8 = vmax.f32 %v4006_v27, 0.0 }
 0x83c   : > { %v4053_v46 = vpop.f32.mrf.mxu2  ;;  %4131 = vxpose.xlu2.b32.cont [2/16] (narrow) %v4099_v8, 8 }
 0x83d   : > { %v4054_v57 = vadd.f32 %v7882_v58, %v4053_v46  ;;  %v3582_v14 = vpop.permute.xlu2 %3581 }
 0x83f   : > { %v4115_v0 = vmax.f32 %v4054_v57, 0.0  ;;  %v3578_v44 = vpop.permute.xlu1 %3577 }
 0x840   : > { %v3324_v42 = vpop.permute.xlu0 %3323  ;;  %v3872_v54 = vsel %vm3842_vm15, %v3839_v52, %v3578_v44 }
 0x841   : > { %4163 = vxpose.xlu0.b32.cont [2/16] (narrow) %v4115_v0, 8  ;;  %4341 = vmatmul.msk.f32.gmra.mxu2 %vm3888_vm0, %v3872_v54  ;;  %v3807_v2 = vsel %vm3776_vm13, %v7478_v3, %v3324_v42 }
 0x842   : > { %v3840_v28 = vsel %vm3809_vm14, %v3807_v2, %v3452_v19 }
 0x845   : > { %v4056_v4 = vpop.f32.mrf.mxu2 }
 0x846   : > { %v4057_v18 = vadd.f32 %v7882_v58, %v4056_v4  ;;  %v4008_v63 = vpop.f32.mrf.mxu1 }
 0x847   : > { %v4009_v60 = vadd.f32 %v7882_v58, %v4008_v63  ;;  %v3546_v48 = vpop.permute.xlu1 %3545 }
 0x848   : > { %v4116_v32 = vmax.f32 %v4057_v18, 0.0  ;;  %v3580_v53 = vpop.permute.xlu0 %3579  ;;  %v3856_v35 = vsel %vm3842_vm15, %v3823_v21, %v3546_v48 }
 0x849   : > { %v4100_v33 = vmax.f32 %v4009_v60, 0.0  ;;  %4325 = vmatmul.msk.f32.gmra.mxu1 %vm3888_vm0, %v3856_v35  ;;  %v3873_v3 = vsel %vm3842_vm15, %v3840_v28, %v3580_v53 }
 0x84a   : > { %4342 = vmatmul.msk.f32.gmra.mxu2 %vm3888_vm0, %v3873_v3  ;;  %4164 = vxpose.xlu0.b32.cont [3/16] (narrow) %v4116_v32, 8 }
 0x84b   : > { %4132 = vxpose.xlu2.b32.cont [3/16] (narrow) %v4100_v33, 8 }
 0x84d   : > { %v4059_v37 = vpop.f32.mrf.mxu2 }
 0x84e   : > { %v4060_v43 = vadd.f32 %v7882_v58, %v4059_v37 }
 0x84f   : > { %v3420_v36 = vpop.permute.xlu1 %3419  ;;  %v4011_v41 = vpop.f32.mrf.mxu1 }
 0x850   : > { %v4117_v6 = vmax.f32 %v4060_v43, 0.0  ;;  %v3824_v13 = vsel %vm3809_vm14, %v7711_v59, %v3420_v36  ;;  %v4012_v29 = vadd.f32 %v7882_v58, %v4011_v41  ;;  %v3548_v34 = vpop.permute.xlu0 %3547 }
 0x851   : > { %v3857_v55 = vsel %vm3842_vm15, %v3824_v13, %v3548_v34 }
 0x852   : > { %v4101_v30 = vmax.f32 %v4012_v29, 0.0  ;;  %4165 = vxpose.xlu0.b32.cont [4/16] (narrow) %v4117_v6, 8  ;;  %4326 = vmatmul.msk.f32.gmra.mxu1 %vm3888_vm0, %v3857_v55 }
 0x854   : > { %4133 = vxpose.xlu2.b32.cont [4/16] (narrow) %v4101_v30, 8 }
 0x857   : > { %v3454_v31 = vpop.permute.xlu1 %3453  ;;  %v4014_v23 = vpop.f32.mrf.mxu1 }
 0x858   : > { %v3841_v39 = vsel %vm3809_vm14, %v3808_v40, %v3454_v31  ;;  %v4015_v59 = vadd.f32 %v7882_v58, %v4014_v23  ;;  %v3422_v12 = vpop.permute.xlu0 %3421 }
 0x859   : > { %v3874_v24 = vsel %vm3842_vm15, %v3841_v39, %v3582_v14  ;;  %v3825_v26 = vsel %vm3809_vm14, %v7590_v7, %v3422_v12 }
 0x85a   : > { %v4102_v49 = vmax.f32 %v4015_v59, 0.0  ;;  %4343 = vmatmul.msk.f32.gmra.mxu2 %vm3888_vm0, %v3874_v24 }
 0x85c   : > { %v4062_v45 = vpop.f32.mrf.mxu2  ;;  %4134 = vxpose.xlu2.b32.cont [5/16] (narrow) %v4102_v49, 8 }
 0x85d   : > { %v4063_v5 = vadd.f32 %v7882_v58, %v4062_v45 }
 0x85f   : > { %v4118_v47 = vmax.f32 %v4063_v5, 0.0  ;;  %v3550_v56 = vpop.permute.xlu1 %3549 }
 0x860   : > { %v3858_v62 = vsel %vm3842_vm15, %v3825_v26, %v3550_v56 }
 0x861   : > { %4166 = vxpose.xlu0.b32.cont [5/16] (narrow) %v4118_v47, 8  ;;  %4327 = vmatmul.msk.f32.gmra.mxu1 %vm3888_vm0, %v3858_v62 }
 0x865   : > { %v4065_v20 = vpop.f32.mrf.mxu2 }
 0x866   : > { %v4066_v38 = vadd.f32 %v7882_v58, %v4065_v20  ;;  %v4017_v10 = vpop.f32.mrf.mxu1 }
 0x867   : > { %v4018_v9 = vadd.f32 %v7882_v58, %v4017_v10 }
 0x868   : > { %v4119_v25 = vmax.f32 %v4066_v38, 0.0 }
 0x869   : > { %v4103_v51 = vmax.f32 %v4018_v9, 0.0 }
 0x86a   : > { %4167 = vxpose.xlu0.b32.cont [6/16] (narrow) %v4119_v25, 8 }
 0x86b   : > { %4135 = vxpose.xlu2.b32.cont [6/16] (narrow) %v4103_v51, 8 }
 0x86d   : > { %v4068_v1 = vpop.f32.mrf.mxu2 }
 0x86e   : > { %v4069_v7 = vadd.f32 %v7882_v58, %v4068_v1 }
 0x86f   : > { %v4020_v11 = vpop.f32.mrf.mxu1 }
 0x870   : > { %v4120_v16 = vmax.f32 %v4069_v7, 0.0  ;;  %v4021_v50 = vadd.f32 %v7882_v58, %v4020_v11 }
 0x872   : > { %v4104_v27 = vmax.f32 %v4021_v50, 0.0  ;;  %4168 = vxpose.xlu0.b32.cont [7/16] (narrow) %v4120_v16, 8 }
 0x874   : > { %4136 = vxpose.xlu2.b32.cont [7/16] (narrow) %v4104_v27, 8 }
 0x877   : > { %v4023_v15 = vpop.f32.mrf.mxu1 }
 0x878   : > { %v4024_v61 = vadd.f32 %v7882_v58, %v4023_v15 }
 0x87a   : > { %v4105_v8 = vmax.f32 %v4024_v61, 0.0 }
 0x87c   : > { %v4071_v22 = vpop.f32.mrf.mxu2  ;;  %4137 = vxpose.xlu2.b32.cont [8/16] (narrow) %v4105_v8, 8 }
 0x87d   : > { %v4072_v46 = vadd.f32 %v7882_v58, %v4071_v22 }
 0x87f   : > { %v4121_v57 = vmax.f32 %v4072_v46, 0.0 }
 0x881   : > { %4169 = vxpose.xlu0.b32.cont [8/16] (narrow) %v4121_v57, 8 }
 0x885   : > { %v4074_v52 = vpop.f32.mrf.mxu2 }
 0x886   : > { %v4075_v0 = vadd.f32 %v7882_v58, %v4074_v52  ;;  %v4026_v44 = vpop.f32.mrf.mxu1 }
 0x887   : > { %v4027_v42 = vadd.f32 %v7882_v58, %v4026_v44 }
 0x888   : > { %v4122_v54 = vmax.f32 %v4075_v0, 0.0 }
 0x889   : > { %v4106_v19 = vmax.f32 %v4027_v42, 0.0 }
 0x88a   : > { %4170 = vxpose.xlu0.b32.cont [9/16] (narrow) %v4122_v54, 8 }
 0x88b   : > { %4138 = vxpose.xlu2.b32.cont [9/16] (narrow) %v4106_v19, 8 }
 0x88d   : > { %v4077_v2 = vpop.f32.mrf.mxu2 }
 0x88e   : > { %v4078_v4 = vadd.f32 %v7882_v58, %v4077_v2 }
 0x88f   : > { %v4029_v18 = vpop.f32.mrf.mxu1 }
 0x890   : > { %v4123_v63 = vmax.f32 %v4078_v4, 0.0  ;;  %v4030_v21 = vadd.f32 %v7882_v58, %v4029_v18 }
 0x892   : > { %v4107_v60 = vmax.f32 %v4030_v21, 0.0  ;;  %4171 = vxpose.xlu0.b32.cont [10/16] (narrow) %v4123_v63, 8 }
 0x894   : > { %4139 = vxpose.xlu2.b32.cont [10/16] (narrow) %v4107_v60, 8 }
 0x89c   : > { %v4080_v48 = vpop.f32.mrf.mxu2 }
 0x89d   : > { %v4081_v32 = vadd.f32 %v7882_v58, %v4080_v48 }
 0x89e   : > { %v4032_v53 = vpop.f32.mrf.mxu1 }
 0x89f   : > { %v4124_v35 = vmax.f32 %v4081_v32, 0.0  ;;  %v4033_v28 = vadd.f32 %v7882_v58, %v4032_v53 }
 0x8a1   : > { %v4108_v33 = vmax.f32 %v4033_v28, 0.0  ;;  %4172 = vxpose.xlu0.b32.cont [11/16] (narrow) %v4124_v35, 8 }
 0x8a3   : > { %4140 = vxpose.xlu2.b32.cont [11/16] (narrow) %v4108_v33, 8 }
 0x8a4   : > { %v4083_v3 = vpop.f32.mrf.mxu2 }
 0x8a5   : > { %v4084_v37 = vadd.f32 %v7882_v58, %v4083_v3 }
 0x8a7   : > { %v4125_v17 = vmax.f32 %v4084_v37, 0.0  ;;  %v4035_v43 = vpop.f32.mrf.mxu1 }
 0x8a8   : > { %v4036_v36 = vadd.f32 %v7882_v58, %v4035_v43 }
 0x8a9   : > { %4173 = vxpose.xlu0.b32.cont [12/16] (narrow) %v4125_v17, 8 }
 0x8aa   : > { %v4109_v41 = vmax.f32 %v4036_v36, 0.0 }
 0x8ac   : > { %4141 = vxpose.xlu2.b32.cont [12/16] (narrow) %v4109_v41, 8 }
 0x8b0   : > { %v4038_v6 = vpop.f32.mrf.mxu1 }
 0x8b1   : > { %v4039_v13 = vadd.f32 %v7882_v58, %v4038_v6 }
 0x8b3   : > { %v4110_v29 = vmax.f32 %v4039_v13, 0.0 }
 0x8b5   : > { %4142 = vxpose.xlu2.b32.cont [13/16] (narrow) %v4110_v29, 8  ;;  %v4086_v34 = vpop.f32.mrf.mxu2 }
 0x8b6   : > { %v4087_v55 = vadd.f32 %v7882_v58, %v4086_v34 }
 0x8b8   : > { %v4126_v30 = vmax.f32 %v4087_v55, 0.0 }
 0x8ba   : > { %4174 = vxpose.xlu0.b32.cont [13/16] (narrow) %v4126_v30, 8 }
 0x8c4   : > { %v4089_v14 = vpop.f32.mrf.mxu2 }
 0x8c5   : > { %v4090_v40 = vadd.f32 %v7882_v58, %v4089_v14 }
 0x8c6   : > { %v4041_v31 = vpop.f32.mrf.mxu1 }
 0x8c7   : > { %v4127_v23 = vmax.f32 %v4090_v40, 0.0  ;;  %v4042_v39 = vadd.f32 %v7882_v58, %v4041_v31 }
 0x8c9   : > { %v4111_v59 = vmax.f32 %v4042_v39, 0.0  ;;  %4175 = vxpose.xlu0.b32.cont [14/16] (narrow) %v4127_v23, 8 }
 0x8cb   : > { %4143 = vxpose.xlu2.b32.cont [14/16] (narrow) %v4111_v59, 8 }
 0x8cd   : > { %v4092_v24 = vpop.f32.mrf.mxu2 }
 0x8ce   : > { %v4093_v49 = vadd.f32 %v7882_v58, %v4092_v24 }
 0x8cf   : > { %v4044_v12 = vpop.f32.mrf.mxu1 }
 0x8d0   : > { %v4128_v45 = vmax.f32 %v4093_v49, 0.0  ;;  %v4045_v5 = vadd.f32 %v7882_v58, %v4044_v12 }
 0x8d2   : > { %v4112_v26 = vmax.f32 %v4045_v5, 0.0  ;;  %4176 = vxpose.xlu0.b32.cont [15/16] (narrow) %v4128_v45, 8 }
 0x8d4   : > { %4144 = vxpose.xlu2.b32.cont [15/16] (narrow) %v4112_v26, 8 }
 0x8dd   : > { %v4095_v47 = vpop.f32.mrf.mxu2 }
 0x8de   : > { %v4096_v56 = vadd.f32 %v7882_v58, %v4095_v47  ;;  %v4047_v62 = vpop.f32.mrf.mxu1 }
 0x8df   : > { %v4048_v20 = vadd.f32 %v7882_v58, %v4047_v62 }
 0x8e0   : > { %v4129_v38 = vmax.f32 %v4096_v56, 0.0 }
 0x8e1   : > { %v4113_v10 = vmax.f32 %v4048_v20, 0.0 }
 0x8e2   : > { %4177 = vxpose.xlu0.b32.end [16/16] (narrow) %v4129_v38, 8 }
 0x8e3   : > { %4145 = vxpose.xlu2.b32.end [16/16] (narrow) %v4113_v10, 8 }
 0x904   : > { %v4146_v9 = vpop.trf.xlu2 }
 0x905   : > { %4194 = vst [vmem:[%s217_s9] sm:$0xff] %v4146_v9 }
 0x90e   : > { %v4178_v58 = vpop.trf.xlu0 }
 0x90f   : > { %4195 = vst [vmem:[%s217_s9 + $0x8] sm:$0xff] %v4178_v58 }
 0x910   : > { %4479 = shalt.err (!%p4476_p3)
}
 0x911   : > { %4365 = dma.vmem_to_hbm [thread:$0]  (%p4597_p5), %s4211_s16, 256, %s4213_s10, %s4197_s23  }
 0x912 PF: > { %p4371_p4 = scmp.ge.s32.totalorder %s4514_s21, 2  ;;  %s4224_s17 = sand.u32 1, %s4502_s18  }
 0x913   : > { %s4225_s7 = scalar_lea.sflag [#allocation5], %s4224_s17 }
 0x914   : > { %p4368_p7 = pnand %p4371_p4, %p4601_p6 }
 0x916   : > { %p4369_p8 = pneg %p4368_p7 }
 0x918   : > { %4497 = dma.done.wait (%p4369_p8), %s4225_s7, 256  }
 0x919   : > { %4499 = vsyncadd (%p4369_p8), %s4225_s7, 4294967040  ;;  %p15_p9 = scmp.ge.s32.totalorder %s4584_s24, 4   ;;  %s8643_s18 = smov %s4506_s19 }
 0x91a   : > { %s8644_s19 = smov %s4510_s20  ;;  %s8645_s20 = smov %s4595_s27 }
 0x91b   : > { %s8646_s21 = smov %s4584_s24  ;;  %17 = sbr.rel (!%p15_p9) target bundleno = 3 (0x3), region = 79 }
 0x920   :  { %4231 = vsyncpa [#allocation5], 1 }
 0x921   :  { %4233 = vsyncpa [#allocation5 + $0x1], 1 }

</bundles_post_ra>
